<compile_context>
chip_gen: v7x
topology: tpu7x:2x2x1
jax: 0.10.0
libtpu: 0.0.40
codegen_flags: <defaults>
</compile_context>

<pallas_src>
import functools

import jax
import jax.numpy as jnp
from jax import lax
from jax.experimental import pallas as pl
from jax.experimental.pallas import tpu as pltpu

_EPS = 1e-5
_OUT_LANES = 128          # lane-dense output width (single unmasked 128-lane store)


def _matmul_nt(a, b):
    """a @ b.T (contract last dims of both) on the MXU with f32 accumulation."""
    return lax.dot_general(a, b, (((1,), (1,)), ((), ())),
                           preferred_element_type=jnp.float32)


def _layer_norm(z, w, b):
    m = jnp.mean(z, axis=-1, keepdims=True)
    v = jnp.mean((z - m) ** 2, axis=-1, keepdims=True)
    return (z - m) * lax.rsqrt(v + _EPS) * w + b


# --------------------------------------------------------------------------
# Single fused Pallas kernel:
#   TransformerEncoderLayer (post-norm, nhead=1, dim_ff=1, dropout=0, relu)
#   applied to the one consumed batch element, followed by RNN_layers
#   ([bn->relu(conv1)] x2 -> bn->relu(conv2) -> bn -> LSTM) x n_loop and the
#   projection / projection_2 matmuls + log_softmax.
# Perf notes vs previous version:
#   * batch-0 only (the other N-1 encoder iterations were dead work)
#   * one pallas_call, grid=(1,)  -> no per-batch grid-step overhead, no HBM
#     round trip of the (C,T) intermediate
#   * qkv / LSTM gate weights pre-split in glue -> no sub-lane slicing in-kernel
#   * BatchNorm affine and the 1x1-conv scalars folded (exactly) into per-stage
#     gain/bias pairs -> 2 full-array multiplies saved per stage
#   * softmax denominator uses pl.reciprocal(approx=True) (EUP slot)
#   * LSTM step outputs written into a VMEM scratch row-by-row (no concat)
#   * single lane-dense (C,128) output store instead of two sub-128 masked stores
# --------------------------------------------------------------------------
def fused_transformer_kernel(
        x_ref,
        qw_ref, qb_ref, kw_ref, kb_ref, vw_ref, vb_ref,
        ow_ref, ob_ref,
        ln1w_ref, ln1b_ref, ln2w_ref, ln2b_ref,
        l1w_ref, l1b_ref, l2w_ref, l2b_ref,
        bn_gain_ref, bn_bias_ref,
        wih_i_ref, wih_f_ref, wih_g_ref, wih_o_ref,
        whh_i_ref, whh_f_ref, whh_g_ref, whh_o_ref,
        pw_ref, p2w_ref,
        out_ref,
        hs_ref,
        *, n_loop, seq_len, hidden):
    t = hidden
    x = x_ref[...]                                                 # (C, T)

    # ---------------- encoder layer (single head) ----------------
    q = _matmul_nt(x, qw_ref[...]) + qb_ref[...]                   # (C, T)
    k = _matmul_nt(x, kw_ref[...]) + kb_ref[...]
    v = _matmul_nt(x, vw_ref[...]) + vb_ref[...]
    scores = _matmul_nt(q, k) * (1.0 / jnp.sqrt(jnp.float32(t)))   # (C, C)
    scores = scores - jnp.max(scores, axis=-1, keepdims=True)
    p = jnp.exp(scores)
    p = p * pl.reciprocal(jnp.sum(p, axis=-1, keepdims=True), approx=True)
    attn = jnp.dot(p, v, preferred_element_type=jnp.float32)       # (C, T)
    attn = _matmul_nt(attn, ow_ref[...]) + ob_ref[...]
    h1 = _layer_norm(x + attn, ln1w_ref[...], ln1b_ref[...])
    # feed-forward with dim_feedforward == 1 (reduce + broadcast, not K=1 matmul)
    f1 = jnp.sum(h1 * l1w_ref[...], axis=-1, keepdims=True) + l1b_ref[0, 0]
    f1 = jnp.maximum(f1, 0.0)
    f2 = f1 * l2w_ref[...] + l2b_ref[...]
    out = _layer_norm(h1 + f2, ln2w_ref[...], ln2b_ref[...])       # (C, T)

    # ---------------- RNN_layers ----------------
    # BatchNorm2d(1) in training mode (biased var over all elements); the 1x1
    # conv scalar that follows each bn is exactly folded into the bn affine
    # (relu(c * (z_hat*g + b)) == relu(z_hat*(c*g) + c*b)), precomputed in glue.
    def bn_affine(z, stage):
        m = jnp.mean(z)
        vv = jnp.mean((z - m) ** 2)
        return ((z - m) * lax.rsqrt(vv + _EPS) * bn_gain_ref[0, stage]
                + bn_bias_ref[0, stage])

    for _ in range(n_loop):                                        # trace-time loop
        out = jnp.maximum(bn_affine(out, 0), 0.0)                  # bn -> conv1 -> relu
        out = jnp.maximum(bn_affine(out, 1), 0.0)                  # bn -> conv1 -> relu
        out = jnp.maximum(bn_affine(out, 2), 0.0)                  # bn -> conv2 -> relu
        out = bn_affine(out, 3)                                    # bn (no conv/relu)

        # LSTM (bias=False), unbatched input (seq_len, T) -> (seq_len, T)
        gxi = _matmul_nt(out, wih_i_ref[...])                      # (C, T) per gate
        gxf = _matmul_nt(out, wih_f_ref[...])
        gxg = _matmul_nt(out, wih_g_ref[...])
        gxo = _matmul_nt(out, wih_o_ref[...])
        h = jnp.zeros((1, hidden), jnp.float32)
        c = jnp.zeros((1, hidden), jnp.float32)
        for tt in range(seq_len):                                  # static unroll (small C)
            i_g = jax.nn.sigmoid(gxi[tt:tt + 1, :] + _matmul_nt(h, whh_i_ref[...]))
            f_g = jax.nn.sigmoid(gxf[tt:tt + 1, :] + _matmul_nt(h, whh_f_ref[...]))
            g_g = jnp.tanh(gxg[tt:tt + 1, :] + _matmul_nt(h, whh_g_ref[...]))
            o_g = jax.nn.sigmoid(gxo[tt:tt + 1, :] + _matmul_nt(h, whh_o_ref[...]))
            c = f_g * c + i_g * g_g
            h = o_g * jnp.tanh(c)
            hs_ref[tt:tt + 1, :] = h                               # write row to scratch
        out = hs_ref[...]                                          # (C, T)

    # ---------------- projections + log_softmax over the C axis ----------------
    outp = _matmul_nt(out, pw_ref[...])                            # (C, T)
    out2 = _matmul_nt(out, p2w_ref[...])                           # (C, T+1)

    def log_softmax_ax0(z):   # == log_softmax(z.T, dim=1).T
        m = jnp.max(z, axis=0, keepdims=True)
        s = z - m
        return s - jnp.log(jnp.sum(jnp.exp(s), axis=0, keepdims=True))

    ls_p = log_softmax_ax0(outp)                                   # (C, T)
    ls_2 = log_softmax_ax0(out2)                                   # (C, T+1)

    # single lane-dense store: cols [0:T] = out, [T:2T+1] = out_2, rest zero pad
    pad = jnp.zeros((seq_len, out_ref.shape[1] - (2 * t + 1)), jnp.float32)
    out_ref[...] = jnp.concatenate([ls_p, ls_2, pad], axis=1)


# --------------------------------------------------------------------------
# wrappers
# --------------------------------------------------------------------------
def _const_spec(shape):
    nd = len(shape)
    return pl.BlockSpec(shape, lambda i, _nd=nd: (0,) * _nd)


def fused_forward_pallas(x0, p, n_loop):
    """x0: (C, T) embedded batch-0 slab.  Returns (out (T,C), out_2 (T+1,C))."""
    c, t = x0.shape

    # exact fold of bn affine + following 1x1-conv scalar, per stage
    g, b = p["bn_g"], p["bn_b"]
    c1, c2 = p["conv1_w"], p["conv2_w"]
    bn_gain = jnp.concatenate([g * c1, g * c1, g * c2, g], axis=1)   # (1, 4)
    bn_bias = jnp.concatenate([b * c1, b * c1, b * c2, b], axis=1)   # (1, 4)

    # split packed qkv / LSTM weights outside the kernel (no in-kernel lane slicing)
    ipw, ipb = p["in_proj_w"], p["in_proj_b"]
    qw, kw, vw = ipw[:t], ipw[t:2 * t], ipw[2 * t:]
    qb, kb, vb = ipb[:, :t], ipb[:, t:2 * t], ipb[:, 2 * t:]
    wih, whh = p["lstm_wih"], p["lstm_whh"]
    wih_i, wih_f, wih_g, wih_o = wih[:t], wih[t:2 * t], wih[2 * t:3 * t], wih[3 * t:]
    whh_i, whh_f, whh_g, whh_o = whh[:t], whh[t:2 * t], whh[2 * t:3 * t], whh[3 * t:]

    args = [x0,
            qw, qb, kw, kb, vw, vb,
            p["out_w"], p["out_b"],
            p["ln1_w"], p["ln1_b"], p["ln2_w"], p["ln2_b"],
            p["lin1_w"], p["lin1_b"], p["lin2_w_row"], p["lin2_b"],
            bn_gain, bn_bias,
            wih_i, wih_f, wih_g, wih_o, whh_i, whh_f, whh_g, whh_o,
            p["proj_w"], p["proj2_w"]]

    kernel = functools.partial(fused_transformer_kernel,
                               n_loop=n_loop, seq_len=c, hidden=t)
    out_pad = pl.pallas_call(
        kernel,
        out_shape=jax.ShapeDtypeStruct((c, _OUT_LANES), jnp.float32),
        grid=(1,),
        in_specs=[_const_spec(a.shape) for a in args],
        out_specs=_const_spec((c, _OUT_LANES)),
        scratch_shapes=[pltpu.VMEM((c, t), jnp.float32)],
        compiler_params=pltpu.CompilerParams(dimension_semantics=("arbitrary",)),
    )(*args)

    out = out_pad[:, :t].T                 # (T, C)
    out_2 = out_pad[:, t:2 * t + 1].T      # (T+1, C)
    return out, out_2


def _n_loop_iters(dropout):
    # replicate the `while dropout_3 <= 1 ... dropout_3 += dropout` loop at trace time
    n, d = 0, 0.0
    while d <= 1:
        if d >= 1:
            break
        n += 1
        d += dropout
    return n


def build_enc_output(training_lst):
    # glue: mimic dict-of-lists -> stack -> flatten -> stack(dim=1) -> long -> transpose
    keys = sorted(k for k in training_lst[0] if k != "type_event_final")
    cols = [jnp.stack([d[k] for d in training_lst]).astype(jnp.float32).reshape(-1)
            for k in keys]
    enc = jnp.stack(cols, axis=1).astype(jnp.int32)   # (token_1, C)
    return enc.T                                      # (C, token_1)


def init_params(key, t):
    # TODO(synk): the PyTorch forward instantiates fresh randomly-initialized modules
    # every call; that host-side re-init is replicated here in the wrapper, not in-kernel.
    ks = jax.random.split(key, 13)
    u = lambda k, shape, s: jax.random.uniform(k, shape, jnp.float32, -s, s)
    return dict(
        embedding=jax.random.normal(ks[0], (t, t), jnp.float32),
        in_proj_w=u(ks[1], (3 * t, t), (6.0 / (4 * t)) ** 0.5),
        in_proj_b=u(ks[2], (1, 3 * t), 0.1),
        out_w=u(ks[3], (t, t), (3.0 / t) ** 0.5),
        out_b=u(ks[4], (1, t), 0.1),
        ln1_w=jnp.ones((1, t), jnp.float32),
        ln1_b=jnp.zeros((1, t), jnp.float32),
        ln2_w=jnp.ones((1, t), jnp.float32),
        ln2_b=jnp.zeros((1, t), jnp.float32),
        lin1_w=u(ks[5], (1, t), (1.0 / t) ** 0.5),
        lin1_b=u(ks[6], (1, 1), (1.0 / t) ** 0.5),
        lin2_w_row=u(ks[7], (1, t), 1.0),        # linear2 weight (T,1) stored transposed
        lin2_b=u(ks[8], (1, t), 1.0),
        bn_g=jnp.ones((1, 1), jnp.float32),
        bn_b=jnp.zeros((1, 1), jnp.float32),
        conv1_w=jnp.array([[0.8]], jnp.float32),
        conv2_w=jnp.array([[1.2]], jnp.float32),
        lstm_wih=u(ks[9], (4 * t, t), (1.0 / t) ** 0.5),
        lstm_whh=u(ks[10], (4 * t, t), (1.0 / t) ** 0.5),
        proj_w=u(ks[11], (t, t), (6.0 / (2 * t)) ** 0.5),        # xavier_uniform
        proj2_w=u(ks[12], (t + 1, t), (1.0 / t) ** 0.5),
    )


def transformer_forward(training_lst, dropout, param_key):
    enc = build_enc_output(training_lst)          # (C, token_1) int32
    c, token_1 = enc.shape
    params = init_params(param_key, token_1)
    # Only batch element 0 of the encoder output is consumed downstream
    # (LearnedSiLU == enc_output_idx[:, 0, :]), so embed/encode just that slab.
    x0 = params["embedding"][enc[:, 0]]           # (C, T)
    n_loop = _n_loop_iters(dropout)
    out, out_2 = fused_forward_pallas(x0, params, n_loop)
    return out, out_2, enc, params, n_loop


# --------------------------------------------------------------------------
# pure-JAX reference (full-batch encoder + unfused RNN math) for a sanity check;
# validates both the batch-0-only shortcut and the in-kernel folds/splits.
# --------------------------------------------------------------------------
def reference_forward(enc, p, n_loop):
    emb = p["embedding"][enc]                     # (C, N, T)
    c, n, t = emb.shape

    def ln(z, w, b):
        m = z.mean(-1, keepdims=True)
        v = ((z - m) ** 2).mean(-1, keepdims=True)
        return (z - m) / jnp.sqrt(v + _EPS) * w + b

    def enc_layer(x):  # (C, T)
        qkv = x @ p["in_proj_w"].T + p["in_proj_b"][0]
        q, k, v = qkv[:, :t], qkv[:, t:2 * t], qkv[:, 2 * t:]
        s = (q @ k.T) / jnp.sqrt(jnp.float32(t))
        a = jax.nn.softmax(s, axis=-1) @ v
        a = a @ p["out_w"].T + p["out_b"][0]
        h = ln(x + a, p["ln1_w"][0], p["ln1_b"][0])
        f1 = jnp.maximum(h @ p["lin1_w"][0][:, None] + p["lin1_b"][0, 0], 0.0)
        f2 = f1 * p["lin2_w_row"][0][None, :] + p["lin2_b"][0][None, :]
        return ln(h + f2, p["ln2_w"][0], p["ln2_b"][0])

    y = jax.vmap(enc_layer, in_axes=1, out_axes=1)(emb)
    out = y[:, 0, :]

    def bn(z):
        m = jnp.mean(z)
        v = jnp.mean((z - m) ** 2)
        return (z - m) / jnp.sqrt(v + _EPS) * p["bn_g"][0, 0] + p["bn_b"][0, 0]

    for _ in range(n_loop):
        out = bn(out)
        out = jnp.maximum(out * p["conv1_w"][0, 0], 0.0)
        out = bn(out)
        out = jnp.maximum(out * p["conv1_w"][0, 0], 0.0)
        out = bn(out)
        out = jnp.maximum(out * p["conv2_w"][0, 0], 0.0)
        out = bn(out)
        gx = out @ p["lstm_wih"].T
        h = jnp.zeros((t,)); cc = jnp.zeros((t,))
        hs = []
        for step in range(out.shape[0]):
            g = gx[step] + h @ p["lstm_whh"].T
            i_g = jax.nn.sigmoid(g[:t]); f_g = jax.nn.sigmoid(g[t:2 * t])
            g_g = jnp.tanh(g[2 * t:3 * t]); o_g = jax.nn.sigmoid(g[3 * t:])
            cc = f_g * cc + i_g * g_g
            h = o_g * jnp.tanh(cc)
            hs.append(h)
        out = jnp.stack(hs, 0)

    out2 = out @ p["proj2_w"].T
    outp = out @ p["proj_w"].T
    return (jax.nn.log_softmax(outp.T, axis=1), jax.nn.log_softmax(out2.T, axis=1))


if __name__ == "__main__":
    key = jax.random.PRNGKey(0)
    k_in, k_par = jax.random.split(key)

    # synthetic training_lst: 2 dicts, 4 feature keys (+ 'type_event_final'),
    # each value a length-4 integer-valued vector  ->  token_1 = 2 * 4 = 8, C = 4
    num_dicts, per_len = 2, 4
    feat_keys = ["feat_a", "feat_b", "feat_c", "feat_d"]
    token_1 = num_dicts * per_len
    subkeys = jax.random.split(k_in, num_dicts * (len(feat_keys) + 1))
    training_lst, idx = [], 0
    for _ in range(num_dicts):
        entry = {}
        for fk in feat_keys:
            entry[fk] = jax.random.randint(subkeys[idx], (per_len,), 0, token_1
                                           ).astype(jnp.float32)
            idx += 1
        entry["type_event_final"] = jax.random.randint(subkeys[idx], (per_len,), 0, token_1
                                                       ).astype(jnp.float32)
        idx += 1
        training_lst.append(entry)

    dropout = 0.5   # -> while-loop runs twice, as in the PyTorch code

    out, out_2, enc, params, n_loop = transformer_forward(training_lst, dropout, k_par)
    out = jax.block_until_ready(out)
    out_2 = jax.block_until_ready(out_2)

    assert out.shape == (token_1, len(feat_keys)), out.shape
    assert out_2.shape == (token_1 + 1, len(feat_keys)), out_2.shape
    assert bool(jnp.all(jnp.isfinite(out))) and bool(jnp.all(jnp.isfinite(out_2)))
    # log_softmax rows should exponentiate-sum to ~1
    assert bool(jnp.allclose(jnp.exp(out).sum(axis=1), 1.0, atol=1e-3))
    assert bool(jnp.allclose(jnp.exp(out_2).sum(axis=1), 1.0, atol=1e-3))

    ref_out, ref_out2 = reference_forward(enc, params, n_loop)
    assert bool(jnp.allclose(out, ref_out, atol=5e-2, rtol=5e-2))
    assert bool(jnp.allclose(out_2, ref_out2, atol=5e-2, rtol=5e-2))

    print("KERNEL_OK")
</pallas_src>

<mosaic_0001>
module attributes {stable_mosaic.version = 11 : i64} {
  func.func @fused_transformer_kernel(%arg0: i32, %arg1: memref<4x8xf32, #tpu.memory_space<vmem>>, %arg2: memref<8x8xf32, #tpu.memory_space<vmem>>, %arg3: memref<1x8xf32, #tpu.memory_space<vmem>>, %arg4: memref<8x8xf32, #tpu.memory_space<vmem>>, %arg5: memref<1x8xf32, #tpu.memory_space<vmem>>, %arg6: memref<8x8xf32, #tpu.memory_space<vmem>>, %arg7: memref<1x8xf32, #tpu.memory_space<vmem>>, %arg8: memref<8x8xf32, #tpu.memory_space<vmem>>, %arg9: memref<1x8xf32, #tpu.memory_space<vmem>>, %arg10: memref<1x8xf32, #tpu.memory_space<vmem>>, %arg11: memref<1x8xf32, #tpu.memory_space<vmem>>, %arg12: memref<1x8xf32, #tpu.memory_space<vmem>>, %arg13: memref<1x8xf32, #tpu.memory_space<vmem>>, %arg14: memref<1x8xf32, #tpu.memory_space<vmem>>, %arg15: memref<1x1xf32, #tpu.memory_space<vmem>>, %arg16: memref<1x8xf32, #tpu.memory_space<vmem>>, %arg17: memref<1x8xf32, #tpu.memory_space<vmem>>, %arg18: memref<1x4xf32, #tpu.memory_space<vmem>>, %arg19: memref<1x4xf32, #tpu.memory_space<vmem>>, %arg20: memref<8x8xf32, #tpu.memory_space<vmem>>, %arg21: memref<8x8xf32, #tpu.memory_space<vmem>>, %arg22: memref<8x8xf32, #tpu.memory_space<vmem>>, %arg23: memref<8x8xf32, #tpu.memory_space<vmem>>, %arg24: memref<8x8xf32, #tpu.memory_space<vmem>>, %arg25: memref<8x8xf32, #tpu.memory_space<vmem>>, %arg26: memref<8x8xf32, #tpu.memory_space<vmem>>, %arg27: memref<8x8xf32, #tpu.memory_space<vmem>>, %arg28: memref<8x8xf32, #tpu.memory_space<vmem>>, %arg29: memref<9x8xf32, #tpu.memory_space<vmem>>, %arg30: memref<4x128xf32, #tpu.memory_space<vmem>>, %arg31: memref<4x8xf32, #tpu.memory_space<vmem>>) attributes {dimension_semantics = [#tpu.dimension_semantics<arbitrary>], iteration_bounds = array<i64: 1>, scalar_prefetch = 0 : i64, scratch_operands = 1 : i64, tpu.core_type = #tpu.core_type<tc>, window_params = [{pipeline_mode = #tpu.pipeline_mode<synchronous>, transform_indices = @transform_0, window_bounds = array<i64: 4, 8>}, {pipeline_mode = #tpu.pipeline_mode<synchronous>, transform_indices = @transform_1, window_bounds = array<i64: 8, 8>}, {pipeline_mode = #tpu.pipeline_mode<synchronous>, transform_indices = @transform_2, window_bounds = array<i64: 1, 8>}, {pipeline_mode = #tpu.pipeline_mode<synchronous>, transform_indices = @transform_3, window_bounds = array<i64: 8, 8>}, {pipeline_mode = #tpu.pipeline_mode<synchronous>, transform_indices = @transform_4, window_bounds = array<i64: 1, 8>}, {pipeline_mode = #tpu.pipeline_mode<synchronous>, transform_indices = @transform_5, window_bounds = array<i64: 8, 8>}, {pipeline_mode = #tpu.pipeline_mode<synchronous>, transform_indices = @transform_6, window_bounds = array<i64: 1, 8>}, {pipeline_mode = #tpu.pipeline_mode<synchronous>, transform_indices = @transform_7, window_bounds = array<i64: 8, 8>}, {pipeline_mode = #tpu.pipeline_mode<synchronous>, transform_indices = @transform_8, window_bounds = array<i64: 1, 8>}, {pipeline_mode = #tpu.pipeline_mode<synchronous>, transform_indices = @transform_9, window_bounds = array<i64: 1, 8>}, {pipeline_mode = #tpu.pipeline_mode<synchronous>, transform_indices = @transform_10, window_bounds = array<i64: 1, 8>}, {pipeline_mode = #tpu.pipeline_mode<synchronous>, transform_indices = @transform_11, window_bounds = array<i64: 1, 8>}, {pipeline_mode = #tpu.pipeline_mode<synchronous>, transform_indices = @transform_12, window_bounds = array<i64: 1, 8>}, {pipeline_mode = #tpu.pipeline_mode<synchronous>, transform_indices = @transform_13, window_bounds = array<i64: 1, 8>}, {pipeline_mode = #tpu.pipeline_mode<synchronous>, transform_indices = @transform_14, window_bounds = array<i64: 1, 1>}, {pipeline_mode = #tpu.pipeline_mode<synchronous>, transform_indices = @transform_15, window_bounds = array<i64: 1, 8>}, {pipeline_mode = #tpu.pipeline_mode<synchronous>, transform_indices = @transform_16, window_bounds = array<i64: 1, 8>}, {pipeline_mode = #tpu.pipeline_mode<synchronous>, transform_indices = @transform_17, window_bounds = array<i64: 1, 4>}, {pipeline_mode = #tpu.pipeline_mode<synchronous>, transform_indices = @transform_18, window_bounds = array<i64: 1, 4>}, {pipeline_mode = #tpu.pipeline_mode<synchronous>, transform_indices = @transform_19, window_bounds = array<i64: 8, 8>}, {pipeline_mode = #tpu.pipeline_mode<synchronous>, transform_indices = @transform_20, window_bounds = array<i64: 8, 8>}, {pipeline_mode = #tpu.pipeline_mode<synchronous>, transform_indices = @transform_21, window_bounds = array<i64: 8, 8>}, {pipeline_mode = #tpu.pipeline_mode<synchronous>, transform_indices = @transform_22, window_bounds = array<i64: 8, 8>}, {pipeline_mode = #tpu.pipeline_mode<synchronous>, transform_indices = @transform_23, window_bounds = array<i64: 8, 8>}, {pipeline_mode = #tpu.pipeline_mode<synchronous>, transform_indices = @transform_24, window_bounds = array<i64: 8, 8>}, {pipeline_mode = #tpu.pipeline_mode<synchronous>, transform_indices = @transform_25, window_bounds = array<i64: 8, 8>}, {pipeline_mode = #tpu.pipeline_mode<synchronous>, transform_indices = @transform_26, window_bounds = array<i64: 8, 8>}, {pipeline_mode = #tpu.pipeline_mode<synchronous>, transform_indices = @transform_27, window_bounds = array<i64: 8, 8>}, {pipeline_mode = #tpu.pipeline_mode<synchronous>, transform_indices = @transform_28, window_bounds = array<i64: 9, 8>}, {pipeline_mode = #tpu.pipeline_mode<synchronous>, transform_indices = @transform_29, window_bounds = array<i64: 4, 128>}]} {
    %c0 = arith.constant 0 : index
    %c0_0 = arith.constant 0 : index
    %0 = vector.load %arg1[%c0, %c0_0] : memref<4x8xf32, #tpu.memory_space<vmem>>, vector<4x8xf32>
    %c0_1 = arith.constant 0 : index
    %c0_2 = arith.constant 0 : index
    %1 = vector.load %arg2[%c0_1, %c0_2] : memref<8x8xf32, #tpu.memory_space<vmem>>, vector<8x8xf32>
    %cst = arith.constant dense<0.000000e+00> : vector<4x8xf32>
    %2 = tpu.matmul %0, %1, %cst {dimension_numbers = #tpu.dot_dimension_numbers<[1], [1], [0], [0], [0, 0, 1, 0], [], []>} : vector<4x8xf32>, vector<8x8xf32>, vector<4x8xf32> -> vector<4x8xf32>
    %c0_3 = arith.constant 0 : index
    %c0_4 = arith.constant 0 : index
    %3 = vector.load %arg3[%c0_3, %c0_4] : memref<1x8xf32, #tpu.memory_space<vmem>>, vector<1x8xf32>
    %4 = vector.broadcast %3 : vector<1x8xf32> to vector<4x8xf32>
    %5 = arith.addf %2, %4 : vector<4x8xf32>
    %c0_5 = arith.constant 0 : index
    %c0_6 = arith.constant 0 : index
    %6 = vector.load %arg4[%c0_5, %c0_6] : memref<8x8xf32, #tpu.memory_space<vmem>>, vector<8x8xf32>
    %cst_7 = arith.constant dense<0.000000e+00> : vector<4x8xf32>
    %7 = tpu.matmul %0, %6, %cst_7 {dimension_numbers = #tpu.dot_dimension_numbers<[1], [1], [0], [0], [0, 0, 1, 0], [], []>} : vector<4x8xf32>, vector<8x8xf32>, vector<4x8xf32> -> vector<4x8xf32>
    %c0_8 = arith.constant 0 : index
    %c0_9 = arith.constant 0 : index
    %8 = vector.load %arg5[%c0_8, %c0_9] : memref<1x8xf32, #tpu.memory_space<vmem>>, vector<1x8xf32>
    %9 = vector.broadcast %8 : vector<1x8xf32> to vector<4x8xf32>
    %10 = arith.addf %7, %9 : vector<4x8xf32>
    %c0_10 = arith.constant 0 : index
    %c0_11 = arith.constant 0 : index
    %11 = vector.load %arg6[%c0_10, %c0_11] : memref<8x8xf32, #tpu.memory_space<vmem>>, vector<8x8xf32>
    %cst_12 = arith.constant dense<0.000000e+00> : vector<4x8xf32>
    %12 = tpu.matmul %0, %11, %cst_12 {dimension_numbers = #tpu.dot_dimension_numbers<[1], [1], [0], [0], [0, 0, 1, 0], [], []>} : vector<4x8xf32>, vector<8x8xf32>, vector<4x8xf32> -> vector<4x8xf32>
    %c0_13 = arith.constant 0 : index
    %c0_14 = arith.constant 0 : index
    %13 = vector.load %arg7[%c0_13, %c0_14] : memref<1x8xf32, #tpu.memory_space<vmem>>, vector<1x8xf32>
    %14 = vector.broadcast %13 : vector<1x8xf32> to vector<4x8xf32>
    %15 = arith.addf %12, %14 : vector<4x8xf32>
    %cst_15 = arith.constant dense<0.000000e+00> : vector<4x4xf32>
    %16 = tpu.matmul %5, %10, %cst_15 {dimension_numbers = #tpu.dot_dimension_numbers<[1], [1], [0], [0], [0, 0, 1, 0], [], []>} : vector<4x8xf32>, vector<4x8xf32>, vector<4x4xf32> -> vector<4x4xf32>
    %cst_16 = arith.constant 8.000000e+00 : f32
    %17 = math.sqrt %cst_16 : f32
    %cst_17 = arith.constant 1.000000e+00 : f32
    %18 = arith.divf %cst_17, %17 : f32
    %19 = vector.broadcast %18 : f32 to vector<4x4xf32>
    %20 = arith.mulf %16, %19 : vector<4x4xf32>
    %cst_18 = arith.constant dense<0xFF800000> : vector<4xf32>
    %21 = vector.multi_reduction <maximumf>, %20, %cst_18 [1] : vector<4x4xf32> to vector<4xf32>
    %22 = vector.shape_cast %21 : vector<4xf32> to vector<4x1xf32>
    %23 = vector.broadcast %22 : vector<4x1xf32> to vector<4x4xf32>
    %24 = arith.subf %20, %23 : vector<4x4xf32>
    %25 = math.exp %24 : vector<4x4xf32>
    %cst_19 = arith.constant dense<0.000000e+00> : vector<4xf32>
    %26 = vector.multi_reduction <add>, %25, %cst_19 [1] : vector<4x4xf32> to vector<4xf32>
    %27 = vector.shape_cast %26 : vector<4xf32> to vector<4x1xf32>
    %28 = tpu.reciprocal %27 {approx = true} : vector<4x1xf32> -> vector<4x1xf32>
    %29 = vector.broadcast %28 : vector<4x1xf32> to vector<4x4xf32>
    %30 = arith.mulf %25, %29 : vector<4x4xf32>
    %cst_20 = arith.constant dense<0.000000e+00> : vector<4x8xf32>
    %31 = tpu.matmul %30, %15, %cst_20 {dimension_numbers = #tpu.dot_dimension_numbers<[1], [0], [0], [1], [0, 0, 1, 1], [], []>} : vector<4x4xf32>, vector<4x8xf32>, vector<4x8xf32> -> vector<4x8xf32>
    %c0_21 = arith.constant 0 : index
    %c0_22 = arith.constant 0 : index
    %32 = vector.load %arg8[%c0_21, %c0_22] : memref<8x8xf32, #tpu.memory_space<vmem>>, vector<8x8xf32>
    %cst_23 = arith.constant dense<0.000000e+00> : vector<4x8xf32>
    %33 = tpu.matmul %31, %32, %cst_23 {dimension_numbers = #tpu.dot_dimension_numbers<[1], [1], [0], [0], [0, 0, 1, 0], [], []>} : vector<4x8xf32>, vector<8x8xf32>, vector<4x8xf32> -> vector<4x8xf32>
    %c0_24 = arith.constant 0 : index
    %c0_25 = arith.constant 0 : index
    %34 = vector.load %arg9[%c0_24, %c0_25] : memref<1x8xf32, #tpu.memory_space<vmem>>, vector<1x8xf32>
    %35 = vector.broadcast %34 : vector<1x8xf32> to vector<4x8xf32>
    %36 = arith.addf %33, %35 : vector<4x8xf32>
    %37 = arith.addf %0, %36 : vector<4x8xf32>
    %c0_26 = arith.constant 0 : index
    %c0_27 = arith.constant 0 : index
    %38 = vector.load %arg10[%c0_26, %c0_27] : memref<1x8xf32, #tpu.memory_space<vmem>>, vector<1x8xf32>
    %c0_28 = arith.constant 0 : index
    %c0_29 = arith.constant 0 : index
    %39 = vector.load %arg11[%c0_28, %c0_29] : memref<1x8xf32, #tpu.memory_space<vmem>>, vector<1x8xf32>
    %cst_30 = arith.constant dense<0.000000e+00> : vector<4xf32>
    %40 = vector.multi_reduction <add>, %37, %cst_30 [1] : vector<4x8xf32> to vector<4xf32>
    %41 = vector.shape_cast %40 : vector<4xf32> to vector<4x1xf32>
    %cst_31 = arith.constant 8.000000e+00 : f32
    %42 = vector.broadcast %cst_31 : f32 to vector<4x1xf32>
    %43 = arith.divf %41, %42 : vector<4x1xf32>
    %44 = vector.broadcast %43 : vector<4x1xf32> to vector<4x8xf32>
    %45 = arith.subf %37, %44 : vector<4x8xf32>
    %46 = arith.mulf %45, %45 : vector<4x8xf32>
    %cst_32 = arith.constant dense<0.000000e+00> : vector<4xf32>
    %47 = vector.multi_reduction <add>, %46, %cst_32 [1] : vector<4x8xf32> to vector<4xf32>
    %48 = vector.shape_cast %47 : vector<4xf32> to vector<4x1xf32>
    %cst_33 = arith.constant 8.000000e+00 : f32
    %49 = vector.broadcast %cst_33 : f32 to vector<4x1xf32>
    %50 = arith.divf %48, %49 : vector<4x1xf32>
    %51 = vector.broadcast %43 : vector<4x1xf32> to vector<4x8xf32>
    %52 = arith.subf %37, %51 : vector<4x8xf32>
    %cst_34 = arith.constant 9.99999974E-6 : f32
    %53 = vector.broadcast %cst_34 : f32 to vector<4x1xf32>
    %54 = arith.addf %50, %53 : vector<4x1xf32>
    %55 = math.rsqrt %54 : vector<4x1xf32>
    %56 = vector.broadcast %55 : vector<4x1xf32> to vector<4x8xf32>
    %57 = arith.mulf %52, %56 : vector<4x8xf32>
    %58 = vector.broadcast %38 : vector<1x8xf32> to vector<4x8xf32>
    %59 = arith.mulf %57, %58 : vector<4x8xf32>
    %60 = vector.broadcast %39 : vector<1x8xf32> to vector<4x8xf32>
    %61 = arith.addf %59, %60 : vector<4x8xf32>
    %c0_35 = arith.constant 0 : index
    %c0_36 = arith.constant 0 : index
    %62 = vector.load %arg14[%c0_35, %c0_36] : memref<1x8xf32, #tpu.memory_space<vmem>>, vector<1x8xf32>
    %63 = vector.broadcast %62 : vector<1x8xf32> to vector<4x8xf32>
    %64 = arith.mulf %61, %63 : vector<4x8xf32>
    %cst_37 = arith.constant dense<0.000000e+00> : vector<4xf32>
    %65 = vector.multi_reduction <add>, %64, %cst_37 [1] : vector<4x8xf32> to vector<4xf32>
    %66 = vector.shape_cast %65 : vector<4xf32> to vector<4x1xf32>
    %c0_38 = arith.constant 0 : index
    %c0_39 = arith.constant 0 : index
    %67 = vector.load %arg15[%c0_38, %c0_39] : memref<1x1xf32, #tpu.memory_space<vmem>>, vector<1x1xf32>
    %68 = vector.extract %67[0, 0] : f32 from vector<1x1xf32>
    %69 = vector.broadcast %68 : f32 to vector<4x1xf32>
    %70 = arith.addf %66, %69 : vector<4x1xf32>
    %cst_40 = arith.constant 0.000000e+00 : f32
    %71 = vector.broadcast %cst_40 : f32 to vector<4x1xf32>
    %72 = arith.maximumf %70, %71 : vector<4x1xf32>
    %c0_41 = arith.constant 0 : index
    %c0_42 = arith.constant 0 : index
    %73 = vector.load %arg16[%c0_41, %c0_42] : memref<1x8xf32, #tpu.memory_space<vmem>>, vector<1x8xf32>
    %74 = vector.broadcast %72 : vector<4x1xf32> to vector<4x8xf32>
    %75 = vector.broadcast %73 : vector<1x8xf32> to vector<4x8xf32>
    %76 = arith.mulf %74, %75 : vector<4x8xf32>
    %c0_43 = arith.constant 0 : index
    %c0_44 = arith.constant 0 : index
    %77 = vector.load %arg17[%c0_43, %c0_44] : memref<1x8xf32, #tpu.memory_space<vmem>>, vector<1x8xf32>
    %78 = vector.broadcast %77 : vector<1x8xf32> to vector<4x8xf32>
    %79 = arith.addf %76, %78 : vector<4x8xf32>
    %80 = arith.addf %61, %79 : vector<4x8xf32>
    %c0_45 = arith.constant 0 : index
    %c0_46 = arith.constant 0 : index
    %81 = vector.load %arg12[%c0_45, %c0_46] : memref<1x8xf32, #tpu.memory_space<vmem>>, vector<1x8xf32>
    %c0_47 = arith.constant 0 : index
    %c0_48 = arith.constant 0 : index
    %82 = vector.load %arg13[%c0_47, %c0_48] : memref<1x8xf32, #tpu.memory_space<vmem>>, vector<1x8xf32>
    %cst_49 = arith.constant dense<0.000000e+00> : vector<4xf32>
    %83 = vector.multi_reduction <add>, %80, %cst_49 [1] : vector<4x8xf32> to vector<4xf32>
    %84 = vector.shape_cast %83 : vector<4xf32> to vector<4x1xf32>
    %cst_50 = arith.constant 8.000000e+00 : f32
    %85 = vector.broadcast %cst_50 : f32 to vector<4x1xf32>
    %86 = arith.divf %84, %85 : vector<4x1xf32>
    %87 = vector.broadcast %86 : vector<4x1xf32> to vector<4x8xf32>
    %88 = arith.subf %80, %87 : vector<4x8xf32>
    %89 = arith.mulf %88, %88 : vector<4x8xf32>
    %cst_51 = arith.constant dense<0.000000e+00> : vector<4xf32>
    %90 = vector.multi_reduction <add>, %89, %cst_51 [1] : vector<4x8xf32> to vector<4xf32>
    %91 = vector.shape_cast %90 : vector<4xf32> to vector<4x1xf32>
    %cst_52 = arith.constant 8.000000e+00 : f32
    %92 = vector.broadcast %cst_52 : f32 to vector<4x1xf32>
    %93 = arith.divf %91, %92 : vector<4x1xf32>
    %94 = vector.broadcast %86 : vector<4x1xf32> to vector<4x8xf32>
    %95 = arith.subf %80, %94 : vector<4x8xf32>
    %cst_53 = arith.constant 9.99999974E-6 : f32
    %96 = vector.broadcast %cst_53 : f32 to vector<4x1xf32>
    %97 = arith.addf %93, %96 : vector<4x1xf32>
    %98 = math.rsqrt %97 : vector<4x1xf32>
    %99 = vector.broadcast %98 : vector<4x1xf32> to vector<4x8xf32>
    %100 = arith.mulf %95, %99 : vector<4x8xf32>
    %101 = vector.broadcast %81 : vector<1x8xf32> to vector<4x8xf32>
    %102 = arith.mulf %100, %101 : vector<4x8xf32>
    %103 = vector.broadcast %82 : vector<1x8xf32> to vector<4x8xf32>
    %104 = arith.addf %102, %103 : vector<4x8xf32>
    %105 = vector.shape_cast %104 : vector<4x8xf32> to vector<1x4x8xf32>
    %cst_54 = arith.constant dense<0.000000e+00> : vector<1xf32>
    %106 = vector.multi_reduction <add>, %105, %cst_54 [1, 2] : vector<1x4x8xf32> to vector<1xf32>
    %107 = vector.shape_cast %106 : vector<1xf32> to vector<1x1x1xf32>
    %108 = vector.extract %107[0, 0, 0] : f32 from vector<1x1x1xf32>
    %cst_55 = arith.constant 3.200000e+01 : f32
    %109 = arith.divf %108, %cst_55 : f32
    %110 = vector.broadcast %109 : f32 to vector<4x8xf32>
    %111 = arith.subf %104, %110 : vector<4x8xf32>
    %112 = arith.mulf %111, %111 : vector<4x8xf32>
    %113 = vector.shape_cast %112 : vector<4x8xf32> to vector<1x4x8xf32>
    %cst_56 = arith.constant dense<0.000000e+00> : vector<1xf32>
    %114 = vector.multi_reduction <add>, %113, %cst_56 [1, 2] : vector<1x4x8xf32> to vector<1xf32>
    %115 = vector.shape_cast %114 : vector<1xf32> to vector<1x1x1xf32>
    %116 = vector.extract %115[0, 0, 0] : f32 from vector<1x1x1xf32>
    %cst_57 = arith.constant 3.200000e+01 : f32
    %117 = arith.divf %116, %cst_57 : f32
    %118 = vector.broadcast %109 : f32 to vector<4x8xf32>
    %119 = arith.subf %104, %118 : vector<4x8xf32>
    %cst_58 = arith.constant 9.99999974E-6 : f32
    %120 = arith.addf %117, %cst_58 : f32
    %121 = math.rsqrt %120 : f32
    %122 = vector.broadcast %121 : f32 to vector<4x8xf32>
    %123 = arith.mulf %119, %122 : vector<4x8xf32>
    %c0_59 = arith.constant 0 : index
    %c0_60 = arith.constant 0 : index
    %124 = vector.load %arg18[%c0_59, %c0_60] : memref<1x4xf32, #tpu.memory_space<vmem>>, vector<1x1xf32>
    %125 = vector.extract %124[0, 0] : f32 from vector<1x1xf32>
    %126 = vector.broadcast %125 : f32 to vector<4x8xf32>
    %127 = arith.mulf %123, %126 : vector<4x8xf32>
    %c0_61 = arith.constant 0 : index
    %c0_62 = arith.constant 0 : index
    %128 = vector.load %arg19[%c0_61, %c0_62] : memref<1x4xf32, #tpu.memory_space<vmem>>, vector<1x1xf32>
    %129 = vector.extract %128[0, 0] : f32 from vector<1x1xf32>
    %130 = vector.broadcast %129 : f32 to vector<4x8xf32>
    %131 = arith.addf %127, %130 : vector<4x8xf32>
    %cst_63 = arith.constant 0.000000e+00 : f32
    %132 = vector.broadcast %cst_63 : f32 to vector<4x8xf32>
    %133 = arith.maximumf %131, %132 : vector<4x8xf32>
    %134 = vector.shape_cast %133 : vector<4x8xf32> to vector<1x4x8xf32>
    %cst_64 = arith.constant dense<0.000000e+00> : vector<1xf32>
    %135 = vector.multi_reduction <add>, %134, %cst_64 [1, 2] : vector<1x4x8xf32> to vector<1xf32>
    %136 = vector.shape_cast %135 : vector<1xf32> to vector<1x1x1xf32>
    %137 = vector.extract %136[0, 0, 0] : f32 from vector<1x1x1xf32>
    %cst_65 = arith.constant 3.200000e+01 : f32
    %138 = arith.divf %137, %cst_65 : f32
    %139 = vector.broadcast %138 : f32 to vector<4x8xf32>
    %140 = arith.subf %133, %139 : vector<4x8xf32>
    %141 = arith.mulf %140, %140 : vector<4x8xf32>
    %142 = vector.shape_cast %141 : vector<4x8xf32> to vector<1x4x8xf32>
    %cst_66 = arith.constant dense<0.000000e+00> : vector<1xf32>
    %143 = vector.multi_reduction <add>, %142, %cst_66 [1, 2] : vector<1x4x8xf32> to vector<1xf32>
    %144 = vector.shape_cast %143 : vector<1xf32> to vector<1x1x1xf32>
    %145 = vector.extract %144[0, 0, 0] : f32 from vector<1x1x1xf32>
    %cst_67 = arith.constant 3.200000e+01 : f32
    %146 = arith.divf %145, %cst_67 : f32
    %147 = vector.broadcast %138 : f32 to vector<4x8xf32>
    %148 = arith.subf %133, %147 : vector<4x8xf32>
    %cst_68 = arith.constant 9.99999974E-6 : f32
    %149 = arith.addf %146, %cst_68 : f32
    %150 = math.rsqrt %149 : f32
    %151 = vector.broadcast %150 : f32 to vector<4x8xf32>
    %152 = arith.mulf %148, %151 : vector<4x8xf32>
    %c0_69 = arith.constant 0 : index
    %c1 = arith.constant 1 : index
    %153 = vector.load %arg18[%c0_69, %c1] : memref<1x4xf32, #tpu.memory_space<vmem>>, vector<1x1xf32>
    %154 = vector.extract %153[0, 0] : f32 from vector<1x1xf32>
    %155 = vector.broadcast %154 : f32 to vector<4x8xf32>
    %156 = arith.mulf %152, %155 : vector<4x8xf32>
    %c0_70 = arith.constant 0 : index
    %c1_71 = arith.constant 1 : index
    %157 = vector.load %arg19[%c0_70, %c1_71] : memref<1x4xf32, #tpu.memory_space<vmem>>, vector<1x1xf32>
    %158 = vector.extract %157[0, 0] : f32 from vector<1x1xf32>
    %159 = vector.broadcast %158 : f32 to vector<4x8xf32>
    %160 = arith.addf %156, %159 : vector<4x8xf32>
    %cst_72 = arith.constant 0.000000e+00 : f32
    %161 = vector.broadcast %cst_72 : f32 to vector<4x8xf32>
    %162 = arith.maximumf %160, %161 : vector<4x8xf32>
    %163 = vector.shape_cast %162 : vector<4x8xf32> to vector<1x4x8xf32>
    %cst_73 = arith.constant dense<0.000000e+00> : vector<1xf32>
    %164 = vector.multi_reduction <add>, %163, %cst_73 [1, 2] : vector<1x4x8xf32> to vector<1xf32>
    %165 = vector.shape_cast %164 : vector<1xf32> to vector<1x1x1xf32>
    %166 = vector.extract %165[0, 0, 0] : f32 from vector<1x1x1xf32>
    %cst_74 = arith.constant 3.200000e+01 : f32
    %167 = arith.divf %166, %cst_74 : f32
    %168 = vector.broadcast %167 : f32 to vector<4x8xf32>
    %169 = arith.subf %162, %168 : vector<4x8xf32>
    %170 = arith.mulf %169, %169 : vector<4x8xf32>
    %171 = vector.shape_cast %170 : vector<4x8xf32> to vector<1x4x8xf32>
    %cst_75 = arith.constant dense<0.000000e+00> : vector<1xf32>
    %172 = vector.multi_reduction <add>, %171, %cst_75 [1, 2] : vector<1x4x8xf32> to vector<1xf32>
    %173 = vector.shape_cast %172 : vector<1xf32> to vector<1x1x1xf32>
    %174 = vector.extract %173[0, 0, 0] : f32 from vector<1x1x1xf32>
    %cst_76 = arith.constant 3.200000e+01 : f32
    %175 = arith.divf %174, %cst_76 : f32
    %176 = vector.broadcast %167 : f32 to vector<4x8xf32>
    %177 = arith.subf %162, %176 : vector<4x8xf32>
    %cst_77 = arith.constant 9.99999974E-6 : f32
    %178 = arith.addf %175, %cst_77 : f32
    %179 = math.rsqrt %178 : f32
    %180 = vector.broadcast %179 : f32 to vector<4x8xf32>
    %181 = arith.mulf %177, %180 : vector<4x8xf32>
    %c0_78 = arith.constant 0 : index
    %c2 = arith.constant 2 : index
    %182 = vector.load %arg18[%c0_78, %c2] : memref<1x4xf32, #tpu.memory_space<vmem>>, vector<1x1xf32>
    %183 = vector.extract %182[0, 0] : f32 from vector<1x1xf32>
    %184 = vector.broadcast %183 : f32 to vector<4x8xf32>
    %185 = arith.mulf %181, %184 : vector<4x8xf32>
    %c0_79 = arith.constant 0 : index
    %c2_80 = arith.constant 2 : index
    %186 = vector.load %arg19[%c0_79, %c2_80] : memref<1x4xf32, #tpu.memory_space<vmem>>, vector<1x1xf32>
    %187 = vector.extract %186[0, 0] : f32 from vector<1x1xf32>
    %188 = vector.broadcast %187 : f32 to vector<4x8xf32>
    %189 = arith.addf %185, %188 : vector<4x8xf32>
    %cst_81 = arith.constant 0.000000e+00 : f32
    %190 = vector.broadcast %cst_81 : f32 to vector<4x8xf32>
    %191 = arith.maximumf %189, %190 : vector<4x8xf32>
    %192 = vector.shape_cast %191 : vector<4x8xf32> to vector<1x4x8xf32>
    %cst_82 = arith.constant dense<0.000000e+00> : vector<1xf32>
    %193 = vector.multi_reduction <add>, %192, %cst_82 [1, 2] : vector<1x4x8xf32> to vector<1xf32>
    %194 = vector.shape_cast %193 : vector<1xf32> to vector<1x1x1xf32>
    %195 = vector.extract %194[0, 0, 0] : f32 from vector<1x1x1xf32>
    %cst_83 = arith.constant 3.200000e+01 : f32
    %196 = arith.divf %195, %cst_83 : f32
    %197 = vector.broadcast %196 : f32 to vector<4x8xf32>
    %198 = arith.subf %191, %197 : vector<4x8xf32>
    %199 = arith.mulf %198, %198 : vector<4x8xf32>
    %200 = vector.shape_cast %199 : vector<4x8xf32> to vector<1x4x8xf32>
    %cst_84 = arith.constant dense<0.000000e+00> : vector<1xf32>
    %201 = vector.multi_reduction <add>, %200, %cst_84 [1, 2] : vector<1x4x8xf32> to vector<1xf32>
    %202 = vector.shape_cast %201 : vector<1xf32> to vector<1x1x1xf32>
    %203 = vector.extract %202[0, 0, 0] : f32 from vector<1x1x1xf32>
    %cst_85 = arith.constant 3.200000e+01 : f32
    %204 = arith.divf %203, %cst_85 : f32
    %205 = vector.broadcast %196 : f32 to vector<4x8xf32>
    %206 = arith.subf %191, %205 : vector<4x8xf32>
    %cst_86 = arith.constant 9.99999974E-6 : f32
    %207 = arith.addf %204, %cst_86 : f32
    %208 = math.rsqrt %207 : f32
    %209 = vector.broadcast %208 : f32 to vector<4x8xf32>
    %210 = arith.mulf %206, %209 : vector<4x8xf32>
    %c0_87 = arith.constant 0 : index
    %c3 = arith.constant 3 : index
    %211 = vector.load %arg18[%c0_87, %c3] : memref<1x4xf32, #tpu.memory_space<vmem>>, vector<1x1xf32>
    %212 = vector.extract %211[0, 0] : f32 from vector<1x1xf32>
    %213 = vector.broadcast %212 : f32 to vector<4x8xf32>
    %214 = arith.mulf %210, %213 : vector<4x8xf32>
    %c0_88 = arith.constant 0 : index
    %c3_89 = arith.constant 3 : index
    %215 = vector.load %arg19[%c0_88, %c3_89] : memref<1x4xf32, #tpu.memory_space<vmem>>, vector<1x1xf32>
    %216 = vector.extract %215[0, 0] : f32 from vector<1x1xf32>
    %217 = vector.broadcast %216 : f32 to vector<4x8xf32>
    %218 = arith.addf %214, %217 : vector<4x8xf32>
    %c0_90 = arith.constant 0 : index
    %c0_91 = arith.constant 0 : index
    %219 = vector.load %arg20[%c0_90, %c0_91] : memref<8x8xf32, #tpu.memory_space<vmem>>, vector<8x8xf32>
    %cst_92 = arith.constant dense<0.000000e+00> : vector<4x8xf32>
    %220 = tpu.matmul %218, %219, %cst_92 {dimension_numbers = #tpu.dot_dimension_numbers<[1], [1], [0], [0], [0, 0, 1, 0], [], []>} : vector<4x8xf32>, vector<8x8xf32>, vector<4x8xf32> -> vector<4x8xf32>
    %c0_93 = arith.constant 0 : index
    %c0_94 = arith.constant 0 : index
    %221 = vector.load %arg21[%c0_93, %c0_94] : memref<8x8xf32, #tpu.memory_space<vmem>>, vector<8x8xf32>
    %cst_95 = arith.constant dense<0.000000e+00> : vector<4x8xf32>
    %222 = tpu.matmul %218, %221, %cst_95 {dimension_numbers = #tpu.dot_dimension_numbers<[1], [1], [0], [0], [0, 0, 1, 0], [], []>} : vector<4x8xf32>, vector<8x8xf32>, vector<4x8xf32> -> vector<4x8xf32>
    %c0_96 = arith.constant 0 : index
    %c0_97 = arith.constant 0 : index
    %223 = vector.load %arg22[%c0_96, %c0_97] : memref<8x8xf32, #tpu.memory_space<vmem>>, vector<8x8xf32>
    %cst_98 = arith.constant dense<0.000000e+00> : vector<4x8xf32>
    %224 = tpu.matmul %218, %223, %cst_98 {dimension_numbers = #tpu.dot_dimension_numbers<[1], [1], [0], [0], [0, 0, 1, 0], [], []>} : vector<4x8xf32>, vector<8x8xf32>, vector<4x8xf32> -> vector<4x8xf32>
    %c0_99 = arith.constant 0 : index
    %c0_100 = arith.constant 0 : index
    %225 = vector.load %arg23[%c0_99, %c0_100] : memref<8x8xf32, #tpu.memory_space<vmem>>, vector<8x8xf32>
    %cst_101 = arith.constant dense<0.000000e+00> : vector<4x8xf32>
    %226 = tpu.matmul %218, %225, %cst_101 {dimension_numbers = #tpu.dot_dimension_numbers<[1], [1], [0], [0], [0, 0, 1, 0], [], []>} : vector<4x8xf32>, vector<8x8xf32>, vector<4x8xf32> -> vector<4x8xf32>
    %cst_102 = arith.constant 0.000000e+00 : f32
    %227 = vector.broadcast %cst_102 : f32 to vector<1x8xf32>
    %cst_103 = arith.constant 0.000000e+00 : f32
    %228 = vector.broadcast %cst_103 : f32 to vector<1x8xf32>
    %229 = vector.extract_strided_slice %220 {offsets = [0, 0], sizes = [1, 8], strides = [1, 1]} : vector<4x8xf32> to vector<1x8xf32>
    %c0_104 = arith.constant 0 : index
    %c0_105 = arith.constant 0 : index
    %230 = vector.load %arg24[%c0_104, %c0_105] : memref<8x8xf32, #tpu.memory_space<vmem>>, vector<8x8xf32>
    %cst_106 = arith.constant dense<0.000000e+00> : vector<1x8xf32>
    %231 = tpu.matmul %227, %230, %cst_106 {dimension_numbers = #tpu.dot_dimension_numbers<[1], [1], [0], [0], [0, 0, 1, 0], [], []>} : vector<1x8xf32>, vector<8x8xf32>, vector<1x8xf32> -> vector<1x8xf32>
    %232 = arith.addf %229, %231 : vector<1x8xf32>
    %233 = arith.negf %232 : vector<1x8xf32>
    %234 = math.exp %233 : vector<1x8xf32>
    %cst_107 = arith.constant 1.000000e+00 : f32
    %235 = vector.broadcast %cst_107 : f32 to vector<1x8xf32>
    %236 = arith.addf %235, %234 : vector<1x8xf32>
    %237 = arith.divf %235, %236 : vector<1x8xf32>
    %238 = vector.extract_strided_slice %222 {offsets = [0, 0], sizes = [1, 8], strides = [1, 1]} : vector<4x8xf32> to vector<1x8xf32>
    %c0_108 = arith.constant 0 : index
    %c0_109 = arith.constant 0 : index
    %239 = vector.load %arg25[%c0_108, %c0_109] : memref<8x8xf32, #tpu.memory_space<vmem>>, vector<8x8xf32>
    %cst_110 = arith.constant dense<0.000000e+00> : vector<1x8xf32>
    %240 = tpu.matmul %227, %239, %cst_110 {dimension_numbers = #tpu.dot_dimension_numbers<[1], [1], [0], [0], [0, 0, 1, 0], [], []>} : vector<1x8xf32>, vector<8x8xf32>, vector<1x8xf32> -> vector<1x8xf32>
    %241 = arith.addf %238, %240 : vector<1x8xf32>
    %242 = arith.negf %241 : vector<1x8xf32>
    %243 = math.exp %242 : vector<1x8xf32>
    %cst_111 = arith.constant 1.000000e+00 : f32
    %244 = vector.broadcast %cst_111 : f32 to vector<1x8xf32>
    %245 = arith.addf %244, %243 : vector<1x8xf32>
    %246 = arith.divf %244, %245 : vector<1x8xf32>
    %247 = vector.extract_strided_slice %224 {offsets = [0, 0], sizes = [1, 8], strides = [1, 1]} : vector<4x8xf32> to vector<1x8xf32>
    %c0_112 = arith.constant 0 : index
    %c0_113 = arith.constant 0 : index
    %248 = vector.load %arg26[%c0_112, %c0_113] : memref<8x8xf32, #tpu.memory_space<vmem>>, vector<8x8xf32>
    %cst_114 = arith.constant dense<0.000000e+00> : vector<1x8xf32>
    %249 = tpu.matmul %227, %248, %cst_114 {dimension_numbers = #tpu.dot_dimension_numbers<[1], [1], [0], [0], [0, 0, 1, 0], [], []>} : vector<1x8xf32>, vector<8x8xf32>, vector<1x8xf32> -> vector<1x8xf32>
    %250 = arith.addf %247, %249 : vector<1x8xf32>
    %251 = math.tanh %250 : vector<1x8xf32>
    %252 = vector.extract_strided_slice %226 {offsets = [0, 0], sizes = [1, 8], strides = [1, 1]} : vector<4x8xf32> to vector<1x8xf32>
    %c0_115 = arith.constant 0 : index
    %c0_116 = arith.constant 0 : index
    %253 = vector.load %arg27[%c0_115, %c0_116] : memref<8x8xf32, #tpu.memory_space<vmem>>, vector<8x8xf32>
    %cst_117 = arith.constant dense<0.000000e+00> : vector<1x8xf32>
    %254 = tpu.matmul %227, %253, %cst_117 {dimension_numbers = #tpu.dot_dimension_numbers<[1], [1], [0], [0], [0, 0, 1, 0], [], []>} : vector<1x8xf32>, vector<8x8xf32>, vector<1x8xf32> -> vector<1x8xf32>
    %255 = arith.addf %252, %254 : vector<1x8xf32>
    %256 = arith.negf %255 : vector<1x8xf32>
    %257 = math.exp %256 : vector<1x8xf32>
    %cst_118 = arith.constant 1.000000e+00 : f32
    %258 = vector.broadcast %cst_118 : f32 to vector<1x8xf32>
    %259 = arith.addf %258, %257 : vector<1x8xf32>
    %260 = arith.divf %258, %259 : vector<1x8xf32>
    %261 = arith.mulf %246, %228 : vector<1x8xf32>
    %262 = arith.mulf %237, %251 : vector<1x8xf32>
    %263 = arith.addf %261, %262 : vector<1x8xf32>
    %264 = math.tanh %263 : vector<1x8xf32>
    %265 = arith.mulf %260, %264 : vector<1x8xf32>
    %c0_119 = arith.constant 0 : index
    %c0_120 = arith.constant 0 : index
    %266 = vector.load %arg31[%c0_119, %c0_120] : memref<4x8xf32, #tpu.memory_space<vmem>>, vector<1x8xf32>
    tpu.vector_store %arg31[%c0_119, %c0_120], %265 {strides = array<i32>} : memref<4x8xf32, #tpu.memory_space<vmem>>, vector<1x8xf32>,
    %267 = vector.extract_strided_slice %220 {offsets = [1, 0], sizes = [1, 8], strides = [1, 1]} : vector<4x8xf32> to vector<1x8xf32>
    %c0_121 = arith.constant 0 : index
    %c0_122 = arith.constant 0 : index
    %268 = vector.load %arg24[%c0_121, %c0_122] : memref<8x8xf32, #tpu.memory_space<vmem>>, vector<8x8xf32>
    %cst_123 = arith.constant dense<0.000000e+00> : vector<1x8xf32>
    %269 = tpu.matmul %265, %268, %cst_123 {dimension_numbers = #tpu.dot_dimension_numbers<[1], [1], [0], [0], [0, 0, 1, 0], [], []>} : vector<1x8xf32>, vector<8x8xf32>, vector<1x8xf32> -> vector<1x8xf32>
    %270 = arith.addf %267, %269 : vector<1x8xf32>
    %271 = arith.negf %270 : vector<1x8xf32>
    %272 = math.exp %271 : vector<1x8xf32>
    %cst_124 = arith.constant 1.000000e+00 : f32
    %273 = vector.broadcast %cst_124 : f32 to vector<1x8xf32>
    %274 = arith.addf %273, %272 : vector<1x8xf32>
    %275 = arith.divf %273, %274 : vector<1x8xf32>
    %276 = vector.extract_strided_slice %222 {offsets = [1, 0], sizes = [1, 8], strides = [1, 1]} : vector<4x8xf32> to vector<1x8xf32>
    %c0_125 = arith.constant 0 : index
    %c0_126 = arith.constant 0 : index
    %277 = vector.load %arg25[%c0_125, %c0_126] : memref<8x8xf32, #tpu.memory_space<vmem>>, vector<8x8xf32>
    %cst_127 = arith.constant dense<0.000000e+00> : vector<1x8xf32>
    %278 = tpu.matmul %265, %277, %cst_127 {dimension_numbers = #tpu.dot_dimension_numbers<[1], [1], [0], [0], [0, 0, 1, 0], [], []>} : vector<1x8xf32>, vector<8x8xf32>, vector<1x8xf32> -> vector<1x8xf32>
    %279 = arith.addf %276, %278 : vector<1x8xf32>
    %280 = arith.negf %279 : vector<1x8xf32>
    %281 = math.exp %280 : vector<1x8xf32>
    %cst_128 = arith.constant 1.000000e+00 : f32
    %282 = vector.broadcast %cst_128 : f32 to vector<1x8xf32>
    %283 = arith.addf %282, %281 : vector<1x8xf32>
    %284 = arith.divf %282, %283 : vector<1x8xf32>
    %285 = vector.extract_strided_slice %224 {offsets = [1, 0], sizes = [1, 8], strides = [1, 1]} : vector<4x8xf32> to vector<1x8xf32>
    %c0_129 = arith.constant 0 : index
    %c0_130 = arith.constant 0 : index
    %286 = vector.load %arg26[%c0_129, %c0_130] : memref<8x8xf32, #tpu.memory_space<vmem>>, vector<8x8xf32>
    %cst_131 = arith.constant dense<0.000000e+00> : vector<1x8xf32>
    %287 = tpu.matmul %265, %286, %cst_131 {dimension_numbers = #tpu.dot_dimension_numbers<[1], [1], [0], [0], [0, 0, 1, 0], [], []>} : vector<1x8xf32>, vector<8x8xf32>, vector<1x8xf32> -> vector<1x8xf32>
    %288 = arith.addf %285, %287 : vector<1x8xf32>
    %289 = math.tanh %288 : vector<1x8xf32>
    %290 = vector.extract_strided_slice %226 {offsets = [1, 0], sizes = [1, 8], strides = [1, 1]} : vector<4x8xf32> to vector<1x8xf32>
    %c0_132 = arith.constant 0 : index
    %c0_133 = arith.constant 0 : index
    %291 = vector.load %arg27[%c0_132, %c0_133] : memref<8x8xf32, #tpu.memory_space<vmem>>, vector<8x8xf32>
    %cst_134 = arith.constant dense<0.000000e+00> : vector<1x8xf32>
    %292 = tpu.matmul %265, %291, %cst_134 {dimension_numbers = #tpu.dot_dimension_numbers<[1], [1], [0], [0], [0, 0, 1, 0], [], []>} : vector<1x8xf32>, vector<8x8xf32>, vector<1x8xf32> -> vector<1x8xf32>
    %293 = arith.addf %290, %292 : vector<1x8xf32>
    %294 = arith.negf %293 : vector<1x8xf32>
    %295 = math.exp %294 : vector<1x8xf32>
    %cst_135 = arith.constant 1.000000e+00 : f32
    %296 = vector.broadcast %cst_135 : f32 to vector<1x8xf32>
    %297 = arith.addf %296, %295 : vector<1x8xf32>
    %298 = arith.divf %296, %297 : vector<1x8xf32>
    %299 = arith.mulf %284, %263 : vector<1x8xf32>
    %300 = arith.mulf %275, %289 : vector<1x8xf32>
    %301 = arith.addf %299, %300 : vector<1x8xf32>
    %302 = math.tanh %301 : vector<1x8xf32>
    %303 = arith.mulf %298, %302 : vector<1x8xf32>
    %c1_136 = arith.constant 1 : index
    %c0_137 = arith.constant 0 : index
    %304 = vector.load %arg31[%c1_136, %c0_137] : memref<4x8xf32, #tpu.memory_space<vmem>>, vector<1x8xf32>
    tpu.vector_store %arg31[%c1_136, %c0_137], %303 {strides = array<i32>} : memref<4x8xf32, #tpu.memory_space<vmem>>, vector<1x8xf32>,
    %305 = vector.extract_strided_slice %220 {offsets = [2, 0], sizes = [1, 8], strides = [1, 1]} : vector<4x8xf32> to vector<1x8xf32>
    %c0_138 = arith.constant 0 : index
    %c0_139 = arith.constant 0 : index
    %306 = vector.load %arg24[%c0_138, %c0_139] : memref<8x8xf32, #tpu.memory_space<vmem>>, vector<8x8xf32>
    %cst_140 = arith.constant dense<0.000000e+00> : vector<1x8xf32>
    %307 = tpu.matmul %303, %306, %cst_140 {dimension_numbers = #tpu.dot_dimension_numbers<[1], [1], [0], [0], [0, 0, 1, 0], [], []>} : vector<1x8xf32>, vector<8x8xf32>, vector<1x8xf32> -> vector<1x8xf32>
    %308 = arith.addf %305, %307 : vector<1x8xf32>
    %309 = arith.negf %308 : vector<1x8xf32>
    %310 = math.exp %309 : vector<1x8xf32>
    %cst_141 = arith.constant 1.000000e+00 : f32
    %311 = vector.broadcast %cst_141 : f32 to vector<1x8xf32>
    %312 = arith.addf %311, %310 : vector<1x8xf32>
    %313 = arith.divf %311, %312 : vector<1x8xf32>
    %314 = vector.extract_strided_slice %222 {offsets = [2, 0], sizes = [1, 8], strides = [1, 1]} : vector<4x8xf32> to vector<1x8xf32>
    %c0_142 = arith.constant 0 : index
    %c0_143 = arith.constant 0 : index
    %315 = vector.load %arg25[%c0_142, %c0_143] : memref<8x8xf32, #tpu.memory_space<vmem>>, vector<8x8xf32>
    %cst_144 = arith.constant dense<0.000000e+00> : vector<1x8xf32>
    %316 = tpu.matmul %303, %315, %cst_144 {dimension_numbers = #tpu.dot_dimension_numbers<[1], [1], [0], [0], [0, 0, 1, 0], [], []>} : vector<1x8xf32>, vector<8x8xf32>, vector<1x8xf32> -> vector<1x8xf32>
    %317 = arith.addf %314, %316 : vector<1x8xf32>
    %318 = arith.negf %317 : vector<1x8xf32>
    %319 = math.exp %318 : vector<1x8xf32>
    %cst_145 = arith.constant 1.000000e+00 : f32
    %320 = vector.broadcast %cst_145 : f32 to vector<1x8xf32>
    %321 = arith.addf %320, %319 : vector<1x8xf32>
    %322 = arith.divf %320, %321 : vector<1x8xf32>
    %323 = vector.extract_strided_slice %224 {offsets = [2, 0], sizes = [1, 8], strides = [1, 1]} : vector<4x8xf32> to vector<1x8xf32>
    %c0_146 = arith.constant 0 : index
    %c0_147 = arith.constant 0 : index
    %324 = vector.load %arg26[%c0_146, %c0_147] : memref<8x8xf32, #tpu.memory_space<vmem>>, vector<8x8xf32>
    %cst_148 = arith.constant dense<0.000000e+00> : vector<1x8xf32>
    %325 = tpu.matmul %303, %324, %cst_148 {dimension_numbers = #tpu.dot_dimension_numbers<[1], [1], [0], [0], [0, 0, 1, 0], [], []>} : vector<1x8xf32>, vector<8x8xf32>, vector<1x8xf32> -> vector<1x8xf32>
    %326 = arith.addf %323, %325 : vector<1x8xf32>
    %327 = math.tanh %326 : vector<1x8xf32>
    %328 = vector.extract_strided_slice %226 {offsets = [2, 0], sizes = [1, 8], strides = [1, 1]} : vector<4x8xf32> to vector<1x8xf32>
    %c0_149 = arith.constant 0 : index
    %c0_150 = arith.constant 0 : index
    %329 = vector.load %arg27[%c0_149, %c0_150] : memref<8x8xf32, #tpu.memory_space<vmem>>, vector<8x8xf32>
    %cst_151 = arith.constant dense<0.000000e+00> : vector<1x8xf32>
    %330 = tpu.matmul %303, %329, %cst_151 {dimension_numbers = #tpu.dot_dimension_numbers<[1], [1], [0], [0], [0, 0, 1, 0], [], []>} : vector<1x8xf32>, vector<8x8xf32>, vector<1x8xf32> -> vector<1x8xf32>
    %331 = arith.addf %328, %330 : vector<1x8xf32>
    %332 = arith.negf %331 : vector<1x8xf32>
    %333 = math.exp %332 : vector<1x8xf32>
    %cst_152 = arith.constant 1.000000e+00 : f32
    %334 = vector.broadcast %cst_152 : f32 to vector<1x8xf32>
    %335 = arith.addf %334, %333 : vector<1x8xf32>
    %336 = arith.divf %334, %335 : vector<1x8xf32>
    %337 = arith.mulf %322, %301 : vector<1x8xf32>
    %338 = arith.mulf %313, %327 : vector<1x8xf32>
    %339 = arith.addf %337, %338 : vector<1x8xf32>
    %340 = math.tanh %339 : vector<1x8xf32>
    %341 = arith.mulf %336, %340 : vector<1x8xf32>
    %c2_153 = arith.constant 2 : index
    %c0_154 = arith.constant 0 : index
    %342 = vector.load %arg31[%c2_153, %c0_154] : memref<4x8xf32, #tpu.memory_space<vmem>>, vector<1x8xf32>
    tpu.vector_store %arg31[%c2_153, %c0_154], %341 {strides = array<i32>} : memref<4x8xf32, #tpu.memory_space<vmem>>, vector<1x8xf32>,
    %343 = vector.extract_strided_slice %220 {offsets = [3, 0], sizes = [1, 8], strides = [1, 1]} : vector<4x8xf32> to vector<1x8xf32>
    %c0_155 = arith.constant 0 : index
    %c0_156 = arith.constant 0 : index
    %344 = vector.load %arg24[%c0_155, %c0_156] : memref<8x8xf32, #tpu.memory_space<vmem>>, vector<8x8xf32>
    %cst_157 = arith.constant dense<0.000000e+00> : vector<1x8xf32>
    %345 = tpu.matmul %341, %344, %cst_157 {dimension_numbers = #tpu.dot_dimension_numbers<[1], [1], [0], [0], [0, 0, 1, 0], [], []>} : vector<1x8xf32>, vector<8x8xf32>, vector<1x8xf32> -> vector<1x8xf32>
    %346 = arith.addf %343, %345 : vector<1x8xf32>
    %347 = arith.negf %346 : vector<1x8xf32>
    %348 = math.exp %347 : vector<1x8xf32>
    %cst_158 = arith.constant 1.000000e+00 : f32
    %349 = vector.broadcast %cst_158 : f32 to vector<1x8xf32>
    %350 = arith.addf %349, %348 : vector<1x8xf32>
    %351 = arith.divf %349, %350 : vector<1x8xf32>
    %352 = vector.extract_strided_slice %222 {offsets = [3, 0], sizes = [1, 8], strides = [1, 1]} : vector<4x8xf32> to vector<1x8xf32>
    %c0_159 = arith.constant 0 : index
    %c0_160 = arith.constant 0 : index
    %353 = vector.load %arg25[%c0_159, %c0_160] : memref<8x8xf32, #tpu.memory_space<vmem>>, vector<8x8xf32>
    %cst_161 = arith.constant dense<0.000000e+00> : vector<1x8xf32>
    %354 = tpu.matmul %341, %353, %cst_161 {dimension_numbers = #tpu.dot_dimension_numbers<[1], [1], [0], [0], [0, 0, 1, 0], [], []>} : vector<1x8xf32>, vector<8x8xf32>, vector<1x8xf32> -> vector<1x8xf32>
    %355 = arith.addf %352, %354 : vector<1x8xf32>
    %356 = arith.negf %355 : vector<1x8xf32>
    %357 = math.exp %356 : vector<1x8xf32>
    %cst_162 = arith.constant 1.000000e+00 : f32
    %358 = vector.broadcast %cst_162 : f32 to vector<1x8xf32>
    %359 = arith.addf %358, %357 : vector<1x8xf32>
    %360 = arith.divf %358, %359 : vector<1x8xf32>
    %361 = vector.extract_strided_slice %224 {offsets = [3, 0], sizes = [1, 8], strides = [1, 1]} : vector<4x8xf32> to vector<1x8xf32>
    %c0_163 = arith.constant 0 : index
    %c0_164 = arith.constant 0 : index
    %362 = vector.load %arg26[%c0_163, %c0_164] : memref<8x8xf32, #tpu.memory_space<vmem>>, vector<8x8xf32>
    %cst_165 = arith.constant dense<0.000000e+00> : vector<1x8xf32>
    %363 = tpu.matmul %341, %362, %cst_165 {dimension_numbers = #tpu.dot_dimension_numbers<[1], [1], [0], [0], [0, 0, 1, 0], [], []>} : vector<1x8xf32>, vector<8x8xf32>, vector<1x8xf32> -> vector<1x8xf32>
    %364 = arith.addf %361, %363 : vector<1x8xf32>
    %365 = math.tanh %364 : vector<1x8xf32>
    %366 = vector.extract_strided_slice %226 {offsets = [3, 0], sizes = [1, 8], strides = [1, 1]} : vector<4x8xf32> to vector<1x8xf32>
    %c0_166 = arith.constant 0 : index
    %c0_167 = arith.constant 0 : index
    %367 = vector.load %arg27[%c0_166, %c0_167] : memref<8x8xf32, #tpu.memory_space<vmem>>, vector<8x8xf32>
    %cst_168 = arith.constant dense<0.000000e+00> : vector<1x8xf32>
    %368 = tpu.matmul %341, %367, %cst_168 {dimension_numbers = #tpu.dot_dimension_numbers<[1], [1], [0], [0], [0, 0, 1, 0], [], []>} : vector<1x8xf32>, vector<8x8xf32>, vector<1x8xf32> -> vector<1x8xf32>
    %369 = arith.addf %366, %368 : vector<1x8xf32>
    %370 = arith.negf %369 : vector<1x8xf32>
    %371 = math.exp %370 : vector<1x8xf32>
    %cst_169 = arith.constant 1.000000e+00 : f32
    %372 = vector.broadcast %cst_169 : f32 to vector<1x8xf32>
    %373 = arith.addf %372, %371 : vector<1x8xf32>
    %374 = arith.divf %372, %373 : vector<1x8xf32>
    %375 = arith.mulf %360, %339 : vector<1x8xf32>
    %376 = arith.mulf %351, %365 : vector<1x8xf32>
    %377 = arith.addf %375, %376 : vector<1x8xf32>
    %378 = math.tanh %377 : vector<1x8xf32>
    %379 = arith.mulf %374, %378 : vector<1x8xf32>
    %c3_170 = arith.constant 3 : index
    %c0_171 = arith.constant 0 : index
    %380 = vector.load %arg31[%c3_170, %c0_171] : memref<4x8xf32, #tpu.memory_space<vmem>>, vector<1x8xf32>
    tpu.vector_store %arg31[%c3_170, %c0_171], %379 {strides = array<i32>} : memref<4x8xf32, #tpu.memory_space<vmem>>, vector<1x8xf32>,
    %c0_172 = arith.constant 0 : index
    %c0_173 = arith.constant 0 : index
    %381 = vector.load %arg31[%c0_172, %c0_173] : memref<4x8xf32, #tpu.memory_space<vmem>>, vector<4x8xf32>
    %382 = vector.shape_cast %381 : vector<4x8xf32> to vector<1x4x8xf32>
    %cst_174 = arith.constant dense<0.000000e+00> : vector<1xf32>
    %383 = vector.multi_reduction <add>, %382, %cst_174 [1, 2] : vector<1x4x8xf32> to vector<1xf32>
    %384 = vector.shape_cast %383 : vector<1xf32> to vector<1x1x1xf32>
    %385 = vector.extract %384[0, 0, 0] : f32 from vector<1x1x1xf32>
    %cst_175 = arith.constant 3.200000e+01 : f32
    %386 = arith.divf %385, %cst_175 : f32
    %387 = vector.broadcast %386 : f32 to vector<4x8xf32>
    %388 = arith.subf %381, %387 : vector<4x8xf32>
    %389 = arith.mulf %388, %388 : vector<4x8xf32>
    %390 = vector.shape_cast %389 : vector<4x8xf32> to vector<1x4x8xf32>
    %cst_176 = arith.constant dense<0.000000e+00> : vector<1xf32>
    %391 = vector.multi_reduction <add>, %390, %cst_176 [1, 2] : vector<1x4x8xf32> to vector<1xf32>
    %392 = vector.shape_cast %391 : vector<1xf32> to vector<1x1x1xf32>
    %393 = vector.extract %392[0, 0, 0] : f32 from vector<1x1x1xf32>
    %cst_177 = arith.constant 3.200000e+01 : f32
    %394 = arith.divf %393, %cst_177 : f32
    %395 = vector.broadcast %386 : f32 to vector<4x8xf32>
    %396 = arith.subf %381, %395 : vector<4x8xf32>
    %cst_178 = arith.constant 9.99999974E-6 : f32
    %397 = arith.addf %394, %cst_178 : f32
    %398 = math.rsqrt %397 : f32
    %399 = vector.broadcast %398 : f32 to vector<4x8xf32>
    %400 = arith.mulf %396, %399 : vector<4x8xf32>
    %c0_179 = arith.constant 0 : index
    %c0_180 = arith.constant 0 : index
    %401 = vector.load %arg18[%c0_179, %c0_180] : memref<1x4xf32, #tpu.memory_space<vmem>>, vector<1x1xf32>
    %402 = vector.extract %401[0, 0] : f32 from vector<1x1xf32>
    %403 = vector.broadcast %402 : f32 to vector<4x8xf32>
    %404 = arith.mulf %400, %403 : vector<4x8xf32>
    %c0_181 = arith.constant 0 : index
    %c0_182 = arith.constant 0 : index
    %405 = vector.load %arg19[%c0_181, %c0_182] : memref<1x4xf32, #tpu.memory_space<vmem>>, vector<1x1xf32>
    %406 = vector.extract %405[0, 0] : f32 from vector<1x1xf32>
    %407 = vector.broadcast %406 : f32 to vector<4x8xf32>
    %408 = arith.addf %404, %407 : vector<4x8xf32>
    %cst_183 = arith.constant 0.000000e+00 : f32
    %409 = vector.broadcast %cst_183 : f32 to vector<4x8xf32>
    %410 = arith.maximumf %408, %409 : vector<4x8xf32>
    %411 = vector.shape_cast %410 : vector<4x8xf32> to vector<1x4x8xf32>
    %cst_184 = arith.constant dense<0.000000e+00> : vector<1xf32>
    %412 = vector.multi_reduction <add>, %411, %cst_184 [1, 2] : vector<1x4x8xf32> to vector<1xf32>
    %413 = vector.shape_cast %412 : vector<1xf32> to vector<1x1x1xf32>
    %414 = vector.extract %413[0, 0, 0] : f32 from vector<1x1x1xf32>
    %cst_185 = arith.constant 3.200000e+01 : f32
    %415 = arith.divf %414, %cst_185 : f32
    %416 = vector.broadcast %415 : f32 to vector<4x8xf32>
    %417 = arith.subf %410, %416 : vector<4x8xf32>
    %418 = arith.mulf %417, %417 : vector<4x8xf32>
    %419 = vector.shape_cast %418 : vector<4x8xf32> to vector<1x4x8xf32>
    %cst_186 = arith.constant dense<0.000000e+00> : vector<1xf32>
    %420 = vector.multi_reduction <add>, %419, %cst_186 [1, 2] : vector<1x4x8xf32> to vector<1xf32>
    %421 = vector.shape_cast %420 : vector<1xf32> to vector<1x1x1xf32>
    %422 = vector.extract %421[0, 0, 0] : f32 from vector<1x1x1xf32>
    %cst_187 = arith.constant 3.200000e+01 : f32
    %423 = arith.divf %422, %cst_187 : f32
    %424 = vector.broadcast %415 : f32 to vector<4x8xf32>
    %425 = arith.subf %410, %424 : vector<4x8xf32>
    %cst_188 = arith.constant 9.99999974E-6 : f32
    %426 = arith.addf %423, %cst_188 : f32
    %427 = math.rsqrt %426 : f32
    %428 = vector.broadcast %427 : f32 to vector<4x8xf32>
    %429 = arith.mulf %425, %428 : vector<4x8xf32>
    %c0_189 = arith.constant 0 : index
    %c1_190 = arith.constant 1 : index
    %430 = vector.load %arg18[%c0_189, %c1_190] : memref<1x4xf32, #tpu.memory_space<vmem>>, vector<1x1xf32>
    %431 = vector.extract %430[0, 0] : f32 from vector<1x1xf32>
    %432 = vector.broadcast %431 : f32 to vector<4x8xf32>
    %433 = arith.mulf %429, %432 : vector<4x8xf32>
    %c0_191 = arith.constant 0 : index
    %c1_192 = arith.constant 1 : index
    %434 = vector.load %arg19[%c0_191, %c1_192] : memref<1x4xf32, #tpu.memory_space<vmem>>, vector<1x1xf32>
    %435 = vector.extract %434[0, 0] : f32 from vector<1x1xf32>
    %436 = vector.broadcast %435 : f32 to vector<4x8xf32>
    %437 = arith.addf %433, %436 : vector<4x8xf32>
    %cst_193 = arith.constant 0.000000e+00 : f32
    %438 = vector.broadcast %cst_193 : f32 to vector<4x8xf32>
    %439 = arith.maximumf %437, %438 : vector<4x8xf32>
    %440 = vector.shape_cast %439 : vector<4x8xf32> to vector<1x4x8xf32>
    %cst_194 = arith.constant dense<0.000000e+00> : vector<1xf32>
    %441 = vector.multi_reduction <add>, %440, %cst_194 [1, 2] : vector<1x4x8xf32> to vector<1xf32>
    %442 = vector.shape_cast %441 : vector<1xf32> to vector<1x1x1xf32>
    %443 = vector.extract %442[0, 0, 0] : f32 from vector<1x1x1xf32>
    %cst_195 = arith.constant 3.200000e+01 : f32
    %444 = arith.divf %443, %cst_195 : f32
    %445 = vector.broadcast %444 : f32 to vector<4x8xf32>
    %446 = arith.subf %439, %445 : vector<4x8xf32>
    %447 = arith.mulf %446, %446 : vector<4x8xf32>
    %448 = vector.shape_cast %447 : vector<4x8xf32> to vector<1x4x8xf32>
    %cst_196 = arith.constant dense<0.000000e+00> : vector<1xf32>
    %449 = vector.multi_reduction <add>, %448, %cst_196 [1, 2] : vector<1x4x8xf32> to vector<1xf32>
    %450 = vector.shape_cast %449 : vector<1xf32> to vector<1x1x1xf32>
    %451 = vector.extract %450[0, 0, 0] : f32 from vector<1x1x1xf32>
    %cst_197 = arith.constant 3.200000e+01 : f32
    %452 = arith.divf %451, %cst_197 : f32
    %453 = vector.broadcast %444 : f32 to vector<4x8xf32>
    %454 = arith.subf %439, %453 : vector<4x8xf32>
    %cst_198 = arith.constant 9.99999974E-6 : f32
    %455 = arith.addf %452, %cst_198 : f32
    %456 = math.rsqrt %455 : f32
    %457 = vector.broadcast %456 : f32 to vector<4x8xf32>
    %458 = arith.mulf %454, %457 : vector<4x8xf32>
    %c0_199 = arith.constant 0 : index
    %c2_200 = arith.constant 2 : index
    %459 = vector.load %arg18[%c0_199, %c2_200] : memref<1x4xf32, #tpu.memory_space<vmem>>, vector<1x1xf32>
    %460 = vector.extract %459[0, 0] : f32 from vector<1x1xf32>
    %461 = vector.broadcast %460 : f32 to vector<4x8xf32>
    %462 = arith.mulf %458, %461 : vector<4x8xf32>
    %c0_201 = arith.constant 0 : index
    %c2_202 = arith.constant 2 : index
    %463 = vector.load %arg19[%c0_201, %c2_202] : memref<1x4xf32, #tpu.memory_space<vmem>>, vector<1x1xf32>
    %464 = vector.extract %463[0, 0] : f32 from vector<1x1xf32>
    %465 = vector.broadcast %464 : f32 to vector<4x8xf32>
    %466 = arith.addf %462, %465 : vector<4x8xf32>
    %cst_203 = arith.constant 0.000000e+00 : f32
    %467 = vector.broadcast %cst_203 : f32 to vector<4x8xf32>
    %468 = arith.maximumf %466, %467 : vector<4x8xf32>
    %469 = vector.shape_cast %468 : vector<4x8xf32> to vector<1x4x8xf32>
    %cst_204 = arith.constant dense<0.000000e+00> : vector<1xf32>
    %470 = vector.multi_reduction <add>, %469, %cst_204 [1, 2] : vector<1x4x8xf32> to vector<1xf32>
    %471 = vector.shape_cast %470 : vector<1xf32> to vector<1x1x1xf32>
    %472 = vector.extract %471[0, 0, 0] : f32 from vector<1x1x1xf32>
    %cst_205 = arith.constant 3.200000e+01 : f32
    %473 = arith.divf %472, %cst_205 : f32
    %474 = vector.broadcast %473 : f32 to vector<4x8xf32>
    %475 = arith.subf %468, %474 : vector<4x8xf32>
    %476 = arith.mulf %475, %475 : vector<4x8xf32>
    %477 = vector.shape_cast %476 : vector<4x8xf32> to vector<1x4x8xf32>
    %cst_206 = arith.constant dense<0.000000e+00> : vector<1xf32>
    %478 = vector.multi_reduction <add>, %477, %cst_206 [1, 2] : vector<1x4x8xf32> to vector<1xf32>
    %479 = vector.shape_cast %478 : vector<1xf32> to vector<1x1x1xf32>
    %480 = vector.extract %479[0, 0, 0] : f32 from vector<1x1x1xf32>
    %cst_207 = arith.constant 3.200000e+01 : f32
    %481 = arith.divf %480, %cst_207 : f32
    %482 = vector.broadcast %473 : f32 to vector<4x8xf32>
    %483 = arith.subf %468, %482 : vector<4x8xf32>
    %cst_208 = arith.constant 9.99999974E-6 : f32
    %484 = arith.addf %481, %cst_208 : f32
    %485 = math.rsqrt %484 : f32
    %486 = vector.broadcast %485 : f32 to vector<4x8xf32>
    %487 = arith.mulf %483, %486 : vector<4x8xf32>
    %c0_209 = arith.constant 0 : index
    %c3_210 = arith.constant 3 : index
    %488 = vector.load %arg18[%c0_209, %c3_210] : memref<1x4xf32, #tpu.memory_space<vmem>>, vector<1x1xf32>
    %489 = vector.extract %488[0, 0] : f32 from vector<1x1xf32>
    %490 = vector.broadcast %489 : f32 to vector<4x8xf32>
    %491 = arith.mulf %487, %490 : vector<4x8xf32>
    %c0_211 = arith.constant 0 : index
    %c3_212 = arith.constant 3 : index
    %492 = vector.load %arg19[%c0_211, %c3_212] : memref<1x4xf32, #tpu.memory_space<vmem>>, vector<1x1xf32>
    %493 = vector.extract %492[0, 0] : f32 from vector<1x1xf32>
    %494 = vector.broadcast %493 : f32 to vector<4x8xf32>
    %495 = arith.addf %491, %494 : vector<4x8xf32>
    %c0_213 = arith.constant 0 : index
    %c0_214 = arith.constant 0 : index
    %496 = vector.load %arg20[%c0_213, %c0_214] : memref<8x8xf32, #tpu.memory_space<vmem>>, vector<8x8xf32>
    %cst_215 = arith.constant dense<0.000000e+00> : vector<4x8xf32>
    %497 = tpu.matmul %495, %496, %cst_215 {dimension_numbers = #tpu.dot_dimension_numbers<[1], [1], [0], [0], [0, 0, 1, 0], [], []>} : vector<4x8xf32>, vector<8x8xf32>, vector<4x8xf32> -> vector<4x8xf32>
    %c0_216 = arith.constant 0 : index
    %c0_217 = arith.constant 0 : index
    %498 = vector.load %arg21[%c0_216, %c0_217] : memref<8x8xf32, #tpu.memory_space<vmem>>, vector<8x8xf32>
    %cst_218 = arith.constant dense<0.000000e+00> : vector<4x8xf32>
    %499 = tpu.matmul %495, %498, %cst_218 {dimension_numbers = #tpu.dot_dimension_numbers<[1], [1], [0], [0], [0, 0, 1, 0], [], []>} : vector<4x8xf32>, vector<8x8xf32>, vector<4x8xf32> -> vector<4x8xf32>
    %c0_219 = arith.constant 0 : index
    %c0_220 = arith.constant 0 : index
    %500 = vector.load %arg22[%c0_219, %c0_220] : memref<8x8xf32, #tpu.memory_space<vmem>>, vector<8x8xf32>
    %cst_221 = arith.constant dense<0.000000e+00> : vector<4x8xf32>
    %501 = tpu.matmul %495, %500, %cst_221 {dimension_numbers = #tpu.dot_dimension_numbers<[1], [1], [0], [0], [0, 0, 1, 0], [], []>} : vector<4x8xf32>, vector<8x8xf32>, vector<4x8xf32> -> vector<4x8xf32>
    %c0_222 = arith.constant 0 : index
    %c0_223 = arith.constant 0 : index
    %502 = vector.load %arg23[%c0_222, %c0_223] : memref<8x8xf32, #tpu.memory_space<vmem>>, vector<8x8xf32>
    %cst_224 = arith.constant dense<0.000000e+00> : vector<4x8xf32>
    %503 = tpu.matmul %495, %502, %cst_224 {dimension_numbers = #tpu.dot_dimension_numbers<[1], [1], [0], [0], [0, 0, 1, 0], [], []>} : vector<4x8xf32>, vector<8x8xf32>, vector<4x8xf32> -> vector<4x8xf32>
    %cst_225 = arith.constant 0.000000e+00 : f32
    %504 = vector.broadcast %cst_225 : f32 to vector<1x8xf32>
    %cst_226 = arith.constant 0.000000e+00 : f32
    %505 = vector.broadcast %cst_226 : f32 to vector<1x8xf32>
    %506 = vector.extract_strided_slice %497 {offsets = [0, 0], sizes = [1, 8], strides = [1, 1]} : vector<4x8xf32> to vector<1x8xf32>
    %c0_227 = arith.constant 0 : index
    %c0_228 = arith.constant 0 : index
    %507 = vector.load %arg24[%c0_227, %c0_228] : memref<8x8xf32, #tpu.memory_space<vmem>>, vector<8x8xf32>
    %cst_229 = arith.constant dense<0.000000e+00> : vector<1x8xf32>
    %508 = tpu.matmul %504, %507, %cst_229 {dimension_numbers = #tpu.dot_dimension_numbers<[1], [1], [0], [0], [0, 0, 1, 0], [], []>} : vector<1x8xf32>, vector<8x8xf32>, vector<1x8xf32> -> vector<1x8xf32>
    %509 = arith.addf %506, %508 : vector<1x8xf32>
    %510 = arith.negf %509 : vector<1x8xf32>
    %511 = math.exp %510 : vector<1x8xf32>
    %cst_230 = arith.constant 1.000000e+00 : f32
    %512 = vector.broadcast %cst_230 : f32 to vector<1x8xf32>
    %513 = arith.addf %512, %511 : vector<1x8xf32>
    %514 = arith.divf %512, %513 : vector<1x8xf32>
    %515 = vector.extract_strided_slice %499 {offsets = [0, 0], sizes = [1, 8], strides = [1, 1]} : vector<4x8xf32> to vector<1x8xf32>
    %c0_231 = arith.constant 0 : index
    %c0_232 = arith.constant 0 : index
    %516 = vector.load %arg25[%c0_231, %c0_232] : memref<8x8xf32, #tpu.memory_space<vmem>>, vector<8x8xf32>
    %cst_233 = arith.constant dense<0.000000e+00> : vector<1x8xf32>
    %517 = tpu.matmul %504, %516, %cst_233 {dimension_numbers = #tpu.dot_dimension_numbers<[1], [1], [0], [0], [0, 0, 1, 0], [], []>} : vector<1x8xf32>, vector<8x8xf32>, vector<1x8xf32> -> vector<1x8xf32>
    %518 = arith.addf %515, %517 : vector<1x8xf32>
    %519 = arith.negf %518 : vector<1x8xf32>
    %520 = math.exp %519 : vector<1x8xf32>
    %cst_234 = arith.constant 1.000000e+00 : f32
    %521 = vector.broadcast %cst_234 : f32 to vector<1x8xf32>
    %522 = arith.addf %521, %520 : vector<1x8xf32>
    %523 = arith.divf %521, %522 : vector<1x8xf32>
    %524 = vector.extract_strided_slice %501 {offsets = [0, 0], sizes = [1, 8], strides = [1, 1]} : vector<4x8xf32> to vector<1x8xf32>
    %c0_235 = arith.constant 0 : index
    %c0_236 = arith.constant 0 : index
    %525 = vector.load %arg26[%c0_235, %c0_236] : memref<8x8xf32, #tpu.memory_space<vmem>>, vector<8x8xf32>
    %cst_237 = arith.constant dense<0.000000e+00> : vector<1x8xf32>
    %526 = tpu.matmul %504, %525, %cst_237 {dimension_numbers = #tpu.dot_dimension_numbers<[1], [1], [0], [0], [0, 0, 1, 0], [], []>} : vector<1x8xf32>, vector<8x8xf32>, vector<1x8xf32> -> vector<1x8xf32>
    %527 = arith.addf %524, %526 : vector<1x8xf32>
    %528 = math.tanh %527 : vector<1x8xf32>
    %529 = vector.extract_strided_slice %503 {offsets = [0, 0], sizes = [1, 8], strides = [1, 1]} : vector<4x8xf32> to vector<1x8xf32>
    %c0_238 = arith.constant 0 : index
    %c0_239 = arith.constant 0 : index
    %530 = vector.load %arg27[%c0_238, %c0_239] : memref<8x8xf32, #tpu.memory_space<vmem>>, vector<8x8xf32>
    %cst_240 = arith.constant dense<0.000000e+00> : vector<1x8xf32>
    %531 = tpu.matmul %504, %530, %cst_240 {dimension_numbers = #tpu.dot_dimension_numbers<[1], [1], [0], [0], [0, 0, 1, 0], [], []>} : vector<1x8xf32>, vector<8x8xf32>, vector<1x8xf32> -> vector<1x8xf32>
    %532 = arith.addf %529, %531 : vector<1x8xf32>
    %533 = arith.negf %532 : vector<1x8xf32>
    %534 = math.exp %533 : vector<1x8xf32>
    %cst_241 = arith.constant 1.000000e+00 : f32
    %535 = vector.broadcast %cst_241 : f32 to vector<1x8xf32>
    %536 = arith.addf %535, %534 : vector<1x8xf32>
    %537 = arith.divf %535, %536 : vector<1x8xf32>
    %538 = arith.mulf %523, %505 : vector<1x8xf32>
    %539 = arith.mulf %514, %528 : vector<1x8xf32>
    %540 = arith.addf %538, %539 : vector<1x8xf32>
    %541 = math.tanh %540 : vector<1x8xf32>
    %542 = arith.mulf %537, %541 : vector<1x8xf32>
    %c0_242 = arith.constant 0 : index
    %c0_243 = arith.constant 0 : index
    %543 = vector.load %arg31[%c0_242, %c0_243] : memref<4x8xf32, #tpu.memory_space<vmem>>, vector<1x8xf32>
    tpu.vector_store %arg31[%c0_242, %c0_243], %542 {strides = array<i32>} : memref<4x8xf32, #tpu.memory_space<vmem>>, vector<1x8xf32>,
    %544 = vector.extract_strided_slice %497 {offsets = [1, 0], sizes = [1, 8], strides = [1, 1]} : vector<4x8xf32> to vector<1x8xf32>
    %c0_244 = arith.constant 0 : index
    %c0_245 = arith.constant 0 : index
    %545 = vector.load %arg24[%c0_244, %c0_245] : memref<8x8xf32, #tpu.memory_space<vmem>>, vector<8x8xf32>
    %cst_246 = arith.constant dense<0.000000e+00> : vector<1x8xf32>
    %546 = tpu.matmul %542, %545, %cst_246 {dimension_numbers = #tpu.dot_dimension_numbers<[1], [1], [0], [0], [0, 0, 1, 0], [], []>} : vector<1x8xf32>, vector<8x8xf32>, vector<1x8xf32> -> vector<1x8xf32>
    %547 = arith.addf %544, %546 : vector<1x8xf32>
    %548 = arith.negf %547 : vector<1x8xf32>
    %549 = math.exp %548 : vector<1x8xf32>
    %cst_247 = arith.constant 1.000000e+00 : f32
    %550 = vector.broadcast %cst_247 : f32 to vector<1x8xf32>
    %551 = arith.addf %550, %549 : vector<1x8xf32>
    %552 = arith.divf %550, %551 : vector<1x8xf32>
    %553 = vector.extract_strided_slice %499 {offsets = [1, 0], sizes = [1, 8], strides = [1, 1]} : vector<4x8xf32> to vector<1x8xf32>
    %c0_248 = arith.constant 0 : index
    %c0_249 = arith.constant 0 : index
    %554 = vector.load %arg25[%c0_248, %c0_249] : memref<8x8xf32, #tpu.memory_space<vmem>>, vector<8x8xf32>
    %cst_250 = arith.constant dense<0.000000e+00> : vector<1x8xf32>
    %555 = tpu.matmul %542, %554, %cst_250 {dimension_numbers = #tpu.dot_dimension_numbers<[1], [1], [0], [0], [0, 0, 1, 0], [], []>} : vector<1x8xf32>, vector<8x8xf32>, vector<1x8xf32> -> vector<1x8xf32>
    %556 = arith.addf %553, %555 : vector<1x8xf32>
    %557 = arith.negf %556 : vector<1x8xf32>
    %558 = math.exp %557 : vector<1x8xf32>
    %cst_251 = arith.constant 1.000000e+00 : f32
    %559 = vector.broadcast %cst_251 : f32 to vector<1x8xf32>
    %560 = arith.addf %559, %558 : vector<1x8xf32>
    %561 = arith.divf %559, %560 : vector<1x8xf32>
    %562 = vector.extract_strided_slice %501 {offsets = [1, 0], sizes = [1, 8], strides = [1, 1]} : vector<4x8xf32> to vector<1x8xf32>
    %c0_252 = arith.constant 0 : index
    %c0_253 = arith.constant 0 : index
    %563 = vector.load %arg26[%c0_252, %c0_253] : memref<8x8xf32, #tpu.memory_space<vmem>>, vector<8x8xf32>
    %cst_254 = arith.constant dense<0.000000e+00> : vector<1x8xf32>
    %564 = tpu.matmul %542, %563, %cst_254 {dimension_numbers = #tpu.dot_dimension_numbers<[1], [1], [0], [0], [0, 0, 1, 0], [], []>} : vector<1x8xf32>, vector<8x8xf32>, vector<1x8xf32> -> vector<1x8xf32>
    %565 = arith.addf %562, %564 : vector<1x8xf32>
    %566 = math.tanh %565 : vector<1x8xf32>
    %567 = vector.extract_strided_slice %503 {offsets = [1, 0], sizes = [1, 8], strides = [1, 1]} : vector<4x8xf32> to vector<1x8xf32>
    %c0_255 = arith.constant 0 : index
    %c0_256 = arith.constant 0 : index
    %568 = vector.load %arg27[%c0_255, %c0_256] : memref<8x8xf32, #tpu.memory_space<vmem>>, vector<8x8xf32>
    %cst_257 = arith.constant dense<0.000000e+00> : vector<1x8xf32>
    %569 = tpu.matmul %542, %568, %cst_257 {dimension_numbers = #tpu.dot_dimension_numbers<[1], [1], [0], [0], [0, 0, 1, 0], [], []>} : vector<1x8xf32>, vector<8x8xf32>, vector<1x8xf32> -> vector<1x8xf32>
    %570 = arith.addf %567, %569 : vector<1x8xf32>
    %571 = arith.negf %570 : vector<1x8xf32>
    %572 = math.exp %571 : vector<1x8xf32>
    %cst_258 = arith.constant 1.000000e+00 : f32
    %573 = vector.broadcast %cst_258 : f32 to vector<1x8xf32>
    %574 = arith.addf %573, %572 : vector<1x8xf32>
    %575 = arith.divf %573, %574 : vector<1x8xf32>
    %576 = arith.mulf %561, %540 : vector<1x8xf32>
    %577 = arith.mulf %552, %566 : vector<1x8xf32>
    %578 = arith.addf %576, %577 : vector<1x8xf32>
    %579 = math.tanh %578 : vector<1x8xf32>
    %580 = arith.mulf %575, %579 : vector<1x8xf32>
    %c1_259 = arith.constant 1 : index
    %c0_260 = arith.constant 0 : index
    %581 = vector.load %arg31[%c1_259, %c0_260] : memref<4x8xf32, #tpu.memory_space<vmem>>, vector<1x8xf32>
    tpu.vector_store %arg31[%c1_259, %c0_260], %580 {strides = array<i32>} : memref<4x8xf32, #tpu.memory_space<vmem>>, vector<1x8xf32>,
    %582 = vector.extract_strided_slice %497 {offsets = [2, 0], sizes = [1, 8], strides = [1, 1]} : vector<4x8xf32> to vector<1x8xf32>
    %c0_261 = arith.constant 0 : index
    %c0_262 = arith.constant 0 : index
    %583 = vector.load %arg24[%c0_261, %c0_262] : memref<8x8xf32, #tpu.memory_space<vmem>>, vector<8x8xf32>
    %cst_263 = arith.constant dense<0.000000e+00> : vector<1x8xf32>
    %584 = tpu.matmul %580, %583, %cst_263 {dimension_numbers = #tpu.dot_dimension_numbers<[1], [1], [0], [0], [0, 0, 1, 0], [], []>} : vector<1x8xf32>, vector<8x8xf32>, vector<1x8xf32> -> vector<1x8xf32>
    %585 = arith.addf %582, %584 : vector<1x8xf32>
    %586 = arith.negf %585 : vector<1x8xf32>
    %587 = math.exp %586 : vector<1x8xf32>
    %cst_264 = arith.constant 1.000000e+00 : f32
    %588 = vector.broadcast %cst_264 : f32 to vector<1x8xf32>
    %589 = arith.addf %588, %587 : vector<1x8xf32>
    %590 = arith.divf %588, %589 : vector<1x8xf32>
    %591 = vector.extract_strided_slice %499 {offsets = [2, 0], sizes = [1, 8], strides = [1, 1]} : vector<4x8xf32> to vector<1x8xf32>
    %c0_265 = arith.constant 0 : index
    %c0_266 = arith.constant 0 : index
    %592 = vector.load %arg25[%c0_265, %c0_266] : memref<8x8xf32, #tpu.memory_space<vmem>>, vector<8x8xf32>
    %cst_267 = arith.constant dense<0.000000e+00> : vector<1x8xf32>
    %593 = tpu.matmul %580, %592, %cst_267 {dimension_numbers = #tpu.dot_dimension_numbers<[1], [1], [0], [0], [0, 0, 1, 0], [], []>} : vector<1x8xf32>, vector<8x8xf32>, vector<1x8xf32> -> vector<1x8xf32>
    %594 = arith.addf %591, %593 : vector<1x8xf32>
    %595 = arith.negf %594 : vector<1x8xf32>
    %596 = math.exp %595 : vector<1x8xf32>
    %cst_268 = arith.constant 1.000000e+00 : f32
    %597 = vector.broadcast %cst_268 : f32 to vector<1x8xf32>
    %598 = arith.addf %597, %596 : vector<1x8xf32>
    %599 = arith.divf %597, %598 : vector<1x8xf32>
    %600 = vector.extract_strided_slice %501 {offsets = [2, 0], sizes = [1, 8], strides = [1, 1]} : vector<4x8xf32> to vector<1x8xf32>
    %c0_269 = arith.constant 0 : index
    %c0_270 = arith.constant 0 : index
    %601 = vector.load %arg26[%c0_269, %c0_270] : memref<8x8xf32, #tpu.memory_space<vmem>>, vector<8x8xf32>
    %cst_271 = arith.constant dense<0.000000e+00> : vector<1x8xf32>
    %602 = tpu.matmul %580, %601, %cst_271 {dimension_numbers = #tpu.dot_dimension_numbers<[1], [1], [0], [0], [0, 0, 1, 0], [], []>} : vector<1x8xf32>, vector<8x8xf32>, vector<1x8xf32> -> vector<1x8xf32>
    %603 = arith.addf %600, %602 : vector<1x8xf32>
    %604 = math.tanh %603 : vector<1x8xf32>
    %605 = vector.extract_strided_slice %503 {offsets = [2, 0], sizes = [1, 8], strides = [1, 1]} : vector<4x8xf32> to vector<1x8xf32>
    %c0_272 = arith.constant 0 : index
    %c0_273 = arith.constant 0 : index
    %606 = vector.load %arg27[%c0_272, %c0_273] : memref<8x8xf32, #tpu.memory_space<vmem>>, vector<8x8xf32>
    %cst_274 = arith.constant dense<0.000000e+00> : vector<1x8xf32>
    %607 = tpu.matmul %580, %606, %cst_274 {dimension_numbers = #tpu.dot_dimension_numbers<[1], [1], [0], [0], [0, 0, 1, 0], [], []>} : vector<1x8xf32>, vector<8x8xf32>, vector<1x8xf32> -> vector<1x8xf32>
    %608 = arith.addf %605, %607 : vector<1x8xf32>
    %609 = arith.negf %608 : vector<1x8xf32>
    %610 = math.exp %609 : vector<1x8xf32>
    %cst_275 = arith.constant 1.000000e+00 : f32
    %611 = vector.broadcast %cst_275 : f32 to vector<1x8xf32>
    %612 = arith.addf %611, %610 : vector<1x8xf32>
    %613 = arith.divf %611, %612 : vector<1x8xf32>
    %614 = arith.mulf %599, %578 : vector<1x8xf32>
    %615 = arith.mulf %590, %604 : vector<1x8xf32>
    %616 = arith.addf %614, %615 : vector<1x8xf32>
    %617 = math.tanh %616 : vector<1x8xf32>
    %618 = arith.mulf %613, %617 : vector<1x8xf32>
    %c2_276 = arith.constant 2 : index
    %c0_277 = arith.constant 0 : index
    %619 = vector.load %arg31[%c2_276, %c0_277] : memref<4x8xf32, #tpu.memory_space<vmem>>, vector<1x8xf32>
    tpu.vector_store %arg31[%c2_276, %c0_277], %618 {strides = array<i32>} : memref<4x8xf32, #tpu.memory_space<vmem>>, vector<1x8xf32>,
    %620 = vector.extract_strided_slice %497 {offsets = [3, 0], sizes = [1, 8], strides = [1, 1]} : vector<4x8xf32> to vector<1x8xf32>
    %c0_278 = arith.constant 0 : index
    %c0_279 = arith.constant 0 : index
    %621 = vector.load %arg24[%c0_278, %c0_279] : memref<8x8xf32, #tpu.memory_space<vmem>>, vector<8x8xf32>
    %cst_280 = arith.constant dense<0.000000e+00> : vector<1x8xf32>
    %622 = tpu.matmul %618, %621, %cst_280 {dimension_numbers = #tpu.dot_dimension_numbers<[1], [1], [0], [0], [0, 0, 1, 0], [], []>} : vector<1x8xf32>, vector<8x8xf32>, vector<1x8xf32> -> vector<1x8xf32>
    %623 = arith.addf %620, %622 : vector<1x8xf32>
    %624 = arith.negf %623 : vector<1x8xf32>
    %625 = math.exp %624 : vector<1x8xf32>
    %cst_281 = arith.constant 1.000000e+00 : f32
    %626 = vector.broadcast %cst_281 : f32 to vector<1x8xf32>
    %627 = arith.addf %626, %625 : vector<1x8xf32>
    %628 = arith.divf %626, %627 : vector<1x8xf32>
    %629 = vector.extract_strided_slice %499 {offsets = [3, 0], sizes = [1, 8], strides = [1, 1]} : vector<4x8xf32> to vector<1x8xf32>
    %c0_282 = arith.constant 0 : index
    %c0_283 = arith.constant 0 : index
    %630 = vector.load %arg25[%c0_282, %c0_283] : memref<8x8xf32, #tpu.memory_space<vmem>>, vector<8x8xf32>
    %cst_284 = arith.constant dense<0.000000e+00> : vector<1x8xf32>
    %631 = tpu.matmul %618, %630, %cst_284 {dimension_numbers = #tpu.dot_dimension_numbers<[1], [1], [0], [0], [0, 0, 1, 0], [], []>} : vector<1x8xf32>, vector<8x8xf32>, vector<1x8xf32> -> vector<1x8xf32>
    %632 = arith.addf %629, %631 : vector<1x8xf32>
    %633 = arith.negf %632 : vector<1x8xf32>
    %634 = math.exp %633 : vector<1x8xf32>
    %cst_285 = arith.constant 1.000000e+00 : f32
    %635 = vector.broadcast %cst_285 : f32 to vector<1x8xf32>
    %636 = arith.addf %635, %634 : vector<1x8xf32>
    %637 = arith.divf %635, %636 : vector<1x8xf32>
    %638 = vector.extract_strided_slice %501 {offsets = [3, 0], sizes = [1, 8], strides = [1, 1]} : vector<4x8xf32> to vector<1x8xf32>
    %c0_286 = arith.constant 0 : index
    %c0_287 = arith.constant 0 : index
    %639 = vector.load %arg26[%c0_286, %c0_287] : memref<8x8xf32, #tpu.memory_space<vmem>>, vector<8x8xf32>
    %cst_288 = arith.constant dense<0.000000e+00> : vector<1x8xf32>
    %640 = tpu.matmul %618, %639, %cst_288 {dimension_numbers = #tpu.dot_dimension_numbers<[1], [1], [0], [0], [0, 0, 1, 0], [], []>} : vector<1x8xf32>, vector<8x8xf32>, vector<1x8xf32> -> vector<1x8xf32>
    %641 = arith.addf %638, %640 : vector<1x8xf32>
    %642 = math.tanh %641 : vector<1x8xf32>
    %643 = vector.extract_strided_slice %503 {offsets = [3, 0], sizes = [1, 8], strides = [1, 1]} : vector<4x8xf32> to vector<1x8xf32>
    %c0_289 = arith.constant 0 : index
    %c0_290 = arith.constant 0 : index
    %644 = vector.load %arg27[%c0_289, %c0_290] : memref<8x8xf32, #tpu.memory_space<vmem>>, vector<8x8xf32>
    %cst_291 = arith.constant dense<0.000000e+00> : vector<1x8xf32>
    %645 = tpu.matmul %618, %644, %cst_291 {dimension_numbers = #tpu.dot_dimension_numbers<[1], [1], [0], [0], [0, 0, 1, 0], [], []>} : vector<1x8xf32>, vector<8x8xf32>, vector<1x8xf32> -> vector<1x8xf32>
    %646 = arith.addf %643, %645 : vector<1x8xf32>
    %647 = arith.negf %646 : vector<1x8xf32>
    %648 = math.exp %647 : vector<1x8xf32>
    %cst_292 = arith.constant 1.000000e+00 : f32
    %649 = vector.broadcast %cst_292 : f32 to vector<1x8xf32>
    %650 = arith.addf %649, %648 : vector<1x8xf32>
    %651 = arith.divf %649, %650 : vector<1x8xf32>
    %652 = arith.mulf %637, %616 : vector<1x8xf32>
    %653 = arith.mulf %628, %642 : vector<1x8xf32>
    %654 = arith.addf %652, %653 : vector<1x8xf32>
    %655 = math.tanh %654 : vector<1x8xf32>
    %656 = arith.mulf %651, %655 : vector<1x8xf32>
    %c3_293 = arith.constant 3 : index
    %c0_294 = arith.constant 0 : index
    %657 = vector.load %arg31[%c3_293, %c0_294] : memref<4x8xf32, #tpu.memory_space<vmem>>, vector<1x8xf32>
    tpu.vector_store %arg31[%c3_293, %c0_294], %656 {strides = array<i32>} : memref<4x8xf32, #tpu.memory_space<vmem>>, vector<1x8xf32>,
    %c0_295 = arith.constant 0 : index
    %c0_296 = arith.constant 0 : index
    %658 = vector.load %arg31[%c0_295, %c0_296] : memref<4x8xf32, #tpu.memory_space<vmem>>, vector<4x8xf32>
    %c0_297 = arith.constant 0 : index
    %c0_298 = arith.constant 0 : index
    %659 = vector.load %arg28[%c0_297, %c0_298] : memref<8x8xf32, #tpu.memory_space<vmem>>, vector<8x8xf32>
    %cst_299 = arith.constant dense<0.000000e+00> : vector<4x8xf32>
    %660 = tpu.matmul %658, %659, %cst_299 {dimension_numbers = #tpu.dot_dimension_numbers<[1], [1], [0], [0], [0, 0, 1, 0], [], []>} : vector<4x8xf32>, vector<8x8xf32>, vector<4x8xf32> -> vector<4x8xf32>
    %c0_300 = arith.constant 0 : index
    %c0_301 = arith.constant 0 : index
    %661 = vector.load %arg29[%c0_300, %c0_301] : memref<9x8xf32, #tpu.memory_space<vmem>>, vector<9x8xf32>
    %cst_302 = arith.constant dense<0.000000e+00> : vector<4x9xf32>
    %662 = tpu.matmul %658, %661, %cst_302 {dimension_numbers = #tpu.dot_dimension_numbers<[1], [1], [0], [0], [0, 0, 1, 0], [], []>} : vector<4x8xf32>, vector<9x8xf32>, vector<4x9xf32> -> vector<4x9xf32>
    %cst_303 = arith.constant dense<0xFF800000> : vector<8xf32>
    %663 = vector.multi_reduction <maximumf>, %660, %cst_303 [0] : vector<4x8xf32> to vector<8xf32>
    %664 = vector.shape_cast %663 : vector<8xf32> to vector<1x8xf32>
    %665 = vector.broadcast %664 : vector<1x8xf32> to vector<4x8xf32>
    %666 = arith.subf %660, %665 : vector<4x8xf32>
    %667 = math.exp %666 : vector<4x8xf32>
    %cst_304 = arith.constant dense<0.000000e+00> : vector<8xf32>
    %668 = vector.multi_reduction <add>, %667, %cst_304 [0] : vector<4x8xf32> to vector<8xf32>
    %669 = vector.shape_cast %668 : vector<8xf32> to vector<1x8xf32>
    %670 = math.log %669 : vector<1x8xf32>
    %671 = vector.broadcast %670 : vector<1x8xf32> to vector<4x8xf32>
    %672 = arith.subf %666, %671 : vector<4x8xf32>
    %cst_305 = arith.constant dense<0xFF800000> : vector<9xf32>
    %673 = vector.multi_reduction <maximumf>, %662, %cst_305 [0] : vector<4x9xf32> to vector<9xf32>
    %674 = vector.shape_cast %673 : vector<9xf32> to vector<1x9xf32>
    %675 = vector.broadcast %674 : vector<1x9xf32> to vector<4x9xf32>
    %676 = arith.subf %662, %675 : vector<4x9xf32>
    %677 = math.exp %676 : vector<4x9xf32>
    %cst_306 = arith.constant dense<0.000000e+00> : vector<9xf32>
    %678 = vector.multi_reduction <add>, %677, %cst_306 [0] : vector<4x9xf32> to vector<9xf32>
    %679 = vector.shape_cast %678 : vector<9xf32> to vector<1x9xf32>
    %680 = math.log %679 : vector<1x9xf32>
    %681 = vector.broadcast %680 : vector<1x9xf32> to vector<4x9xf32>
    %682 = arith.subf %676, %681 : vector<4x9xf32>
    %cst_307 = arith.constant 0.000000e+00 : f32
    %683 = vector.broadcast %cst_307 : f32 to vector<4x111xf32>
    %684 = tpu.concatenate %672, %682, %683 in 1 : vector<4x8xf32>, vector<4x9xf32>, vector<4x111xf32> -> vector<4x128xf32>
    %c0_308 = arith.constant 0 : index
    %c0_309 = arith.constant 0 : index
    %685 = vector.load %arg30[%c0_308, %c0_309] : memref<4x128xf32, #tpu.memory_space<vmem>>, vector<4x128xf32>
    tpu.vector_store %arg30[%c0_308, %c0_309], %684 {strides = array<i32>} : memref<4x128xf32, #tpu.memory_space<vmem>>, vector<4x128xf32>,
    return
  }
  func.func @transform_0(%arg0: i32) -> (i32, i32) {
    %c0_i32 = arith.constant 0 : i32
    %c0_i32_0 = arith.constant 0 : i32
    %c0_i32_1 = arith.constant 0 : i32
    return %c0_i32, %c0_i32_0 : i32, i32
  }
  func.func @transform_1(%arg0: i32) -> (i32, i32) {
    %c0_i32 = arith.constant 0 : i32
    %c0_i32_0 = arith.constant 0 : i32
    %c0_i32_1 = arith.constant 0 : i32
    return %c0_i32, %c0_i32_0 : i32, i32
  }
  func.func @transform_2(%arg0: i32) -> (i32, i32) {
    %c0_i32 = arith.constant 0 : i32
    %c0_i32_0 = arith.constant 0 : i32
    %c0_i32_1 = arith.constant 0 : i32
    return %c0_i32, %c0_i32_0 : i32, i32
  }
  func.func @transform_3(%arg0: i32) -> (i32, i32) {
    %c0_i32 = arith.constant 0 : i32
    %c0_i32_0 = arith.constant 0 : i32
    %c0_i32_1 = arith.constant 0 : i32
    return %c0_i32, %c0_i32_0 : i32, i32
  }
  func.func @transform_4(%arg0: i32) -> (i32, i32) {
    %c0_i32 = arith.constant 0 : i32
    %c0_i32_0 = arith.constant 0 : i32
    %c0_i32_1 = arith.constant 0 : i32
    return %c0_i32, %c0_i32_0 : i32, i32
  }
  func.func @transform_5(%arg0: i32) -> (i32, i32) {
    %c0_i32 = arith.constant 0 : i32
    %c0_i32_0 = arith.constant 0 : i32
    %c0_i32_1 = arith.constant 0 : i32
    return %c0_i32, %c0_i32_0 : i32, i32
  }
  func.func @transform_6(%arg0: i32) -> (i32, i32) {
    %c0_i32 = arith.constant 0 : i32
    %c0_i32_0 = arith.constant 0 : i32
    %c0_i32_1 = arith.constant 0 : i32
    return %c0_i32, %c0_i32_0 : i32, i32
  }
  func.func @transform_7(%arg0: i32) -> (i32, i32) {
    %c0_i32 = arith.constant 0 : i32
    %c0_i32_0 = arith.constant 0 : i32
    %c0_i32_1 = arith.constant 0 : i32
    return %c0_i32, %c0_i32_0 : i32, i32
  }
  func.func @transform_8(%arg0: i32) -> (i32, i32) {
    %c0_i32 = arith.constant 0 : i32
    %c0_i32_0 = arith.constant 0 : i32
    %c0_i32_1 = arith.constant 0 : i32
    return %c0_i32, %c0_i32_0 : i32, i32
  }
  func.func @transform_9(%arg0: i32) -> (i32, i32) {
    %c0_i32 = arith.constant 0 : i32
    %c0_i32_0 = arith.constant 0 : i32
    %c0_i32_1 = arith.constant 0 : i32
    return %c0_i32, %c0_i32_0 : i32, i32
  }
  func.func @transform_10(%arg0: i32) -> (i32, i32) {
    %c0_i32 = arith.constant 0 : i32
    %c0_i32_0 = arith.constant 0 : i32
    %c0_i32_1 = arith.constant 0 : i32
    return %c0_i32, %c0_i32_0 : i32, i32
  }
  func.func @transform_11(%arg0: i32) -> (i32, i32) {
    %c0_i32 = arith.constant 0 : i32
    %c0_i32_0 = arith.constant 0 : i32
    %c0_i32_1 = arith.constant 0 : i32
    return %c0_i32, %c0_i32_0 : i32, i32
  }
  func.func @transform_12(%arg0: i32) -> (i32, i32) {
    %c0_i32 = arith.constant 0 : i32
    %c0_i32_0 = arith.constant 0 : i32
    %c0_i32_1 = arith.constant 0 : i32
    return %c0_i32, %c0_i32_0 : i32, i32
  }
  func.func @transform_13(%arg0: i32) -> (i32, i32) {
    %c0_i32 = arith.constant 0 : i32
    %c0_i32_0 = arith.constant 0 : i32
    %c0_i32_1 = arith.constant 0 : i32
    return %c0_i32, %c0_i32_0 : i32, i32
  }
  func.func @transform_14(%arg0: i32) -> (i32, i32) {
    %c0_i32 = arith.constant 0 : i32
    %c0_i32_0 = arith.constant 0 : i32
    %c0_i32_1 = arith.constant 0 : i32
    return %c0_i32, %c0_i32_0 : i32, i32
  }
  func.func @transform_15(%arg0: i32) -> (i32, i32) {
    %c0_i32 = arith.constant 0 : i32
    %c0_i32_0 = arith.constant 0 : i32
    %c0_i32_1 = arith.constant 0 : i32
    return %c0_i32, %c0_i32_0 : i32, i32
  }
  func.func @transform_16(%arg0: i32) -> (i32, i32) {
    %c0_i32 = arith.constant 0 : i32
    %c0_i32_0 = arith.constant 0 : i32
    %c0_i32_1 = arith.constant 0 : i32
    return %c0_i32, %c0_i32_0 : i32, i32
  }
  func.func @transform_17(%arg0: i32) -> (i32, i32) {
    %c0_i32 = arith.constant 0 : i32
    %c0_i32_0 = arith.constant 0 : i32
    %c0_i32_1 = arith.constant 0 : i32
    return %c0_i32, %c0_i32_0 : i32, i32
  }
  func.func @transform_18(%arg0: i32) -> (i32, i32) {
    %c0_i32 = arith.constant 0 : i32
    %c0_i32_0 = arith.constant 0 : i32
    %c0_i32_1 = arith.constant 0 : i32
    return %c0_i32, %c0_i32_0 : i32, i32
  }
  func.func @transform_19(%arg0: i32) -> (i32, i32) {
    %c0_i32 = arith.constant 0 : i32
    %c0_i32_0 = arith.constant 0 : i32
    %c0_i32_1 = arith.constant 0 : i32
    return %c0_i32, %c0_i32_0 : i32, i32
  }
  func.func @transform_20(%arg0: i32) -> (i32, i32) {
    %c0_i32 = arith.constant 0 : i32
    %c0_i32_0 = arith.constant 0 : i32
    %c0_i32_1 = arith.constant 0 : i32
    return %c0_i32, %c0_i32_0 : i32, i32
  }
  func.func @transform_21(%arg0: i32) -> (i32, i32) {
    %c0_i32 = arith.constant 0 : i32
    %c0_i32_0 = arith.constant 0 : i32
    %c0_i32_1 = arith.constant 0 : i32
    return %c0_i32, %c0_i32_0 : i32, i32
  }
  func.func @transform_22(%arg0: i32) -> (i32, i32) {
    %c0_i32 = arith.constant 0 : i32
    %c0_i32_0 = arith.constant 0 : i32
    %c0_i32_1 = arith.constant 0 : i32
    return %c0_i32, %c0_i32_0 : i32, i32
  }
  func.func @transform_23(%arg0: i32) -> (i32, i32) {
    %c0_i32 = arith.constant 0 : i32
    %c0_i32_0 = arith.constant 0 : i32
    %c0_i32_1 = arith.constant 0 : i32
    return %c0_i32, %c0_i32_0 : i32, i32
  }
  func.func @transform_24(%arg0: i32) -> (i32, i32) {
    %c0_i32 = arith.constant 0 : i32
    %c0_i32_0 = arith.constant 0 : i32
    %c0_i32_1 = arith.constant 0 : i32
    return %c0_i32, %c0_i32_0 : i32, i32
  }
  func.func @transform_25(%arg0: i32) -> (i32, i32) {
    %c0_i32 = arith.constant 0 : i32
    %c0_i32_0 = arith.constant 0 : i32
    %c0_i32_1 = arith.constant 0 : i32
    return %c0_i32, %c0_i32_0 : i32, i32
  }
  func.func @transform_26(%arg0: i32) -> (i32, i32) {
    %c0_i32 = arith.constant 0 : i32
    %c0_i32_0 = arith.constant 0 : i32
    %c0_i32_1 = arith.constant 0 : i32
    return %c0_i32, %c0_i32_0 : i32, i32
  }
  func.func @transform_27(%arg0: i32) -> (i32, i32) {
    %c0_i32 = arith.constant 0 : i32
    %c0_i32_0 = arith.constant 0 : i32
    %c0_i32_1 = arith.constant 0 : i32
    return %c0_i32, %c0_i32_0 : i32, i32
  }
  func.func @transform_28(%arg0: i32) -> (i32, i32) {
    %c0_i32 = arith.constant 0 : i32
    %c0_i32_0 = arith.constant 0 : i32
    %c0_i32_1 = arith.constant 0 : i32
    return %c0_i32, %c0_i32_0 : i32, i32
  }
  func.func @transform_29(%arg0: i32) -> (i32, i32) {
    %c0_i32 = arith.constant 0 : i32
    %c0_i32_0 = arith.constant 0 : i32
    %c0_i32_1 = arith.constant 0 : i32
    return %c0_i32, %c0_i32_0 : i32, i32
  }
}

</mosaic_0001>

<bundles_post_ra>
// kernel: tpu_custom_call.1
= control target key start
LH: loop header
LB: loop body
LE: loop exit
PB: predicated region body
PF: predicated region fallthrough
CT: control target
= control target key end

     0   :  { %s5904_s6 = smov 1   ;;  %s5905_s10 = smov 2   ;;  %s6622_s0 = inlined_call_operand.smem [shape: u32[30], index: -1, kind: input, shape index: {}] }
   0x1   :  { %s5962_s5 = sld [smem:[%s6622_s0]]   ;;  %s5906_s14 = smov 3  }
   0x2   :  { %s5967_s9 = sld [smem:[%s6622_s0 + %s5904_s6]]   ;;  %s5907_s18 = smov 4  }
   0x3   :  { %s5972_s13 = sld [smem:[%s6622_s0 + %s5905_s10]]   ;;  %s5908_s22 = smov 5  }
   0x4   :  { %s5977_s17 = sld [smem:[%s6622_s0 + %s5906_s14]]   ;;  %s5909_s26 = smov 6  }
   0x5   :  { %s5982_s21 = sld [smem:[%s6622_s0 + %s5907_s18]]   ;;  %s5910_s30 = smov 7  }
   0x6   :  { %s5987_s25 = sld [smem:[%s6622_s0 + %s5908_s22]]   ;;  %s5911_s4 = smov 8  }
   0x7   :  { %s5992_s29 = sld [smem:[%s6622_s0 + %s5909_s26]]   ;;  %s5912_s10 = smov 9  }
   0x8   :  { %6627 = sst [smem:[#allocation34_spill]] %s5967_s9  ;;  %s5913_s15 = smov 10  }
   0x9   :  { %s5997_s3 = sld [smem:[%s6622_s0 + %s5910_s30]]   ;;  %s5914_s20 = smov 11  }
   0xa   :  { %s6002_s8 = sld [smem:[%s6622_s0 + %s5911_s4]]   ;;  %s5915_s26 = smov 12  }
   0xb   :  { %s6007_s14 = sld [smem:[%s6622_s0 + %s5912_s10]]   ;;  %s5916_s1 = smov 13  }
   0xc   :  { %6628 = sst [smem:[#allocation35_spill]] %s5987_s25  ;;  %s5917_s7 = smov 14  }
   0xd   :  { %s6012_s19 = sld [smem:[%s6622_s0 + %s5913_s15]]   ;;  %s5918_s15 = smov 15  }
   0xe   :  { %s6017_s24 = sld [smem:[%s6622_s0 + %s5914_s20]]   ;;  %s5919_s22 = smov 16  }
   0xf   :  { %6629 = sst [smem:[#allocation36_spill]] %s5997_s3  ;;  %s5920_s28 = smov 17  }
  0x10   :  { %s6022_s30 = sld [smem:[%s6622_s0 + %s5915_s26]]   ;;  %s5921_s10 = smov 18  }
  0x11   :  { %s6027_s6 = sld [smem:[%s6622_s0 + %s5916_s1]]   ;;  %s5926_s16 = smov 23  }
  0x12   :  { %s4803_s12 = sld [smem:[%s6622_s0 + %s5917_s7]]  }
  0x13   :  { %s6035_s20 = sld [smem:[%s6622_s0 + %s5918_s15]]   ;;  %s5922_s15 = smov 19  }
  0x14   :  { %s6040_s27 = sld [smem:[%s6622_s0 + %s5919_s22]]   ;;  %s5923_s22 = smov 20  }
  0x15   :  { %s6045_s4 = sld [smem:[%s6622_s0 + %s5920_s28]]   ;;  %s5924_s28 = smov 21  }
  0x16   :  { %s6050_s3 = sld [smem:[%s6622_s0 + %s5921_s10]]   ;;  %s5925_s10 = smov 22  }
  0x17   :  { %s6055_s25 = sld [smem:[%s6622_s0 + %s5922_s15]]  }
  0x18   :  { %s6060_s9 = sld [smem:[%s6622_s0 + %s5923_s22]]   ;;  %v64_v0 = vstv %s4803_s12  ;;  %s5927_s12 = smov 24  }
  0x19   :  { %s6065_s7 = sld [smem:[%s6622_s0 + %s5924_s28]]   ;;  %65 = vst [vmem:[#allocation3] sm:$0x1] %v64_v0  ;;  %s5928_s28 = smov 25  }
  0x1a   :  { %s6070_s15 = sld [smem:[%s6622_s0 + %s5925_s10]]  }
  0x1b   :  { %s6075_s22 = sld [smem:[%s6622_s0 + %s5926_s16]]  }
  0x1c   :  { %6630 = sst [smem:[#allocation37_spill]] %s6050_s3  ;;  %s5929_s3 = smov 26  }
  0x1d   :  { %6631 = sst [smem:[#allocation38_spill]] %s6055_s25  ;;  %s5930_s25 = smov 27  }
  0x1e   :  { %6632 = sst [smem:[#allocation39_spill]] %s6060_s9 }
  0x1f   :  { %6633 = sst [smem:[#allocation40_spill]] %s6065_s7  ;;  %s5932_s7 = smov 29  }
  0x20   :  { %6634 = sst [smem:[#allocation41_spill]] %s6070_s15 }
  0x21   :  { %6635 = sst [smem:[#allocation42_spill]] %s6075_s22 }
  0x22   :  { %s6080_s1 = sld [smem:[%s6622_s0 + %s5927_s12]]   ;;  %s5931_s12 = smov 28  }
  0x23   :  { %s6085_s9 = sld [smem:[%s6622_s0 + %s5928_s28]]  }
  0x24   :  { %s6090_s15 = sld [smem:[%s6622_s0 + %s5929_s3]]  }
  0x25   :  { %s6095_s22 = sld [smem:[%s6622_s0 + %s5930_s25]]  }
  0x28   :  { %6636 = sst [smem:[#allocation43_spill]] %s6080_s1 }
  0x29   :  { %6637 = sst [smem:[#allocation44_spill]] %s6085_s9 }
  0x2a   :  { %s6100_s1 = sld [smem:[%s6622_s0 + %s5931_s12]]  }
  0x2b   :  { %s6105_s9 = sld [smem:[%s6622_s0 + %s5932_s7]]  }
  0x2c   :  { %66 = vsyncpa [#allocation5], 0 }
  0x2d   :  { %67 = vsyncpa [#allocation8], 0 }
  0x2e   :  { %68 = vsyncpa [#allocation11], 0 }
  0x2f   :  { %69 = vsyncpa [#allocation14], 0 }
  0x30   :  { %70 = vsyncpa [#allocation17], 0 }
  0x31   :  { %71 = vsyncpa [#allocation20], 0 }
  0x32   :  { %72 = vsyncpa [#allocation23], 0 }
  0x33   :  { %73 = vsyncpa [#allocation6], 0  ;;  %s5933_s3 = smov [#allocation7]   ;;  %s5934_s11 = smov [#allocation10]  }
  0x34   :  { %s92_s10 = sshll.u32 %s5933_s3, 4  ;;  %s116_s25 = sshll.u32 %s5934_s11, 4  ;;  %s93_s10 = int_to_ptr.vmem [resolvable:$true] %s92_s10  ;;  %s117_s25 = int_to_ptr.vmem [resolvable:$true] %s116_s25 }
  0x35   :  { %s5580_s16 = scalar_lea.hbm %s5972_s13, 16 }
  0x36   :  { %p5581_p0 = scmp.ne.s32.totalorder %s5972_s13, %s5580_s16  ;;  %p5584_p1 = scmp.lt.u32.totalorder %s5580_s16, %s5972_s13 }
  0x38   :  { %p5586_p2 = pnand %p5584_p1, %p5581_p0 }
  0x3a   :  { %5589 = shalt.err (!%p5586_p2)
}
  0x3b   :  { %s5590_s0 = scalar_lea.vmem %s93_s10, 16  ;;  %s5594_s18 = scalar_lea.vmem %s93_s10, 32 }
  0x3c   :  { %p5591_p3 = scmp.ne.s32.totalorder %s93_s10, %s5590_s0  ;;  %p5595_p4 = scmp.lt.s32.totalorder %s93_s10, %s93_s10 }
  0x3d   :  { %p5596_p5 = scmp.lt.s32.totalorder %s5594_s18, %s5590_s0 }
  0x3f   :  { %p5597_p6 = por %p5596_p5, %p5595_p4 }
  0x41   :  { %p5598_p7 = pnand %p5597_p6, %p5591_p3 }
  0x43   :  { %5601 = shalt.err (!%p5598_p7)
}
  0x44   :  { %95 = dma.hbm_to_vmem [thread:$0]  %s5972_s13, 16, %s93_s10, [#allocation8]  }
  0x45   :  { %s5602_s12 = scalar_lea.hbm %s5992_s29, 16 }
  0x46   :  { %p5603_p8 = scmp.ne.s32.totalorder %s5992_s29, %s5602_s12  ;;  %p5606_p9 = scmp.lt.u32.totalorder %s5602_s12, %s5992_s29 }
  0x48   :  { %p5608_p10 = pnand %p5606_p9, %p5603_p8 }
  0x4a   :  { %5611 = shalt.err (!%p5608_p10)
}
  0x4b   :  { %s5612_s23 = scalar_lea.vmem %s117_s25, 16  ;;  %s5616_s26 = scalar_lea.vmem %s117_s25, 32 }
  0x4c   :  { %p5613_p11 = scmp.ne.s32.totalorder %s117_s25, %s5612_s23  ;;  %p5617_p12 = scmp.lt.s32.totalorder %s117_s25, %s117_s25 }
  0x4d   :  { %p5618_p13 = scmp.lt.s32.totalorder %s5616_s26, %s5612_s23 }
  0x4f   :  { %p5619_p0 = por %p5618_p13, %p5617_p12 }
  0x51   :  { %p5620_p1 = pnand %p5619_p0, %p5613_p11 }
  0x53   :  { %5623 = shalt.err (!%p5620_p1)
}
  0x54   :  { %119 = dma.hbm_to_vmem [thread:$0]  %s5992_s29, 16, %s117_s25, [#allocation11]  }
  0x55   :  { %s5935_s7 = smov [#allocation13]   ;;  %s5936_s28 = smov [#allocation16]  }
  0x56   :  { %s138_s13 = sshll.u32 %s5935_s7, 4  ;;  %s158_s2 = sshll.u32 %s5936_s28, 4  ;;  %s139_s13 = int_to_ptr.vmem [resolvable:$true] %s138_s13  ;;  %s159_s2 = int_to_ptr.vmem [resolvable:$true] %s158_s2 }
  0x57   :  { %s5624_s3 = scalar_lea.hbm %s6007_s14, 16 }
  0x58   :  { %p5625_p2 = scmp.ne.s32.totalorder %s6007_s14, %s5624_s3  ;;  %p5628_p3 = scmp.lt.u32.totalorder %s5624_s3, %s6007_s14 }
  0x5a   :  { %p5630_p4 = pnand %p5628_p3, %p5625_p2 }
  0x5c   :  { %5633 = shalt.err (!%p5630_p4)
}
  0x5d   :  { %s5634_s10 = scalar_lea.vmem %s139_s13, 16  ;;  %s5638_s11 = scalar_lea.vmem %s139_s13, 32 }
  0x5e   :  { %p5635_p5 = scmp.ne.s32.totalorder %s139_s13, %s5634_s10  ;;  %p5639_p6 = scmp.lt.s32.totalorder %s139_s13, %s139_s13 }
  0x5f   :  { %p5640_p7 = scmp.lt.s32.totalorder %s5638_s11, %s5634_s10 }
  0x61   :  { %p5641_p8 = por %p5640_p7, %p5639_p6 }
  0x63   :  { %p5642_p9 = pnand %p5641_p8, %p5635_p5 }
  0x65   :  { %5645 = shalt.err (!%p5642_p9)
}
  0x66   :  { %141 = dma.hbm_to_vmem [thread:$0]  %s6007_s14, 16, %s139_s13, [#allocation14]  }
  0x67   :  { %s5646_s29 = scalar_lea.hbm %s6017_s24, 16 }
  0x68   :  { %p5647_p10 = scmp.ne.s32.totalorder %s6017_s24, %s5646_s29  ;;  %p5650_p11 = scmp.lt.u32.totalorder %s5646_s29, %s6017_s24 }
  0x6a   :  { %p5652_p12 = pnand %p5650_p11, %p5647_p10 }
  0x6c   :  { %5655 = shalt.err (!%p5652_p12)
}
  0x6d   :  { %s5656_s25 = scalar_lea.vmem %s159_s2, 16  ;;  %s5660_s16 = scalar_lea.vmem %s159_s2, 32 }
  0x6e   :  { %p5657_p13 = scmp.ne.s32.totalorder %s159_s2, %s5656_s25  ;;  %p5661_p0 = scmp.lt.s32.totalorder %s159_s2, %s159_s2 }
  0x6f   :  { %p5662_p1 = scmp.lt.s32.totalorder %s5660_s16, %s5656_s25 }
  0x71   :  { %p5663_p2 = por %p5662_p1, %p5661_p0 }
  0x73   :  { %p5664_p3 = pnand %p5663_p2, %p5657_p13 }
  0x75   :  { %5667 = shalt.err (!%p5664_p3)
}
  0x76   :  { %161 = dma.hbm_to_vmem [thread:$0]  %s6017_s24, 16, %s159_s2, [#allocation17]  }
  0x77   :  { %s5937_s0 = smov [#allocation19]   ;;  %s5938_s18 = smov [#allocation22]  }
  0x78   :  { %s178_s14 = sshll.u32 %s5937_s0, 4  ;;  %s200_s12 = sshll.u32 %s5938_s18, 4  ;;  %s179_s14 = int_to_ptr.vmem [resolvable:$true] %s178_s14  ;;  %s201_s12 = int_to_ptr.vmem [resolvable:$true] %s200_s12 }
  0x79   :  { %s5668_s23 = scalar_lea.hbm %s6027_s6, 16 }
  0x7a   :  { %p5669_p4 = scmp.ne.s32.totalorder %s6027_s6, %s5668_s23  ;;  %p5672_p5 = scmp.lt.u32.totalorder %s5668_s23, %s6027_s6 }
  0x7c   :  { %p5674_p6 = pnand %p5672_p5, %p5669_p4 }
  0x7e   :  { %5677 = shalt.err (!%p5674_p6)
}
  0x7f   :  { %s5678_s26 = scalar_lea.vmem %s179_s14, 16  ;;  %s5682_s7 = scalar_lea.vmem %s179_s14, 32 }
  0x80   :  { %p5679_p7 = scmp.ne.s32.totalorder %s179_s14, %s5678_s26  ;;  %p5683_p8 = scmp.lt.s32.totalorder %s179_s14, %s179_s14 }
  0x81   :  { %p5684_p9 = scmp.lt.s32.totalorder %s5682_s7, %s5678_s26 }
  0x83   :  { %p5685_p10 = por %p5684_p9, %p5683_p8 }
  0x85   :  { %p5686_p11 = pnand %p5685_p10, %p5679_p7 }
  0x87   :  { %5689 = shalt.err (!%p5686_p11)
}
  0x88   :  { %181 = dma.hbm_to_vmem [thread:$0]  %s6027_s6, 16, %s179_s14, [#allocation20]  }
  0x89   :  { %s5690_s24 = scalar_lea.hbm %s6040_s27, 16 }
  0x8a   :  { %p5691_p12 = scmp.ne.s32.totalorder %s6040_s27, %s5690_s24  ;;  %p5694_p13 = scmp.lt.u32.totalorder %s5690_s24, %s6040_s27 }
  0x8c   :  { %p5696_p0 = pnand %p5694_p13, %p5691_p12 }
  0x8e   :  { %5699 = shalt.err (!%p5696_p0)
}
  0x8f   :  { %s5700_s13 = scalar_lea.vmem %s201_s12, 16  ;;  %s5704_s28 = scalar_lea.vmem %s201_s12, 32 }
  0x90   :  { %p5701_p1 = scmp.ne.s32.totalorder %s201_s12, %s5700_s13  ;;  %p5705_p2 = scmp.lt.s32.totalorder %s201_s12, %s201_s12 }
  0x91   :  { %p5706_p3 = scmp.lt.s32.totalorder %s5704_s28, %s5700_s13 }
  0x93   :  { %p5707_p4 = por %p5706_p3, %p5705_p2 }
  0x95   :  { %p5708_p5 = pnand %p5707_p4, %p5701_p1 }
  0x97   :  { %5711 = shalt.err (!%p5708_p5)
}
  0x98   :  { %203 = dma.hbm_to_vmem [thread:$0]  %s6040_s27, 16, %s201_s12, [#allocation23]  }
  0x99   :  { %s5939_s2 = smov [#allocation4]   ;;  %s5940_s3 = smov [#allocation9]  }
  0x9a   :  { %s80_s6 = sshll.u32 %s5939_s2, 4  ;;  %s104_s10 = sshll.u32 %s5940_s3, 4  ;;  %s81_s6 = int_to_ptr.vmem [resolvable:$true] %s80_s6  ;;  %s105_s10 = int_to_ptr.vmem [resolvable:$true] %s104_s10 }
  0x9b   :  { %s5712_s11 = scalar_lea.hbm %s5962_s5, 64 }
  0x9c   :  { %p5713_p6 = scmp.ne.s32.totalorder %s5962_s5, %s5712_s11  ;;  %p5716_p7 = scmp.lt.u32.totalorder %s5712_s11, %s5962_s5 }
  0x9e   :  { %p5718_p8 = pnand %p5716_p7, %p5713_p6 }
  0xa0   :  { %5721 = shalt.err (!%p5718_p8)
}
  0xa1   :  { %s5722_s29 = scalar_lea.vmem %s81_s6, 64  ;;  %p5727_p10 = scmp.lt.s32.totalorder %s81_s6, %s81_s6 }
  0xa2   :  { %p5723_p9 = scmp.ne.s32.totalorder %s81_s6, %s5722_s29  ;;  %p5728_p11 = scmp.lt.s32.totalorder %s5722_s29, %s5722_s29 }
  0xa4   :  { %p5729_p12 = por %p5728_p11, %p5727_p10 }
  0xa6   :  { %p5730_p13 = pnand %p5729_p12, %p5723_p9 }
  0xa8   :  { %5733 = shalt.err (!%p5730_p13)
}
  0xa9   :  { %83 = dma.hbm_to_vmem [thread:$0]  %s5962_s5, 64, %s81_s6, [#allocation5]  }
  0xaa   :  { %s5734_s27 = scalar_lea.hbm %s5982_s21, 16 }
  0xab   :  { %p5735_p0 = scmp.ne.s32.totalorder %s5982_s21, %s5734_s27  ;;  %p5738_p1 = scmp.lt.u32.totalorder %s5734_s27, %s5982_s21 }
  0xad   :  { %p5740_p2 = pnand %p5738_p1, %p5735_p0 }
  0xaf   :  { %5743 = shalt.err (!%p5740_p2)
}
  0xb0   :  { %s5744_s25 = scalar_lea.vmem %s105_s10, 16  ;;  %s5748_s16 = scalar_lea.vmem %s105_s10, 32 }
  0xb1   :  { %p5745_p3 = scmp.ne.s32.totalorder %s105_s10, %s5744_s25  ;;  %p5749_p4 = scmp.lt.s32.totalorder %s105_s10, %s105_s10 }
  0xb2   :  { %p5750_p5 = scmp.lt.s32.totalorder %s5748_s16, %s5744_s25 }
  0xb4   :  { %p5751_p6 = por %p5750_p5, %p5749_p4 }
  0xb6   :  { %p5752_p7 = pnand %p5751_p6, %p5745_p3 }
  0xb8   :  { %5755 = shalt.err (!%p5752_p7)
}
  0xb9   :  { %107 = dma.hbm_to_vmem [thread:$0]  %s5982_s21, 16, %s105_s10, [#allocation8]  }
  0xba   :  { %s5941_s0 = smov [#allocation12]   ;;  %s5942_s14 = smov [#allocation15]  }
  0xbb   :  { %s128_s5 = sshll.u32 %s5941_s0, 4  ;;  %s148_s18 = sshll.u32 %s5942_s14, 4  ;;  %s129_s5 = int_to_ptr.vmem [resolvable:$true] %s128_s5  ;;  %s149_s18 = int_to_ptr.vmem [resolvable:$true] %s148_s18 }
  0xbc   :  { %s5756_s12 = scalar_lea.hbm %s6002_s8, 16 }
  0xbd   :  { %p5757_p8 = scmp.ne.s32.totalorder %s6002_s8, %s5756_s12  ;;  %p5760_p9 = scmp.lt.u32.totalorder %s5756_s12, %s6002_s8 }
  0xbf   :  { %p5762_p10 = pnand %p5760_p9, %p5757_p8 }
  0xc1   :  { %5765 = shalt.err (!%p5762_p10)
}
  0xc2   :  { %s5766_s23 = scalar_lea.vmem %s129_s5, 16  ;;  %s5770_s26 = scalar_lea.vmem %s129_s5, 32 }
  0xc3   :  { %p5767_p11 = scmp.ne.s32.totalorder %s129_s5, %s5766_s23  ;;  %p5771_p12 = scmp.lt.s32.totalorder %s129_s5, %s129_s5 }
  0xc4   :  { %p5772_p13 = scmp.lt.s32.totalorder %s5770_s26, %s5766_s23 }
  0xc6   :  { %p5773_p0 = por %p5772_p13, %p5771_p12 }
  0xc8   :  { %p5774_p1 = pnand %p5773_p0, %p5767_p11 }
  0xca   :  { %5777 = shalt.err (!%p5774_p1)
}
  0xcb   :  { %131 = dma.hbm_to_vmem [thread:$0]  %s6002_s8, 16, %s129_s5, [#allocation11]  }
  0xcc   :  { %s5778_s21 = scalar_lea.hbm %s6012_s19, 16 }
  0xcd   :  { %p5779_p2 = scmp.ne.s32.totalorder %s6012_s19, %s5778_s21  ;;  %p5782_p3 = scmp.lt.u32.totalorder %s5778_s21, %s6012_s19 }
  0xcf   :  { %p5784_p4 = pnand %p5782_p3, %p5779_p2 }
  0xd1   :  { %5787 = shalt.err (!%p5784_p4)
}
  0xd2   :  { %s5788_s7 = scalar_lea.vmem %s149_s18, 16  ;;  %s5792_s24 = scalar_lea.vmem %s149_s18, 32 }
  0xd3   :  { %p5789_p5 = scmp.ne.s32.totalorder %s149_s18, %s5788_s7  ;;  %p5793_p6 = scmp.lt.s32.totalorder %s149_s18, %s149_s18 }
  0xd4   :  { %p5794_p7 = scmp.lt.s32.totalorder %s5792_s24, %s5788_s7 }
  0xd6   :  { %p5795_p8 = por %p5794_p7, %p5793_p6 }
  0xd8   :  { %p5796_p9 = pnand %p5795_p8, %p5789_p5 }
  0xda   :  { %5799 = shalt.err (!%p5796_p9)
}
  0xdb   :  { %151 = dma.hbm_to_vmem [thread:$0]  %s6012_s19, 16, %s149_s18, [#allocation14]  }
  0xdc   :  { %s5943_s13 = smov [#allocation18]   ;;  %s5944_s28 = smov [#allocation21]  }
  0xdd   :  { %s168_s8 = sshll.u32 %s5943_s13, 4  ;;  %s190_s2 = sshll.u32 %s5944_s28, 4  ;;  %s169_s8 = int_to_ptr.vmem [resolvable:$true] %s168_s8  ;;  %s191_s2 = int_to_ptr.vmem [resolvable:$true] %s190_s2 }
  0xde   :  { %s5800_s6 = scalar_lea.hbm %s6022_s30, 16 }
  0xdf   :  { %p5801_p10 = scmp.ne.s32.totalorder %s6022_s30, %s5800_s6  ;;  %p5804_p11 = scmp.lt.u32.totalorder %s5800_s6, %s6022_s30 }
  0xe1   :  { %p5806_p12 = pnand %p5804_p11, %p5801_p10 }
  0xe3   :  { %5809 = shalt.err (!%p5806_p12)
}
  0xe4   :  { %s5810_s3 = scalar_lea.vmem %s169_s8, 16  ;;  %s5814_s10 = scalar_lea.vmem %s169_s8, 32 }
  0xe5   :  { %p5811_p13 = scmp.ne.s32.totalorder %s169_s8, %s5810_s3  ;;  %p5815_p0 = scmp.lt.s32.totalorder %s169_s8, %s169_s8 }
  0xe6   :  { %p5816_p1 = scmp.lt.s32.totalorder %s5814_s10, %s5810_s3 }
  0xe8   :  { %p5817_p2 = por %p5816_p1, %p5815_p0 }
  0xea   :  { %p5818_p3 = pnand %p5817_p2, %p5811_p13 }
  0xec   :  { %5821 = shalt.err (!%p5818_p3)
}
  0xed   :  { %171 = dma.hbm_to_vmem [thread:$0]  %s6022_s30, 16, %s169_s8, [#allocation17]  }
  0xee   :  { %s5822_s19 = scalar_lea.hbm %s6035_s20, 16 }
  0xef   :  { %p5823_p4 = scmp.ne.s32.totalorder %s6035_s20, %s5822_s19  ;;  %p5826_p5 = scmp.lt.u32.totalorder %s5822_s19, %s6035_s20 }
  0xf1   :  { %p5828_p6 = pnand %p5826_p5, %p5823_p4 }
  0xf3   :  { %5831 = shalt.err (!%p5828_p6)
}
  0xf4   :  { %s5832_s11 = scalar_lea.vmem %s191_s2, 16  ;;  %s5836_s29 = scalar_lea.vmem %s191_s2, 32 }
  0xf5   :  { %p5833_p7 = scmp.ne.s32.totalorder %s191_s2, %s5832_s11  ;;  %p5837_p8 = scmp.lt.s32.totalorder %s191_s2, %s191_s2 }
  0xf6   :  { %p5838_p9 = scmp.lt.s32.totalorder %s5836_s29, %s5832_s11 }
  0xf8   :  { %p5839_p10 = por %p5838_p9, %p5837_p8 }
  0xfa   :  { %p5840_p11 = pnand %p5839_p10, %p5833_p7 }
  0xfc   :  { %5843 = shalt.err (!%p5840_p11)
}
  0xfd   :  { %193 = dma.hbm_to_vmem [thread:$0]  %s6035_s20, 16, %s191_s2, [#allocation20]  }
  0xfe   :  { %s5945_s27 = smov [#allocation24]   ;;  %s5844_s25 = scalar_lea.hbm %s6045_s4, 16 }
  0xff   :  { %s210_s30 = sshll.u32 %s5945_s27, 4  ;;  %p5845_p12 = scmp.ne.s32.totalorder %s6045_s4, %s5844_s25  ;;  %s211_s30 = int_to_ptr.vmem [resolvable:$true] %s210_s30 }
 0x100   :  { %p5848_p13 = scmp.lt.u32.totalorder %s5844_s25, %s6045_s4 }
 0x102   :  { %p5850_p0 = pnand %p5848_p13, %p5845_p12 }
 0x104   :  { %5853 = shalt.err (!%p5850_p0)
}
 0x105   :  { %s5854_s16 = scalar_lea.vmem %s211_s30, 16  ;;  %s5858_s0 = scalar_lea.vmem %s211_s30, 32 }
 0x106   :  { %p5855_p1 = scmp.ne.s32.totalorder %s211_s30, %s5854_s16  ;;  %p5859_p2 = scmp.lt.s32.totalorder %s211_s30, %s211_s30 }
 0x107   :  { %p5860_p3 = scmp.lt.s32.totalorder %s5858_s0, %s5854_s16 }
 0x109   :  { %p5861_p4 = por %p5860_p3, %p5859_p2 }
 0x10b   :  { %p5862_p5 = pnand %p5861_p4, %p5855_p1 }
 0x10d   :  { %5865 = shalt.err (!%p5862_p5)
}
 0x10e   :  { %213 = dma.hbm_to_vmem [thread:$0]  %s6045_s4, 16, %s211_s30, [#allocation23]  }
 0x10f   :  { %5888 = dma.done.wait [#allocation5], 64  }
 0x110   :  { %5889 = vsyncadd [#allocation5], 4294967232 }
 0x111   :  { %5890 = dma.done.wait [#allocation8], 32  }
 0x112   :  { %5891 = vsyncadd [#allocation8], 4294967264 }
 0x113   :  { %5892 = dma.done.wait [#allocation11], 32  }
 0x114   :  { %5893 = vsyncadd [#allocation11], 4294967264 }
 0x115   :  { %5894 = dma.done.wait [#allocation14], 32  }
 0x116   :  { %5895 = vsyncadd [#allocation14], 4294967264 }
 0x117   :  { %5896 = dma.done.wait [#allocation17], 32  }
 0x118   :  { %5897 = vsyncadd [#allocation17], 4294967264 }
 0x119   :  { %5898 = dma.done.wait [#allocation20], 32  }
 0x11a   :  { %5899 = vsyncadd [#allocation20], 4294967264 }
 0x11b   :  { %5900 = dma.done.wait [#allocation23], 32  }
 0x11c   :  { %5901 = vsyncadd [#allocation23], 4294967264  ;;  %s6638_s20 = sld [smem:[#allocation34_spill]]  ;;  %v5946_v1 = vmov 0.0   ;;  %vm5947_vm0 = vmmov 0   ;;  %vm284_vm1 = vcmask 64512  }
 0x11d   :  { %5045 = vmatprep.subr.mxu1 %v5946_v1  ;;  %5040 = vmatprep.subr.mxu0 %v5946_v1  ;;  %v361_v2 = vld [vmem:[%s5977_s17] sm:$0xff]  ;;  %s6639_s4 = sld [smem:[#allocation35_spill]]  ;;  %v4822_v5 = vld [vmem:[#allocation9] ss:$0 sm:$0xff]  ;;  %v4819_v6 = vld [vmem:[#allocation7] ss:$0 sm:$0xff] }
 0x11e   :  { %5047 = vmatprep.mubr.msk.f32.mxu1 %vm5947_vm0, %v5946_v1  ;;  %5042 = vmatprep.mubr.msk.f32.mxu0 %vm5947_vm0, %v5946_v1  ;;  %v6169_v4 = vld [vmem:[#allocation4] sm:$0xf]  ;;  %vm600_vm2 = vcmask 27648   ;;  %s6640_s17 = sld [smem:[#allocation36_spill]]  ;;  %v4825_v24 = vld [vmem:[#allocation10] ss:$0 sm:$0xff]  ;;  %vm5284_vm10 = vmpackc.low %vm284_vm1, %vm284_vm1 }
 0x11f   :  { %5046 = vmatpush3.xpose.msk.msra.mxu1 %vm284_vm1, %v361_v2  ;;  %vm616_vm3 = vcmask 1043456   ;;  %vm612_vm4 = vcmask 31744   ;;  %v4832_v33 = vld [vmem:[#allocation12] ss:$0 sm:$0xff]  ;;  %vm777_vm5 = vcmask 60416   ;;  %s6641_s12 = sld [smem:[#allocation37_spill]] }
 0x120   :  { %5055 = vmatprep.subr.mxu1 %v5946_v1  ;;  %v817_v44 = vld [vmem:[#allocation3] sm:$0x1]  ;;  %v4835_v49 = vld [vmem:[#allocation13] ss:$0 sm:$0xff]  ;;  %v4836_v51 = vld [vmem:[#allocation15] ss:$0 sm:$0xff] }
 0x121   :  { %5286 = vpush %v817_v44  ;;  %v4837_v53 = vld [vmem:[#allocation19] ss:$0 sm:$0xff]  ;;  %v4838_v60 = vld [vmem:[#allocation21] ss:$0 sm:$0xff]  ;;  %v4839_v62 = vld [vmem:[#allocation22] ss:$0 sm:$0xff] }
 0x122   :  { %v276_v3 = vld [vmem:[%s6638_s20] sm:$0xff]  ;;  %5048 = vmatmul.mubr.msk.f32.vlgmr.msra.gmra.mrb[0].mxu1 %vm284_vm1, %v6169_v4  ;;  %s5948_s8 = smov 127   ;;  %s5949_s27 = smov 126   ;;  %vm1683_vm6 = vcmask 57344   ;;  %vm2027_vm7 = vcmask 58369   ;;  %vm2372_vm8 = vcmask 59394  }
 0x123   :  { %5041 = vmatpush3.xpose.msk.msra.mxu0 %vm284_vm1, %v276_v3  ;;  %5057 = vmatprep.mubr.msk.f32.mxu1 %vm5947_vm0, %v5946_v1  ;;  %v442_v13 = vld [vmem:[%s6639_s4] sm:$0xff]  ;;  %vm2717_vm9 = vcmask 60419   ;;  %vm4740_vm11 = vcmask 68608   ;;  %vm4766_vm12 = vcmask 138240  }
 0x124   :  { %5050 = vmatprep.subr.mxu0 %v5946_v1  ;;  %v690_v27 = vld [vmem:[%s6640_s17] sm:$0xff] }
 0x126   :  { %5043 = vmatmul.mubr.msk.f32.vlgmr.msra.gmra.mrb[0].mxu0 %vm284_vm1, %v6169_v4 }
 0x127   :  { %5052 = vmatprep.mubr.msk.f32.mxu0 %vm5947_vm0, %v5946_v1  ;;  %5051 = vmatpush3.xpose.msk.msra.mxu0 %vm284_vm1, %v442_v13  ;;  %v4840_v13 = vld [vmem:[#allocation16] ss:$0 sm:$0xff] }
 0x128   :  { %5060 = vmatprep.subr.mxu0 %v5946_v1 }
 0x12a   :  { %5053 = vmatmul.mubr.msk.f32.vlgmr.msra.gmra.mrb[2].mxu0 %vm284_vm1, %v6169_v4 }
 0x12b   :  { %5062 = vmatprep.mubr.msk.f32.mxu0 %vm5947_vm0, %v5946_v1 }
 0x152   :  { %s5287_s5 = spop %5286 }
 0x153   :  { %v819_v57 = vstv %s5287_s5 }
 0x1f5   :  { %v438_v7 = vpop.f32.mrb[0].mxu1 }
 0x1f6   :  { %v439_v9 = vadd.f32 %v4822_v5, %v438_v7  ;;  %v5049_v10 = vpop.f32.mrb[1].mxu1 }
 0x1f8   :  { %5056 = vmatpush3.xpose.msk.msra.mxu1 %vm284_vm1, %v439_v9 }
 0x1f9   :  { %v357_v8 = vpop.f32.mrb[0].mxu0  ;;  %5065 = vmatprep.subr.mxu1 %v5946_v1 }
 0x1fa   :  { %v5044_v11 = vpop.f32.mrb[1].mxu0  ;;  %v358_v12 = vadd.f32 %v4819_v6, %v357_v8 }
 0x1fc   :  { %5058 = vmatmul.mubr.msk.f32.vlgmr.msra.gmra.mrb[2].mxu1 %vm284_vm1, %v358_v12 }
 0x1fd   :  { %5067 = vmatprep.mubr.msk.f32.mxu1 %vm5947_vm0, %v5946_v1  ;;  %v519_v23 = vpop.f32.mrb[2].mxu0  ;;  %5066 = vmatpush3.xpose.msk.msra.mxu1 %vm284_vm1, %v690_v27 }
 0x1fe   :  { %v5054_v25 = vpop.f32.mrb[3].mxu0  ;;  %v520_v26 = vadd.f32 %v4825_v24, %v519_v23  ;;  %5075 = vmatprep.subr.mxu1 %v5946_v1 }
 0x200   :  { %5061 = vmatpush3.msk.msra.mxu0 %vm616_vm3, %v520_v26 }
 0x201   :  { %5070 = vmatprep.subr.mxu0 %v5946_v1 }
 0x2cf   :  { %v595_v14 = vpop.f32.mrb[2].mxu1 }
 0x2d0   :  { %v599_v15 = vmul.f32 0.35355338, %v595_v14  ;;  %v5059_v16 = vpop.f32.mrb[3].mxu1 }
 0x2d2   :  { %v601_v17 = vsel %vm600_vm2, %v599_v15, -inf }
 0x2d3   :  { %602 = vmax.xlane.f32.xlu0 %v601_v17 }
 0x360   :  { %v603_v18 = vpop.xlane.xlu0 %602 }
 0x361   :  { %v604_v19 = vsub.f32 %v599_v15, %v603_v18  ;;  %v4841_v15 = vld [vmem:[#allocation18] ss:$0 sm:$0xff] }
 0x363   :  { %v605_v20 = vmul.f32 1.442695, %v604_v19 }
 0x365   :  { %5418 = vpow2.f32 %v605_v20 }
 0x36f   :  { %v5419_v21 = vpop.eup %5418 }
 0x370   :  { %v607_v22 = vsel %vm600_vm2, %v5419_v21, 0.0 }
 0x371   :  { %608 = vadd.xlane.f32.xlu0 %v607_v22 }
 0x3fe   :  { %v609_v28 = vpop.xlane.xlu0 %608 }
 0x3ff   :  { %5420 = vrcp.f32 %v609_v28 }
 0x409   :  { %v5421_v29 = vpop.eup %5420 }
 0x40a   :  { %v611_v30 = vmul.f32 %v5421_v29, %v5419_v21 }
 0x40c   :  { %5063 = vmatmul.mubr.msk.f32.vlgmr.msra.gmra.mrb[4].mxu0 %vm612_vm4, %v611_v30 }
 0x40d   :  { %5072 = vmatprep.mubr.msk.f32.mxu0 %vm5947_vm0, %v5946_v1 }
 0x4df   :  { %v686_v31 = vpop.f32.mrb[4].mxu0 }
 0x4e0   :  { %v5064_v32 = vpop.f32.mrb[5].mxu0  ;;  %5068 = vmatmul.mubr.msk.f32.vlgmr.msra.gmra.mrb[4].mxu1 %vm284_vm1, %v686_v31 }
 0x4e1   :  { %5077 = vmatprep.mubr.msk.f32.mxu1 %vm5947_vm0, %v5946_v1 }
 0x5b3   :  { %v770_v34 = vpop.f32.mrb[4].mxu1 }
 0x5b4   :  { %v771_v35 = vadd.f32 %v4832_v33, %v770_v34  ;;  %v5069_v36 = vpop.f32.mrb[5].mxu1 }
 0x5b6   :  { %v774_v37 = vadd.f32 %v771_v35, %v6169_v4 }
 0x5b8   :  { %v778_v38 = vsel %vm777_vm5, %v774_v37, 0.0 }
 0x5b9   :  { %779 = vadd.xlane.f32.xlu1 %v778_v38  ;;  %v6210_v38 = vld [vmem:[#allocation24] sm:$0x1] }
 0x646   :  { %v780_v39 = vpop.xlane.xlu1 %779 }
 0x647   :  { %v782_v40 = vmul.f32 0.125, %v780_v39 }
 0x649   :  { %v783_v41 = vsub.f32 %v774_v37, %v782_v40  ;;  %v6213_v40 = vld [vmem:[%s6641_s12] sm:$0x1] }
 0x64b   :  { %v784_v42 = vmul.f32 %v783_v41, %v783_v41 }
 0x64d   :  { %v785_v43 = vsel %vm777_vm5, %v784_v42, 0.0 }
 0x64e   :  { %786 = vadd.xlane.f32.xlu1 %v785_v43 }
 0x6db   :  { %v787_v45 = vpop.xlane.xlu1 %786 }
 0x6dc   :  { %v788_v46 = vmul.f32 0.125, %v787_v45 }
 0x6de   :  { %v789_v47 = vadd.f32 1e-05, %v788_v46 }
 0x6e0   :  { %5422 = vrsqrt.f32 %v789_v47 }
 0x6ea   :  { %v5423_v48 = vpop.eup %5422 }
 0x6eb   :  { %v791_v50 = vmul.f32 %v5423_v48, %v783_v41 }
 0x6ed   :  { %v798_v52 = vmul.f32 %v4835_v49, %v791_v50 }
 0x6ef   :  { %v805_v54 = vadd.f32 %v4836_v51, %v798_v52 }
 0x6f1   :  { %v813_v55 = vmul.f32 %v4837_v53, %v805_v54 }
 0x6f3   :  { %v814_v56 = vsel %vm777_vm5, %v813_v55, 0.0 }
 0x6f4   :  { %815 = vadd.xlane.f32.xlu0 %v814_v56 }
 0x781   :  { %v816_v58 = vpop.xlane.xlu0 %815 }
 0x782   :  { %v820_v59 = vadd.f32 %v819_v57, %v816_v58 }
 0x784   :  { %v821_v61 = vmax.f32 %v820_v59, 0.0 }
 0x786   :  { %v829_v63 = vmul.f32 %v4838_v60, %v821_v61 }
 0x788   :  { %v837_v0 = vadd.f32 %v4839_v62, %v829_v63 }
 0x78a   :  { %v838_v2 = vadd.f32 %v837_v0, %v805_v54 }
 0x78c   :  { %v841_v3 = vsel %vm777_vm5, %v838_v2, 0.0 }
 0x78d   :  { %842 = vadd.xlane.f32.xlu1 %v841_v3 }
 0x81a   :  { %v843_v4 = vpop.xlane.xlu1 %842 }
 0x81b   :  { %v844_v5 = vmul.f32 0.125, %v843_v4 }
 0x81d   :  { %v845_v6 = vsub.f32 %v838_v2, %v844_v5 }
 0x81f   :  { %v846_v7 = vmul.f32 %v845_v6, %v845_v6 }
 0x821   :  { %v847_v8 = vsel %vm777_vm5, %v846_v7, 0.0 }
 0x822   :  { %848 = vadd.xlane.f32.xlu0 %v847_v8 }
 0x8af   :  { %v849_v9 = vpop.xlane.xlu0 %848 }
 0x8b0   :  { %v850_v10 = vmul.f32 0.125, %v849_v9 }
 0x8b2   :  { %v851_v11 = vadd.f32 1e-05, %v850_v10 }
 0x8b4   :  { %5424 = vrsqrt.f32 %v851_v11 }
 0x8be   :  { %v5425_v12 = vpop.eup %5424 }
 0x8bf   :  { %v853_v14 = vmul.f32 %v5425_v12, %v845_v6 }
 0x8c1   :  { %v860_v16 = vmul.f32 %v4840_v13, %v853_v14 }
 0x8c3   :  { %v867_v17 = vadd.f32 %v4841_v15, %v860_v16 }
 0x8c5   :  { %v868_v18 = vsel %vm777_vm5, %v867_v17, 0.0 }
 0x8c6   :  { %869 = vadd.xlane.f32.xlu1 %v868_v18 }
 0x953   :  { %v870_v19 = vpop.xlane.xlu1 %869 }
 0x954   :  { %v871_v20 = vrot.slane %v870_v19, 4 }
 0x956   :  { %v872_v21 = vadd.f32 %v871_v20, %v870_v19 }
 0x958   :  { %v873_v22 = vrot.slane %v872_v21, 2 }
 0x95a   :  { %v874_v23 = vadd.f32 %v873_v22, %v872_v21 }
 0x95c   :  { %v875_v24 = vrot.slane %v874_v23, 1 }
 0x95e   :  { %v876_v25 = vadd.f32 %v875_v24, %v874_v23 }
 0x960   :  { %5288 = vpush %v876_v25 }
 0x991   :  { %s5289_s14 = spop %5288 }
 0x992   :  { %s880_s18 = smul.f32 0.03125, %s5289_s14  ;;  %s5950_s14 = smov 125  }
 0x994   :  { %v881_v26 = vstv %s880_s18  ;;  %s6642_s18 = sld [smem:[#allocation38_spill]] }
 0x995   :  { %v882_v27 = vsub.f32 %v867_v17, %v881_v26 }
 0x997   :  { %v883_v28 = vmul.f32 %v882_v27, %v882_v27 }
 0x999   :  { %v884_v29 = vsel %vm777_vm5, %v883_v28, 0.0 }
 0x99a   :  { %885 = vadd.xlane.f32.xlu0 %v884_v29 }
 0xa27   :  { %v886_v30 = vpop.xlane.xlu0 %885 }
 0xa28   :  { %v887_v31 = vrot.slane %v886_v30, 4 }
 0xa2a   :  { %v888_v32 = vadd.f32 %v887_v31, %v886_v30 }
 0xa2c   :  { %v889_v33 = vrot.slane %v888_v32, 2 }
 0xa2e   :  { %v890_v34 = vadd.f32 %v889_v33, %v888_v32 }
 0xa30   :  { %v891_v35 = vrot.slane %v890_v34, 1 }
 0xa32   :  { %v892_v36 = vadd.f32 %v891_v35, %v890_v34 }
 0xa34   :  { %5290 = vpush %v892_v36 }
 0xa65   :  { %s5291_s23 = spop %5290 }
 0xa66   :  { %s896_s26 = smul.f32 0.03125, %s5291_s23  ;;  %s6643_s23 = sld [smem:[#allocation39_spill]] }
 0xa68   :  { %s897_s21 = sadd.f32 1e-05, %s896_s26 }
 0xa6a   :  { %v898_v37 = vstv %s897_s21 }
 0xa6b   :  { %5426 = vrsqrt.f32 %v898_v37 }
 0xa75   :  { %v5427_v39 = vpop.eup %5426 }
 0xa76   :  { %5292 = vpush %v5427_v39 }
 0xa77   :  { %5294 = vpush %v6210_v38 }
 0xa78   :  { %5296 = vpush %v6213_v40 }
 0xaa7   :  { %s5293_s7 = spop %5292 }
 0xaa8   :  { %v901_v41 = vstv %s5293_s7  ;;  %s5295_s24 = spop %5294 }
 0xaa9   :  { %v902_v42 = vmul.f32 %v901_v41, %v882_v27  ;;  %v905_v43 = vstv %s5295_s24  ;;  %s5297_s13 = spop %5296 }
 0xaaa   :  { %v909_v44 = vstv %s5297_s13 }
 0xaab   :  { %v906_v45 = vmul.f32 %v905_v43, %v902_v42 }
 0xaad   :  { %v910_v46 = vadd.f32 %v909_v44, %v906_v45 }
 0xaaf   :  { %v911_v47 = vmax.f32 %v910_v46, 0.0 }
 0xab1   :  { %v912_v48 = vsel %vm777_vm5, %v911_v47, 0.0 }
 0xab2   :  { %913 = vadd.xlane.f32.xlu1 %v912_v48 }
 0xac3   :  { %948 = vrot.lane.b32.xlu1 %v6210_v38, %s5948_s8 }
 0xb3f   :  { %v914_v49 = vpop.xlane.xlu1 %913 }
 0xb40   :  { %v915_v50 = vrot.slane %v914_v49, 4 }
 0xb42   :  { %v916_v51 = vadd.f32 %v915_v50, %v914_v49 }
 0xb43   :  { %v949_v5 = vpop.permute.xlu1 %948 }
 0xb44   :  { %v917_v52 = vrot.slane %v916_v51, 2 }
 0xb46   :  { %v918_v53 = vadd.f32 %v917_v52, %v916_v51 }
 0xb48   :  { %v919_v54 = vrot.slane %v918_v53, 1 }
 0xb4a   :  { %v920_v55 = vadd.f32 %v919_v54, %v918_v53 }
 0xb4c   :  { %5298 = vpush %v920_v55 }
 0xb7d   :  { %s5299_s28 = spop %5298 }
 0xb7e   :  { %s924_s2 = smul.f32 0.03125, %s5299_s28  ;;  %s6644_s28 = sld [smem:[#allocation40_spill]] }
 0xb80   :  { %v925_v56 = vstv %s924_s2  ;;  %s6645_s2 = sld [smem:[#allocation41_spill]] }
 0xb81   :  { %v926_v57 = vsub.f32 %v911_v47, %v925_v56 }
 0xb83   :  { %v927_v58 = vmul.f32 %v926_v57, %v926_v57 }
 0xb85   :  { %v928_v59 = vsel %vm777_vm5, %v927_v58, 0.0 }
 0xb86   :  { %929 = vadd.xlane.f32.xlu0 %v928_v59 }
 0xb9c   :  { %955 = vrot.lane.b32.xlu0 %v6213_v40, %s5948_s8 }
 0xc13   :  { %v930_v60 = vpop.xlane.xlu0 %929 }
 0xc14   :  { %v931_v61 = vrot.slane %v930_v60, 4 }
 0xc16   :  { %v932_v62 = vadd.f32 %v931_v61, %v930_v60  ;;  %v6236_v61 = vld [vmem:[%s6642_s18] sm:$0xff] }
 0xc17   :  { %v956_v7 = vpop.permute.xlu0 %955  ;;  %5071 = vmatpush3.xpose.msk.msra.mxu0 %vm284_vm1, %v6236_v61 }
 0xc18   :  { %v933_v63 = vrot.slane %v932_v62, 2  ;;  %5080 = vmatprep.subr.mxu0 %v5946_v1 }
 0xc1a   :  { %v934_v0 = vadd.f32 %v933_v63, %v932_v62  ;;  %v6239_v62 = vld [vmem:[%s6643_s23] sm:$0xff] }
 0xc1b   :  { %5076 = vmatpush3.xpose.msk.msra.mxu1 %vm284_vm1, %v6239_v62 }
 0xc1c   :  { %v935_v2 = vrot.slane %v934_v0, 1  ;;  %5085 = vmatprep.subr.mxu1 %v5946_v1 }
 0xc1e   :  { %v936_v3 = vadd.f32 %v935_v2, %v934_v0 }
 0xc20   :  { %5300 = vpush %v936_v3 }
 0xc51   :  { %s5301_s6 = spop %5300 }
 0xc52   :  { %s940_s3 = smul.f32 0.03125, %s5301_s6 }
 0xc54   :  { %s941_s10 = sadd.f32 1e-05, %s940_s3  ;;  %s6646_s3 = sld [smem:[#allocation42_spill]] }
 0xc56   :  { %v942_v4 = vstv %s941_s10 }
 0xc57   :  { %5428 = vrsqrt.f32 %v942_v4 }
 0xc61   :  { %v5429_v6 = vpop.eup %5428 }
 0xc62   :  { %5302 = vpush %v5429_v6 }
 0xc63   :  { %5304 = vpush %v949_v5 }
 0xc64   :  { %5306 = vpush %v956_v7 }
 0xc93   :  { %s5303_s19 = spop %5302 }
 0xc94   :  { %v945_v8 = vstv %s5303_s19  ;;  %s5305_s11 = spop %5304  ;;  %s6647_s19 = sld [smem:[#allocation43_spill]] }
 0xc95   :  { %v946_v9 = vmul.f32 %v945_v8, %v926_v57  ;;  %v952_v10 = vstv %s5305_s11  ;;  %s5307_s29 = spop %5306 }
 0xc96   :  { %v959_v11 = vstv %s5307_s29  ;;  %s6648_s29 = sld [smem:[#allocation44_spill]] }
 0xc97   :  { %v953_v12 = vmul.f32 %v952_v10, %v946_v9 }
 0xc99   :  { %v960_v13 = vadd.f32 %v959_v11, %v953_v12 }
 0xc9b   :  { %v961_v14 = vmax.f32 %v960_v13, 0.0  ;;  %v6248_v13 = vld [vmem:[%s6644_s28] sm:$0xff] }
 0xc9d   :  { %v962_v15 = vsel %vm777_vm5, %v961_v14, 0.0 }
 0xc9e   :  { %963 = vadd.xlane.f32.xlu1 %v962_v15  ;;  %v6264_v15 = vld [vmem:[%s6646_s3] sm:$0xff] }
 0xcaf   :  { %997 = vrot.lane.b32.xlu1 %v6210_v38, %s5949_s27 }
 0xd2b   :  { %v964_v16 = vpop.xlane.xlu1 %963 }
 0xd2c   :  { %v965_v17 = vrot.slane %v964_v16, 4 }
 0xd2e   :  { %v966_v18 = vadd.f32 %v965_v17, %v964_v16  ;;  %v6267_v16 = vld [vmem:[%s6647_s19] sm:$0xff] }
 0xd2f   :  { %v998_v35 = vpop.permute.xlu1 %997  ;;  %v6282_v17 = vld [vmem:[%s6648_s29] sm:$0xff] }
 0xd30   :  { %v967_v19 = vrot.slane %v966_v18, 2 }
 0xd32   :  { %v968_v20 = vadd.f32 %v967_v19, %v966_v18  ;;  %v6285_v18 = vld [vmem:[%s6090_s15] sm:$0xff] }
 0xd34   :  { %v969_v21 = vrot.slane %v968_v20, 1 }
 0xd36   :  { %v970_v22 = vadd.f32 %v969_v21, %v968_v20 }
 0xd38   :  { %5308 = vpush %v970_v22 }
 0xd69   :  { %s5309_s30 = spop %5308 }
 0xd6a   :  { %s974_s25 = smul.f32 0.03125, %s5309_s30 }
 0xd6c   :  { %v975_v23 = vstv %s974_s25 }
 0xd6d   :  { %v976_v24 = vsub.f32 %v961_v14, %v975_v23  ;;  %v6251_v14 = vld [vmem:[%s6645_s2] sm:$0xff] }
 0xd6f   :  { %v977_v25 = vmul.f32 %v976_v24, %v976_v24 }
 0xd71   :  { %v978_v26 = vsel %vm777_vm5, %v977_v25, 0.0 }
 0xd72   :  { %979 = vadd.xlane.f32.xlu0 %v978_v26 }
 0xd88   :  { %1003 = vrot.lane.b32.xlu0 %v6213_v40, %s5949_s27 }
 0xdff   :  { %v980_v27 = vpop.xlane.xlu0 %979 }
 0xe00   :  { %v981_v28 = vrot.slane %v980_v27, 4 }
 0xe02   :  { %v982_v29 = vadd.f32 %v981_v28, %v980_v27 }
 0xe03   :  { %v1004_v37 = vpop.permute.xlu0 %1003 }
 0xe04   :  { %v983_v30 = vrot.slane %v982_v29, 2 }
 0xe06   :  { %v984_v31 = vadd.f32 %v983_v30, %v982_v29 }
 0xe08   :  { %v985_v32 = vrot.slane %v984_v31, 1 }
 0xe0a   :  { %v986_v33 = vadd.f32 %v985_v32, %v984_v31 }
 0xe0c   :  { %5310 = vpush %v986_v33 }
 0xe3d   :  { %s5311_s16 = spop %5310 }
 0xe3e   :  { %s990_s0 = smul.f32 0.03125, %s5311_s16 }
 0xe40   :  { %s991_s20 = sadd.f32 1e-05, %s990_s0 }
 0xe42   :  { %v992_v34 = vstv %s991_s20 }
 0xe43   :  { %5430 = vrsqrt.f32 %v992_v34 }
 0xe4d   :  { %v5431_v36 = vpop.eup %5430 }
 0xe4e   :  { %5312 = vpush %v5431_v36 }
 0xe4f   :  { %5314 = vpush %v998_v35 }
 0xe50   :  { %5316 = vpush %v1004_v37 }
 0xe7f   :  { %s5313_s4 = spop %5312 }
 0xe80   :  { %v995_v39 = vstv %s5313_s4  ;;  %s5315_s17 = spop %5314 }
 0xe81   :  { %v996_v41 = vmul.f32 %v995_v39, %v976_v24  ;;  %v1001_v42 = vstv %s5315_s17  ;;  %s5317_s5 = spop %5316 }
 0xe82   :  { %v1007_v43 = vstv %s5317_s5 }
 0xe83   :  { %v1002_v44 = vmul.f32 %v1001_v42, %v996_v41 }
 0xe85   :  { %v1008_v45 = vadd.f32 %v1007_v43, %v1002_v44 }
 0xe87   :  { %v1009_v46 = vmax.f32 %v1008_v45, 0.0 }
 0xe89   :  { %v1010_v47 = vsel %vm777_vm5, %v1009_v46, 0.0 }
 0xe8a   :  { %1011 = vadd.xlane.f32.xlu1 %v1010_v47 }
 0xe9b   :  { %1045 = vrot.lane.b32.xlu1 %v6210_v38, %s5950_s14 }
 0xf17   :  { %v1012_v48 = vpop.xlane.xlu1 %1011 }
 0xf18   :  { %v1013_v49 = vrot.slane %v1012_v48, 4 }
 0xf1a   :  { %v1014_v50 = vadd.f32 %v1013_v49, %v1012_v48 }
 0xf1b   :  { %v1046_v4 = vpop.permute.xlu1 %1045 }
 0xf1c   :  { %v1015_v51 = vrot.slane %v1014_v50, 2 }
 0xf1e   :  { %v1016_v52 = vadd.f32 %v1015_v51, %v1014_v50 }
 0xf20   :  { %v1017_v53 = vrot.slane %v1016_v52, 1 }
 0xf22   :  { %v1018_v54 = vadd.f32 %v1017_v53, %v1016_v52 }
 0xf24   :  { %5318 = vpush %v1018_v54 }
 0xf55   :  { %s5319_s26 = spop %5318 }
 0xf56   :  { %s1022_s21 = smul.f32 0.03125, %s5319_s26 }
 0xf58   :  { %v1023_v55 = vstv %s1022_s21 }
 0xf59   :  { %v1024_v56 = vsub.f32 %v1009_v46, %v1023_v55 }
 0xf5b   :  { %v1025_v57 = vmul.f32 %v1024_v56, %v1024_v56 }
 0xf5d   :  { %v1026_v58 = vsel %vm777_vm5, %v1025_v57, 0.0 }
 0xf5e   :  { %1027 = vadd.xlane.f32.xlu0 %v1026_v58 }
 0xf74   :  { %1051 = vrot.lane.b32.xlu0 %v6213_v40, %s5950_s14 }
 0xfeb   :  { %v1028_v38 = vpop.xlane.xlu0 %1027 }
 0xfec   :  { %v1029_v59 = vrot.slane %v1028_v38, 4 }
 0xfee   :  { %v1030_v60 = vadd.f32 %v1029_v59, %v1028_v38 }
 0xfef   :  { %v1052_v6 = vpop.permute.xlu0 %1051 }
 0xff0   :  { %v1031_v63 = vrot.slane %v1030_v60, 2 }
 0xff2   :  { %v1032_v0 = vadd.f32 %v1031_v63, %v1030_v60 }
 0xff4   :  { %v1033_v40 = vrot.slane %v1032_v0, 1 }
 0xff6   :  { %v1034_v2 = vadd.f32 %v1033_v40, %v1032_v0 }
 0xff8   :  { %5320 = vpush %v1034_v2 }
0x1029   :  { %s5321_s7 = spop %5320 }
0x102a   :  { %s1038_s24 = smul.f32 0.03125, %s5321_s7 }
0x102c   :  { %s1039_s13 = sadd.f32 1e-05, %s1038_s24 }
0x102e   :  { %v1040_v3 = vstv %s1039_s13 }
0x102f   :  { %5432 = vrsqrt.f32 %v1040_v3 }
0x1039   :  { %v5433_v5 = vpop.eup %5432 }
0x103a   :  { %5322 = vpush %v5433_v5 }
0x103b   :  { %5324 = vpush %v1046_v4 }
0x103c   :  { %5326 = vpush %v1052_v6 }
0x106b   :  { %s5323_s6 = spop %5322 }
0x106c   :  { %v1043_v7 = vstv %s5323_s6  ;;  %s5325_s10 = spop %5324 }
0x106d   :  { %v1044_v8 = vmul.f32 %v1043_v7, %v1024_v56  ;;  %v1049_v9 = vstv %s5325_s10  ;;  %s5327_s11 = spop %5326 }
0x106e   :  { %v1055_v10 = vstv %s5327_s11 }
0x106f   :  { %v1050_v11 = vmul.f32 %v1049_v9, %v1044_v8 }
0x1071   :  { %v1056_v12 = vadd.f32 %v1055_v10, %v1050_v11 }
0x1073   :  { %5073 = vmatmul.mubr.msk.f32.vlgmr.msra.gmra.mrb[6].mxu0 %vm284_vm1, %v1056_v12  ;;  %5078 = vmatmul.mubr.msk.f32.vlgmr.msra.gmra.mrb[6].mxu1 %vm284_vm1, %v1056_v12 }
0x1074   :  { %5081 = vmatpush3.xpose.msk.msra.mxu0 %vm284_vm1, %v6248_v13  ;;  %5086 = vmatpush3.xpose.msk.msra.mxu1 %vm284_vm1, %v6251_v14 }
0x1075   :  { %5082 = vmatprep.mubr.msk.f32.mxu0 %vm5947_vm0, %v5946_v1  ;;  %5087 = vmatprep.mubr.msk.f32.mxu1 %vm5947_vm0, %v5946_v1 }
0x1076   :  { %5090 = vmatprep.subr.mxu0 %v5946_v1  ;;  %5095 = vmatprep.subr.mxu1 %v5946_v1 }
0x1077   :  { %5083 = vmatmul.mubr.msk.f32.vlgmr.msra.gmra.mrb[8].mxu0 %vm284_vm1, %v1056_v12  ;;  %5088 = vmatmul.mubr.msk.f32.vlgmr.msra.gmra.mrb[8].mxu1 %vm284_vm1, %v1056_v12 }
0x1078   :  { %5091 = vmatpush3.xpose.msk.msra.mxu0 %vm284_vm1, %v6264_v15  ;;  %5096 = vmatpush3.xpose.msk.msra.mxu1 %vm284_vm1, %v6267_v16 }
0x1079   :  { %5092 = vmatprep.mubr.msk.f32.mxu0 %vm5947_vm0, %v5946_v1  ;;  %5097 = vmatprep.mubr.msk.f32.mxu1 %vm5947_vm0, %v5946_v1 }
0x107a   :  { %5100 = vmatprep.subr.mxu0 %v5946_v1  ;;  %5105 = vmatprep.subr.mxu1 %v5946_v1 }
0x107b   :  { %5093 = vmatmul.mubr.f32.vlgmr.msra.gmra.mrb[10].mxu0 %v5946_v1  ;;  %5098 = vmatmul.mubr.f32.vlgmr.msra.gmra.mrb[10].mxu1 %v5946_v1 }
0x107c   :  { %5101 = vmatpush3.xpose.msk.msra.mxu0 %vm284_vm1, %v6282_v17  ;;  %5106 = vmatpush3.xpose.msk.msra.mxu1 %vm284_vm1, %v6285_v18 }
0x107d   :  { %5102 = vmatprep.mubr.msk.f32.mxu0 %vm5947_vm0, %v5946_v1  ;;  %5107 = vmatprep.mubr.msk.f32.mxu1 %vm5947_vm0, %v5946_v1 }
0x107e   :  { %5110 = vmatprep.subr.mxu0 %v5946_v1  ;;  %5115 = vmatprep.subr.mxu1 %v5946_v1 }
0x107f   :  { %5103 = vmatmul.mubr.f32.vlgmr.msra.gmra.mrb[12].mxu0 %v5946_v1  ;;  %5108 = vmatmul.mubr.f32.vlgmr.msra.gmra.mrb[12].mxu1 %v5946_v1 }
0x1080   :  { %5111 = vmatpush3.xpose.msk.msra.mxu0 %vm284_vm1, %v6264_v15  ;;  %5116 = vmatpush3.xpose.msk.msra.mxu1 %vm284_vm1, %v6267_v16 }
0x1081   :  { %5112 = vmatprep.mubr.msk.f32.mxu0 %vm5947_vm0, %v5946_v1  ;;  %5117 = vmatprep.mubr.msk.f32.mxu1 %vm5947_vm0, %v5946_v1 }
0x1082   :  { %5120 = vmatprep.subr.mxu0 %v5946_v1  ;;  %5125 = vmatprep.subr.mxu1 %v5946_v1 }
0x1146   :  { %v6313_v19 = vpop.f32.mrb[6].mxu0  ;;  %v6315_v20 = vpop.f32.mrb[6].mxu1 }
0x1147   :  { %v5074_v21 = vpop.f32.mrb[7].mxu0  ;;  %v5079_v22 = vpop.f32.mrb[7].mxu1 }
0x114a   :  { %v6317_v23 = vpop.f32.mrb[8].mxu0  ;;  %v6319_v24 = vpop.f32.mrb[8].mxu1 }
0x114b   :  { %v5084_v25 = vpop.f32.mrb[9].mxu0  ;;  %v5089_v26 = vpop.f32.mrb[9].mxu1 }
0x114e   :  { %v1429_v27 = vpop.f32.mrb[10].mxu0  ;;  %v1510_v28 = vpop.f32.mrb[10].mxu1 }
0x114f   :  { %v1433_v29 = vadd.f32 %v1429_v27, %v6313_v19  ;;  %v1514_v30 = vadd.f32 %v1510_v28, %v6315_v20  ;;  %v5094_v31 = vpop.f32.mrb[11].mxu0  ;;  %v5099_v32 = vpop.f32.mrb[11].mxu1 }
0x1151   :  { %v4851_v33 = vmul.f32 -1.442695, %v1433_v29  ;;  %v4853_v34 = vmul.f32 -1.442695, %v1514_v30 }
0x1152   :  { %v1591_v35 = vpop.f32.mrb[12].mxu0  ;;  %v1667_v36 = vpop.f32.mrb[12].mxu1 }
0x1153   :  { %5434 = vpow2.f32 %v4851_v33  ;;  %v1595_v37 = vadd.f32 %v1591_v35, %v6317_v23  ;;  %v1671_v39 = vadd.f32 %v1667_v36, %v6319_v24  ;;  %v5104_v41 = vpop.f32.mrb[13].mxu0  ;;  %v5109_v42 = vpop.f32.mrb[13].mxu1 }
0x1154   :  { %5436 = vpow2.f32 %v4853_v34 }
0x1155   :  { %v4856_v43 = vmul.f32 -1.442695, %v1671_v39 }
0x1157   :  { %5438 = vpow2.f32 %v4856_v43 }
0x1158   :  { %5440 = vtanh.f32 %v1595_v37 }
0x115d   :  { %v5435_v44 = vpop.eup %5434 }
0x115e   :  { %v5437_v45 = vpop.eup %5436  ;;  %v1437_v46 = vadd.f32 1.0, %v5435_v44 }
0x115f   :  { %v1518_v47 = vadd.f32 1.0, %v5437_v45 }
0x1160   :  { %5442 = vrcp.f32 %v1437_v46 }
0x1161   :  { %5444 = vrcp.f32 %v1518_v47  ;;  %v5439_v48 = vpop.eup %5438 }
0x1162   :  { %v5441_v49 = vpop.eup %5440  ;;  %v1675_v53 = vadd.f32 1.0, %v5439_v48 }
0x1164   :  { %5446 = vrcp.f32 %v1675_v53 }
0x116a   :  { %v5443_v50 = vpop.eup %5442 }
0x116b   :  { %v5445_v51 = vpop.eup %5444  ;;  %v1679_v52 = vmul.f32 %v5443_v50, %v5441_v49 }
0x116c   :  { %v1678_v54 = vmul.f32 0.0, %v5445_v51 }
0x116e   :  { %v1680_v55 = vadd.f32 %v1679_v52, %v1678_v54  ;;  %v5447_v56 = vpop.eup %5446 }
0x1170   :  { %5448 = vtanh.f32 %v1680_v55  ;;  %v2020_v32 = vrot.slane %v1680_v55, 7 }
0x117a   :  { %v5449_v57 = vpop.eup %5448 }
0x117b   :  { %v1682_v58 = vmul.f32 %v5449_v57, %v5447_v56 }
0x117d   :  { %1684 = vst.msk [vmem:[#allocation2] sm:$0x1] %vm1683_vm6, %v1682_v58  ;;  %5113 = vmatmul.mubr.msk.f32.vlgmr.msra.gmra.mrb[14].mxu0 %vm284_vm1, %v1682_v58  ;;  %5118 = vmatmul.mubr.msk.f32.vlgmr.msra.gmra.mrb[14].mxu1 %vm284_vm1, %v1682_v58 }
0x117e   :  { %5121 = vmatpush3.xpose.msk.msra.mxu0 %vm284_vm1, %v6282_v17  ;;  %5126 = vmatpush3.xpose.msk.msra.mxu1 %vm284_vm1, %v6285_v18 }
0x117f   :  { %5122 = vmatprep.mubr.msk.f32.mxu0 %vm5947_vm0, %v5946_v1  ;;  %5127 = vmatprep.mubr.msk.f32.mxu1 %vm5947_vm0, %v5946_v1 }
0x1180   :  { %5130 = vmatprep.subr.mxu0 %v5946_v1  ;;  %5135 = vmatprep.subr.mxu1 %v5946_v1 }
0x1181   :  { %5123 = vmatmul.mubr.msk.f32.vlgmr.msra.gmra.mrb[16].mxu0 %vm284_vm1, %v1682_v58  ;;  %5128 = vmatmul.mubr.msk.f32.vlgmr.msra.gmra.mrb[16].mxu1 %vm284_vm1, %v1682_v58 }
0x1182   :  { %5131 = vmatpush3.xpose.msk.msra.mxu0 %vm284_vm1, %v6264_v15  ;;  %5136 = vmatpush3.xpose.msk.msra.mxu1 %vm284_vm1, %v6267_v16 }
0x1183   :  { %5132 = vmatprep.mubr.msk.f32.mxu0 %vm5947_vm0, %v5946_v1  ;;  %5137 = vmatprep.mubr.msk.f32.mxu1 %vm5947_vm0, %v5946_v1 }
0x1184   :  { %5140 = vmatprep.subr.mxu0 %v5946_v1  ;;  %5145 = vmatprep.subr.mxu1 %v5946_v1 }
0x1250   :  { %v1758_v38 = vpop.f32.mrb[14].mxu0  ;;  %v1842_v59 = vpop.f32.mrb[14].mxu1 }
0x1251   :  { %v1763_v60 = vrot.slane %v1758_v38, 7  ;;  %v1847_v63 = vrot.slane %v1842_v59, 7  ;;  %v5114_v0 = vpop.f32.mrb[15].mxu0  ;;  %v5119_v40 = vpop.f32.mrb[15].mxu1 }
0x1253   :  { %v1765_v2 = vadd.f32 %v1763_v60, %v6313_v19  ;;  %v1849_v3 = vadd.f32 %v1847_v63, %v6315_v20 }
0x1254   :  { %v1926_v4 = vpop.f32.mrb[16].mxu0  ;;  %v2005_v5 = vpop.f32.mrb[16].mxu1 }
0x1255   :  { %v4859_v6 = vmul.f32 -1.442695, %v1765_v2  ;;  %v4862_v7 = vmul.f32 -1.442695, %v1849_v3  ;;  %v1931_v8 = vrot.slane %v1926_v4, 7  ;;  %v2010_v9 = vrot.slane %v2005_v5, 7 }
0x1256   :  { %v5124_v10 = vpop.f32.mrb[17].mxu0  ;;  %v5129_v11 = vpop.f32.mrb[17].mxu1 }
0x1257   :  { %5450 = vpow2.f32 %v4859_v6  ;;  %v1933_v12 = vadd.f32 %v1931_v8, %v6317_v23  ;;  %v2012_v21 = vadd.f32 %v2010_v9, %v6319_v24 }
0x1258   :  { %5452 = vpow2.f32 %v4862_v7 }
0x1259   :  { %v4867_v22 = vmul.f32 -1.442695, %v2012_v21 }
0x125b   :  { %5454 = vpow2.f32 %v4867_v22 }
0x125c   :  { %5456 = vtanh.f32 %v1933_v12 }
0x1261   :  { %v5451_v25 = vpop.eup %5450 }
0x1262   :  { %v5453_v26 = vpop.eup %5452  ;;  %v1769_v27 = vadd.f32 1.0, %v5451_v25 }
0x1263   :  { %v1853_v28 = vadd.f32 1.0, %v5453_v26 }
0x1264   :  { %5458 = vrcp.f32 %v1769_v27 }
0x1265   :  { %5460 = vrcp.f32 %v1853_v28  ;;  %v5455_v29 = vpop.eup %5454 }
0x1266   :  { %v5457_v30 = vpop.eup %5456  ;;  %v2016_v35 = vadd.f32 1.0, %v5455_v29 }
0x1268   :  { %5462 = vrcp.f32 %v2016_v35 }
0x126e   :  { %v5459_v31 = vpop.eup %5458 }
0x126f   :  { %v5461_v33 = vpop.eup %5460  ;;  %v2023_v34 = vmul.f32 %v5459_v31, %v5457_v30 }
0x1270   :  { %v2022_v36 = vmul.f32 %v5461_v33, %v2020_v32 }
0x1272   :  { %v2024_v37 = vadd.f32 %v2023_v34, %v2022_v36  ;;  %v5463_v39 = vpop.eup %5462 }
0x1274   :  { %5464 = vtanh.f32 %v2024_v37  ;;  %v2365_v7 = vrot.slane %v2024_v37, 7 }
0x127e   :  { %v5465_v41 = vpop.eup %5464 }
0x127f   :  { %v2026_v42 = vmul.f32 %v5465_v41, %v5463_v39 }
0x1281   :  { %2028 = vst.msk [vmem:[#allocation2] sm:$0x2] %vm2027_vm7, %v2026_v42  ;;  %v2031_v43 = vrot.slane %v2026_v42, 1 }
0x1283   :  { %5133 = vmatmul.mubr.msk.f32.vlgmr.msra.gmra.mrb[18].mxu0 %vm284_vm1, %v2031_v43  ;;  %5138 = vmatmul.mubr.msk.f32.vlgmr.msra.gmra.mrb[18].mxu1 %vm284_vm1, %v2031_v43 }
0x1284   :  { %5141 = vmatpush3.xpose.msk.msra.mxu0 %vm284_vm1, %v6282_v17  ;;  %5146 = vmatpush3.xpose.msk.msra.mxu1 %vm284_vm1, %v6285_v18 }
0x1285   :  { %5142 = vmatprep.mubr.msk.f32.mxu0 %vm5947_vm0, %v5946_v1  ;;  %5147 = vmatprep.mubr.msk.f32.mxu1 %vm5947_vm0, %v5946_v1 }
0x1286   :  { %5150 = vmatprep.subr.mxu0 %v5946_v1  ;;  %5155 = vmatprep.subr.mxu1 %v5946_v1 }
0x1287   :  { %5143 = vmatmul.mubr.msk.f32.vlgmr.msra.gmra.mrb[20].mxu0 %vm284_vm1, %v2031_v43  ;;  %5148 = vmatmul.mubr.msk.f32.vlgmr.msra.gmra.mrb[20].mxu1 %vm284_vm1, %v2031_v43 }
0x1288   :  { %5151 = vmatpush3.xpose.msk.msra.mxu0 %vm284_vm1, %v6264_v15  ;;  %5156 = vmatpush3.xpose.msk.msra.mxu1 %vm284_vm1, %v6267_v16 }
0x1289   :  { %5152 = vmatprep.mubr.msk.f32.mxu0 %vm5947_vm0, %v5946_v1  ;;  %5157 = vmatprep.mubr.msk.f32.mxu1 %vm5947_vm0, %v5946_v1 }
0x128a   :  { %5160 = vmatprep.subr.mxu0 %v5946_v1  ;;  %5165 = vmatprep.subr.mxu1 %v5946_v1 }
0x1356   :  { %v2103_v44 = vpop.f32.mrb[18].mxu0  ;;  %v2187_v45 = vpop.f32.mrb[18].mxu1 }
0x1357   :  { %v2108_v46 = vrot.slane %v2103_v44, 6  ;;  %v2192_v47 = vrot.slane %v2187_v45, 6  ;;  %v5134_v48 = vpop.f32.mrb[19].mxu0  ;;  %v5139_v49 = vpop.f32.mrb[19].mxu1 }
0x1359   :  { %v2110_v50 = vadd.f32 %v2108_v46, %v6313_v19  ;;  %v2194_v51 = vadd.f32 %v2192_v47, %v6315_v20 }
0x135a   :  { %v2271_v52 = vpop.f32.mrb[20].mxu0  ;;  %v2350_v53 = vpop.f32.mrb[20].mxu1 }
0x135b   :  { %v4870_v54 = vmul.f32 -1.442695, %v2110_v50  ;;  %v4873_v55 = vmul.f32 -1.442695, %v2194_v51  ;;  %v2276_v56 = vrot.slane %v2271_v52, 6  ;;  %v2355_v57 = vrot.slane %v2350_v53, 6 }
0x135c   :  { %v5144_v58 = vpop.f32.mrb[21].mxu0  ;;  %v5149_v38 = vpop.f32.mrb[21].mxu1 }
0x135d   :  { %5466 = vpow2.f32 %v4870_v54  ;;  %v2278_v59 = vadd.f32 %v2276_v56, %v6317_v23  ;;  %v2357_v60 = vadd.f32 %v2355_v57, %v6319_v24 }
0x135e   :  { %5468 = vpow2.f32 %v4873_v55 }
0x135f   :  { %v4878_v63 = vmul.f32 -1.442695, %v2357_v60 }
0x1361   :  { %5470 = vpow2.f32 %v4878_v63 }
0x1362   :  { %5472 = vtanh.f32 %v2278_v59 }
0x1367   :  { %v5467_v0 = vpop.eup %5466 }
0x1368   :  { %v5469_v40 = vpop.eup %5468  ;;  %v2114_v2 = vadd.f32 1.0, %v5467_v0 }
0x1369   :  { %v2198_v3 = vadd.f32 1.0, %v5469_v40 }
0x136a   :  { %5474 = vrcp.f32 %v2114_v2 }
0x136b   :  { %5476 = vrcp.f32 %v2198_v3  ;;  %v5471_v4 = vpop.eup %5470 }
0x136c   :  { %v5473_v5 = vpop.eup %5472  ;;  %v2361_v10 = vadd.f32 1.0, %v5471_v4 }
0x136e   :  { %5478 = vrcp.f32 %v2361_v10 }
0x1374   :  { %v5475_v6 = vpop.eup %5474 }
0x1375   :  { %v5477_v8 = vpop.eup %5476  ;;  %v2368_v9 = vmul.f32 %v5475_v6, %v5473_v5 }
0x1376   :  { %v2367_v11 = vmul.f32 %v5477_v8, %v2365_v7 }
0x1378   :  { %v2369_v12 = vadd.f32 %v2368_v9, %v2367_v11  ;;  %v5479_v21 = vpop.eup %5478 }
0x137a   :  { %5480 = vtanh.f32 %v2369_v12  ;;  %v2710_v51 = vrot.slane %v2369_v12, 7 }
0x1384   :  { %v5481_v22 = vpop.eup %5480 }
0x1385   :  { %v2371_v25 = vmul.f32 %v5481_v22, %v5479_v21 }
0x1387   :  { %2373 = vst.msk [vmem:[#allocation2] sm:$0x4] %vm2372_vm8, %v2371_v25  ;;  %v2376_v26 = vrot.slane %v2371_v25, 2 }
0x1389   :  { %5153 = vmatmul.mubr.msk.f32.vlgmr.msra.gmra.mrb[22].mxu0 %vm284_vm1, %v2376_v26  ;;  %5158 = vmatmul.mubr.msk.f32.vlgmr.msra.gmra.mrb[22].mxu1 %vm284_vm1, %v2376_v26 }
0x138a   :  { %5161 = vmatpush3.xpose.msk.msra.mxu0 %vm284_vm1, %v6282_v17  ;;  %5166 = vmatpush3.xpose.msk.msra.mxu1 %vm284_vm1, %v6285_v18 }
0x138b   :  { %5162 = vmatprep.mubr.msk.f32.mxu0 %vm5947_vm0, %v5946_v1  ;;  %5167 = vmatprep.mubr.msk.f32.mxu1 %vm5947_vm0, %v5946_v1 }
0x138c   :  { %5170 = vmatprep.subr.mxu0 %v5946_v1  ;;  %5175 = vmatprep.subr.mxu1 %v5946_v1 }
0x138d   :  { %5163 = vmatmul.mubr.msk.f32.vlgmr.msra.gmra.mrb[24].mxu0 %vm284_vm1, %v2376_v26  ;;  %5168 = vmatmul.mubr.msk.f32.vlgmr.msra.gmra.mrb[24].mxu1 %vm284_vm1, %v2376_v26  ;;  %v6415_v26 = vld [vmem:[#allocation24] sm:$0x1] }
0x138e   :  { %5171 = vmatpush3.xpose.msk.msra.mxu0 %vm284_vm1, %v6236_v61  ;;  %5176 = vmatpush3.xpose.msk.msra.mxu1 %vm284_vm1, %v6239_v62 }
0x138f   :  { %5172 = vmatprep.mubr.msk.f32.mxu0 %vm5947_vm0, %v5946_v1  ;;  %5177 = vmatprep.mubr.msk.f32.mxu1 %vm5947_vm0, %v5946_v1 }
0x1390   :  { %5180 = vmatprep.subr.mxu0 %v5946_v1  ;;  %5185 = vmatprep.subr.mxu1 %v5946_v1 }
0x145c   :  { %v2448_v27 = vpop.f32.mrb[22].mxu0  ;;  %v2532_v28 = vpop.f32.mrb[22].mxu1 }
0x145d   :  { %v2453_v29 = vrot.slane %v2448_v27, 5  ;;  %v2537_v30 = vrot.slane %v2532_v28, 5  ;;  %v5154_v31 = vpop.f32.mrb[23].mxu0  ;;  %v5159_v32 = vpop.f32.mrb[23].mxu1  ;;  %v6418_v28 = vld [vmem:[%s6641_s12] sm:$0x1] }
0x145f   :  { %v2455_v61 = vadd.f32 %v2453_v29, %v6313_v19  ;;  %v2539_v62 = vadd.f32 %v2537_v30, %v6315_v20 }
0x1460   :  { %v2616_v33 = vpop.f32.mrb[24].mxu0  ;;  %v2695_v34 = vpop.f32.mrb[24].mxu1 }
0x1461   :  { %v4881_v35 = vmul.f32 -1.442695, %v2455_v61  ;;  %v4884_v36 = vmul.f32 -1.442695, %v2539_v62  ;;  %v2621_v37 = vrot.slane %v2616_v33, 5  ;;  %v2700_v39 = vrot.slane %v2695_v34, 5 }
0x1462   :  { %v5164_v41 = vpop.f32.mrb[25].mxu0  ;;  %v5169_v42 = vpop.f32.mrb[25].mxu1 }
0x1463   :  { %5482 = vpow2.f32 %v4881_v35  ;;  %v2623_v43 = vadd.f32 %v2621_v37, %v6317_v23  ;;  %v2702_v44 = vadd.f32 %v2700_v39, %v6319_v24 }
0x1464   :  { %5484 = vpow2.f32 %v4884_v36 }
0x1465   :  { %v4889_v45 = vmul.f32 -1.442695, %v2702_v44 }
0x1467   :  { %5486 = vpow2.f32 %v4889_v45 }
0x1468   :  { %5488 = vtanh.f32 %v2623_v43 }
0x146d   :  { %v5483_v46 = vpop.eup %5482 }
0x146e   :  { %v5485_v47 = vpop.eup %5484  ;;  %v2459_v19 = vadd.f32 1.0, %v5483_v46 }
0x146f   :  { %v2543_v20 = vadd.f32 1.0, %v5485_v47 }
0x1470   :  { %5490 = vrcp.f32 %v2459_v19 }
0x1471   :  { %5492 = vrcp.f32 %v2543_v20  ;;  %v5487_v48 = vpop.eup %5486 }
0x1472   :  { %v5489_v49 = vpop.eup %5488  ;;  %v2706_v54 = vadd.f32 1.0, %v5487_v48 }
0x1474   :  { %5494 = vrcp.f32 %v2706_v54 }
0x147a   :  { %v5491_v50 = vpop.eup %5490 }
0x147b   :  { %v5493_v52 = vpop.eup %5492  ;;  %v2713_v53 = vmul.f32 %v5491_v50, %v5489_v49 }
0x147c   :  { %v2712_v23 = vmul.f32 %v5493_v52, %v2710_v51 }
0x147e   :  { %v2714_v55 = vadd.f32 %v2713_v53, %v2712_v23  ;;  %v5495_v24 = vpop.eup %5494 }
0x1480   :  { %5496 = vtanh.f32 %v2714_v55 }
0x148a   :  { %v5497_v56 = vpop.eup %5496 }
0x148b   :  { %v2716_v57 = vmul.f32 %v5497_v56, %v5495_v24 }
0x148d   :  { %2718 = vst.msk [vmem:[#allocation2] sm:$0x8] %vm2717_vm9, %v2716_v57 }
0x1494   :  { %v2719_v58 = vld [vmem:[#allocation2] sm:$0xf] }
0x1495   :  { %v2720_v38 = vsel %vm777_vm5, %v2719_v58, 0.0 }
0x1496   :  { %2721 = vadd.xlane.f32.xlu1 %v2720_v38 }
0x1523   :  { %v2722_v59 = vpop.xlane.xlu1 %2721 }
0x1524   :  { %v2723_v60 = vrot.slane %v2722_v59, 4 }
0x1526   :  { %v2724_v63 = vadd.f32 %v2723_v60, %v2722_v59 }
0x1528   :  { %v2725_v0 = vrot.slane %v2724_v63, 2 }
0x152a   :  { %v2726_v40 = vadd.f32 %v2725_v0, %v2724_v63 }
0x152c   :  { %v2727_v2 = vrot.slane %v2726_v40, 1 }
0x152e   :  { %v2728_v3 = vadd.f32 %v2727_v2, %v2726_v40 }
0x1530   :  { %5328 = vpush %v2728_v3 }
0x1561   :  { %s5329_s30 = spop %5328 }
0x1562   :  { %s2732_s25 = smul.f32 0.03125, %s5329_s30 }
0x1564   :  { %v2733_v4 = vstv %s2732_s25 }
0x1565   :  { %v2734_v5 = vsub.f32 %v2719_v58, %v2733_v4 }
0x1567   :  { %v2735_v6 = vmul.f32 %v2734_v5, %v2734_v5 }
0x1569   :  { %v2736_v7 = vsel %vm777_vm5, %v2735_v6, 0.0 }
0x156a   :  { %2737 = vadd.xlane.f32.xlu0 %v2736_v7 }
0x15f7   :  { %v2738_v8 = vpop.xlane.xlu0 %2737 }
0x15f8   :  { %v2739_v9 = vrot.slane %v2738_v8, 4 }
0x15fa   :  { %v2740_v10 = vadd.f32 %v2739_v9, %v2738_v8 }
0x15fc   :  { %v2741_v11 = vrot.slane %v2740_v10, 2 }
0x15fe   :  { %v2742_v12 = vadd.f32 %v2741_v11, %v2740_v10 }
0x1600   :  { %v2743_v21 = vrot.slane %v2742_v12, 1 }
0x1602   :  { %v2744_v22 = vadd.f32 %v2743_v21, %v2742_v12 }
0x1604   :  { %5330 = vpush %v2744_v22 }
0x1635   :  { %s5331_s16 = spop %5330 }
0x1636   :  { %s2748_s0 = smul.f32 0.03125, %s5331_s16 }
0x1638   :  { %s2749_s20 = sadd.f32 1e-05, %s2748_s0 }
0x163a   :  { %v2750_v25 = vstv %s2749_s20 }
0x163b   :  { %5498 = vrsqrt.f32 %v2750_v25 }
0x1645   :  { %v5499_v27 = vpop.eup %5498 }
0x1646   :  { %5332 = vpush %v5499_v27 }
0x1647   :  { %5334 = vpush %v6415_v26 }
0x1648   :  { %5336 = vpush %v6418_v28 }
0x1677   :  { %s5333_s4 = spop %5332 }
0x1678   :  { %v2753_v29 = vstv %s5333_s4  ;;  %s5335_s17 = spop %5334 }
0x1679   :  { %v2754_v30 = vmul.f32 %v2753_v29, %v2734_v5  ;;  %v2757_v31 = vstv %s5335_s17  ;;  %s5337_s5 = spop %5336 }
0x167a   :  { %v2761_v32 = vstv %s5337_s5 }
0x167b   :  { %v2758_v61 = vmul.f32 %v2757_v31, %v2754_v30 }
0x167d   :  { %v2762_v62 = vadd.f32 %v2761_v32, %v2758_v61 }
0x167f   :  { %v2763_v33 = vmax.f32 %v2762_v62, 0.0 }
0x1681   :  { %v2764_v34 = vsel %vm777_vm5, %v2763_v33, 0.0 }
0x1682   :  { %2765 = vadd.xlane.f32.xlu1 %v2764_v34 }
0x1693   :  { %2800 = vrot.lane.b32.xlu1 %v6415_v26, %s5948_s8 }
0x170f   :  { %v2766_v35 = vpop.xlane.xlu1 %2765 }
0x1710   :  { %v2767_v36 = vrot.slane %v2766_v35, 4 }
0x1712   :  { %v2768_v37 = vadd.f32 %v2767_v36, %v2766_v35 }
0x1713   :  { %v2801_v54 = vpop.permute.xlu1 %2800 }
0x1714   :  { %v2769_v39 = vrot.slane %v2768_v37, 2 }
0x1716   :  { %v2770_v41 = vadd.f32 %v2769_v39, %v2768_v37 }
0x1718   :  { %v2771_v42 = vrot.slane %v2770_v41, 1 }
0x171a   :  { %v2772_v43 = vadd.f32 %v2771_v42, %v2770_v41 }
0x171c   :  { %5338 = vpush %v2772_v43 }
0x174d   :  { %s5339_s12 = spop %5338 }
0x174e   :  { %s2776_s18 = smul.f32 0.03125, %s5339_s12 }
0x1750   :  { %v2777_v44 = vstv %s2776_s18 }
0x1751   :  { %v2778_v45 = vsub.f32 %v2763_v33, %v2777_v44 }
0x1753   :  { %v2779_v46 = vmul.f32 %v2778_v45, %v2778_v45 }
0x1755   :  { %v2780_v47 = vsel %vm777_vm5, %v2779_v46, 0.0 }
0x1756   :  { %2781 = vadd.xlane.f32.xlu0 %v2780_v47 }
0x176c   :  { %2807 = vrot.lane.b32.xlu0 %v6418_v28, %s5948_s8 }
0x17e3   :  { %v2782_v19 = vpop.xlane.xlu0 %2781 }
0x17e4   :  { %v2783_v20 = vrot.slane %v2782_v19, 4 }
0x17e6   :  { %v2784_v48 = vadd.f32 %v2783_v20, %v2782_v19 }
0x17e7   :  { %v2808_v55 = vpop.permute.xlu0 %2807 }
0x17e8   :  { %v2785_v49 = vrot.slane %v2784_v48, 2 }
0x17ea   :  { %v2786_v50 = vadd.f32 %v2785_v49, %v2784_v48 }
0x17ec   :  { %v2787_v51 = vrot.slane %v2786_v50, 1 }
0x17ee   :  { %v2788_v52 = vadd.f32 %v2787_v51, %v2786_v50 }
0x17f0   :  { %5340 = vpush %v2788_v52 }
0x1821   :  { %s5341_s23 = spop %5340 }
0x1822   :  { %s2792_s26 = smul.f32 0.03125, %s5341_s23 }
0x1824   :  { %s2793_s21 = sadd.f32 1e-05, %s2792_s26 }
0x1826   :  { %v2794_v53 = vstv %s2793_s21 }
0x1827   :  { %5500 = vrsqrt.f32 %v2794_v53 }
0x1831   :  { %v5501_v23 = vpop.eup %5500 }
0x1832   :  { %5342 = vpush %v5501_v23 }
0x1833   :  { %5344 = vpush %v2801_v54 }
0x1834   :  { %5346 = vpush %v2808_v55 }
0x1863   :  { %s5343_s8 = spop %5342 }
0x1864   :  { %v2797_v24 = vstv %s5343_s8  ;;  %s5345_s7 = spop %5344 }
0x1865   :  { %v2798_v56 = vmul.f32 %v2797_v24, %v2778_v45  ;;  %v2804_v57 = vstv %s5345_s7  ;;  %s5347_s24 = spop %5346 }
0x1866   :  { %v2811_v58 = vstv %s5347_s24 }
0x1867   :  { %v2805_v38 = vmul.f32 %v2804_v57, %v2798_v56 }
0x1869   :  { %v2812_v59 = vadd.f32 %v2811_v58, %v2805_v38 }
0x186b   :  { %v2813_v60 = vmax.f32 %v2812_v59, 0.0 }
0x186d   :  { %v2814_v63 = vsel %vm777_vm5, %v2813_v60, 0.0 }
0x186e   :  { %2815 = vadd.xlane.f32.xlu1 %v2814_v63 }
0x187f   :  { %2849 = vrot.lane.b32.xlu1 %v6415_v26, %s5949_s27 }
0x18fb   :  { %v2816_v0 = vpop.xlane.xlu1 %2815 }
0x18fc   :  { %v2817_v40 = vrot.slane %v2816_v0, 4 }
0x18fe   :  { %v2818_v2 = vadd.f32 %v2817_v40, %v2816_v0 }
0x18ff   :  { %v2850_v31 = vpop.permute.xlu1 %2849 }
0x1900   :  { %v2819_v3 = vrot.slane %v2818_v2, 2 }
0x1902   :  { %v2820_v4 = vadd.f32 %v2819_v3, %v2818_v2 }
0x1904   :  { %v2821_v5 = vrot.slane %v2820_v4, 1 }
0x1906   :  { %v2822_v6 = vadd.f32 %v2821_v5, %v2820_v4 }
0x1908   :  { %5348 = vpush %v2822_v6 }
0x1939   :  { %s5349_s13 = spop %5348 }
0x193a   :  { %s2826_s28 = smul.f32 0.03125, %s5349_s13 }
0x193c   :  { %v2827_v7 = vstv %s2826_s28 }
0x193d   :  { %v2828_v8 = vsub.f32 %v2813_v60, %v2827_v7 }
0x193f   :  { %v2829_v9 = vmul.f32 %v2828_v8, %v2828_v8 }
0x1941   :  { %v2830_v10 = vsel %vm777_vm5, %v2829_v9, 0.0 }
0x1942   :  { %2831 = vadd.xlane.f32.xlu0 %v2830_v10 }
0x1958   :  { %2855 = vrot.lane.b32.xlu0 %v6418_v28, %s5949_s27 }
0x19cf   :  { %v2832_v11 = vpop.xlane.xlu0 %2831 }
0x19d0   :  { %v2833_v12 = vrot.slane %v2832_v11, 4 }
0x19d2   :  { %v2834_v21 = vadd.f32 %v2833_v12, %v2832_v11 }
0x19d3   :  { %v2856_v61 = vpop.permute.xlu0 %2855 }
0x19d4   :  { %v2835_v22 = vrot.slane %v2834_v21, 2 }
0x19d6   :  { %v2836_v25 = vadd.f32 %v2835_v22, %v2834_v21 }
0x19d8   :  { %v2837_v27 = vrot.slane %v2836_v25, 1 }
0x19da   :  { %v2838_v29 = vadd.f32 %v2837_v27, %v2836_v25 }
0x19dc   :  { %5350 = vpush %v2838_v29 }
0x1a0d   :  { %s5351_s2 = spop %5350 }
0x1a0e   :  { %s2842_s6 = smul.f32 0.03125, %s5351_s2 }
0x1a10   :  { %s2843_s10 = sadd.f32 1e-05, %s2842_s6 }
0x1a12   :  { %v2844_v30 = vstv %s2843_s10 }
0x1a13   :  { %5502 = vrsqrt.f32 %v2844_v30 }
0x1a1d   :  { %v5503_v32 = vpop.eup %5502 }
0x1a1e   :  { %5352 = vpush %v5503_v32 }
0x1a1f   :  { %5354 = vpush %v2850_v31 }
0x1a20   :  { %5356 = vpush %v2856_v61 }
0x1a4f   :  { %s5353_s27 = spop %5352 }
0x1a50   :  { %v2847_v62 = vstv %s5353_s27  ;;  %s5355_s11 = spop %5354 }
0x1a51   :  { %v2848_v33 = vmul.f32 %v2847_v62, %v2828_v8  ;;  %v2853_v34 = vstv %s5355_s11  ;;  %s5357_s30 = spop %5356 }
0x1a52   :  { %v2859_v35 = vstv %s5357_s30 }
0x1a53   :  { %v2854_v36 = vmul.f32 %v2853_v34, %v2848_v33 }
0x1a55   :  { %v2860_v37 = vadd.f32 %v2859_v35, %v2854_v36 }
0x1a57   :  { %v2861_v39 = vmax.f32 %v2860_v37, 0.0 }
0x1a59   :  { %v2862_v41 = vsel %vm777_vm5, %v2861_v39, 0.0 }
0x1a5a   :  { %2863 = vadd.xlane.f32.xlu1 %v2862_v41 }
0x1a6b   :  { %2897 = vrot.lane.b32.xlu1 %v6415_v26, %s5950_s14 }
0x1ae7   :  { %v2864_v42 = vpop.xlane.xlu1 %2863 }
0x1ae8   :  { %v2865_v43 = vrot.slane %v2864_v42, 4 }
0x1aea   :  { %v2866_v44 = vadd.f32 %v2865_v43, %v2864_v42 }
0x1aeb   :  { %v2898_v56 = vpop.permute.xlu1 %2897 }
0x1aec   :  { %v2867_v45 = vrot.slane %v2866_v44, 2 }
0x1aee   :  { %v2868_v46 = vadd.f32 %v2867_v45, %v2866_v44  ;;  %v5578_v45 = vld [vmem:[%s6648_s29] sm:$0xff] }
0x1af0   :  { %v2869_v47 = vrot.slane %v2868_v46, 1 }
0x1af2   :  { %v2870_v19 = vadd.f32 %v2869_v47, %v2868_v46  ;;  %v5579_v46 = vld [vmem:[%s6090_s15] sm:$0xff] }
0x1af3   :  { %v6523_v47 = vld [vmem:[%s6646_s3] sm:$0xff] }
0x1af4   :  { %5358 = vpush %v2870_v19  ;;  %v6526_v19 = vld [vmem:[%s6647_s19] sm:$0xff] }
0x1b25   :  { %s5359_s25 = spop %5358 }
0x1b26   :  { %s2874_s16 = smul.f32 0.03125, %s5359_s25 }
0x1b28   :  { %v2875_v20 = vstv %s2874_s16 }
0x1b29   :  { %v2876_v48 = vsub.f32 %v2861_v39, %v2875_v20 }
0x1b2b   :  { %v2877_v49 = vmul.f32 %v2876_v48, %v2876_v48 }
0x1b2d   :  { %v2878_v50 = vsel %vm777_vm5, %v2877_v49, 0.0 }
0x1b2e   :  { %2879 = vadd.xlane.f32.xlu0 %v2878_v50 }
0x1b44   :  { %2903 = vrot.lane.b32.xlu0 %v6418_v28, %s5950_s14 }
0x1bbb   :  { %v2880_v26 = vpop.xlane.xlu0 %2879 }
0x1bbc   :  { %v2881_v51 = vrot.slane %v2880_v26, 4 }
0x1bbe   :  { %v2882_v52 = vadd.f32 %v2881_v51, %v2880_v26 }
0x1bbf   :  { %v2904_v58 = vpop.permute.xlu0 %2903 }
0x1bc0   :  { %v2883_v53 = vrot.slane %v2882_v52, 2 }
0x1bc2   :  { %v2884_v54 = vadd.f32 %v2883_v53, %v2882_v52 }
0x1bc4   :  { %v2885_v23 = vrot.slane %v2884_v54, 1 }
0x1bc6   :  { %v2886_v55 = vadd.f32 %v2885_v23, %v2884_v54 }
0x1bc8   :  { %5360 = vpush %v2886_v55 }
0x1bf9   :  { %s5361_s0 = spop %5360 }
0x1bfa   :  { %s2890_s20 = smul.f32 0.03125, %s5361_s0 }
0x1bfc   :  { %s2891_s4 = sadd.f32 1e-05, %s2890_s20 }
0x1bfe   :  { %v2892_v24 = vstv %s2891_s4 }
0x1bff   :  { %5504 = vrsqrt.f32 %v2892_v24 }
0x1c09   :  { %v5505_v57 = vpop.eup %5504 }
0x1c0a   :  { %5362 = vpush %v5505_v57 }
0x1c0b   :  { %5364 = vpush %v2898_v56 }
0x1c0c   :  { %5366 = vpush %v2904_v58 }
0x1c3b   :  { %s5363_s14 = spop %5362 }
0x1c3c   :  { %v2895_v28 = vstv %s5363_s14  ;;  %s5365_s17 = spop %5364 }
0x1c3d   :  { %v2896_v38 = vmul.f32 %v2895_v28, %v2876_v48  ;;  %v2901_v59 = vstv %s5365_s17  ;;  %s5367_s5 = spop %5366 }
0x1c3e   :  { %v2907_v60 = vstv %s5367_s5 }
0x1c3f   :  { %v2902_v63 = vmul.f32 %v2901_v59, %v2896_v38 }
0x1c41   :  { %v2908_v0 = vadd.f32 %v2907_v60, %v2902_v63 }
0x1c43   :  { %5173 = vmatmul.mubr.msk.f32.vlgmr.msra.gmra.mrb[26].mxu0 %vm284_vm1, %v2908_v0  ;;  %5178 = vmatmul.mubr.msk.f32.vlgmr.msra.gmra.mrb[26].mxu1 %vm284_vm1, %v2908_v0 }
0x1c44   :  { %5181 = vmatpush3.xpose.msk.msra.mxu0 %vm284_vm1, %v6248_v13  ;;  %5186 = vmatpush3.xpose.msk.msra.mxu1 %vm284_vm1, %v6251_v14 }
0x1c45   :  { %5182 = vmatprep.mubr.msk.f32.mxu0 %vm5947_vm0, %v5946_v1  ;;  %5187 = vmatprep.mubr.msk.f32.mxu1 %vm5947_vm0, %v5946_v1 }
0x1c46   :  { %5190 = vmatprep.subr.mxu0 %v5946_v1  ;;  %5195 = vmatprep.subr.mxu1 %v5946_v1 }
0x1c47   :  { %5183 = vmatmul.mubr.msk.f32.vlgmr.msra.gmra.mrb[28].mxu0 %vm284_vm1, %v2908_v0  ;;  %5188 = vmatmul.mubr.msk.f32.vlgmr.msra.gmra.mrb[28].mxu1 %vm284_vm1, %v2908_v0 }
0x1c48   :  { %5191 = vmatpush3.xpose.msk.msra.mxu0 %vm284_vm1, %v6264_v15  ;;  %5196 = vmatpush3.xpose.msk.msra.mxu1 %vm284_vm1, %v6267_v16 }
0x1c49   :  { %5192 = vmatprep.mubr.msk.f32.mxu0 %vm5947_vm0, %v5946_v1  ;;  %5197 = vmatprep.mubr.msk.f32.mxu1 %vm5947_vm0, %v5946_v1 }
0x1c4a   :  { %5200 = vmatprep.subr.mxu0 %v5946_v1  ;;  %5205 = vmatprep.subr.mxu1 %v5946_v1 }
0x1c4b   :  { %5193 = vmatmul.mubr.f32.vlgmr.msra.gmra.mrb[30].mxu0 %v5946_v1  ;;  %5198 = vmatmul.mubr.f32.vlgmr.msra.gmra.mrb[30].mxu1 %v5946_v1 }
0x1c4c   :  { %5201 = vmatpush3.xpose.msk.msra.mxu0 %vm284_vm1, %v6282_v17  ;;  %5206 = vmatpush3.xpose.msk.msra.mxu1 %vm284_vm1, %v6285_v18 }
0x1c4d   :  { %5202 = vmatprep.mubr.msk.f32.mxu0 %vm5947_vm0, %v5946_v1  ;;  %5207 = vmatprep.mubr.msk.f32.mxu1 %vm5947_vm0, %v5946_v1 }
0x1c4e   :  { %5210 = vmatprep.subr.mxu0 %v5946_v1  ;;  %5215 = vmatprep.subr.mxu1 %v5946_v1 }
0x1c4f   :  { %5203 = vmatmul.mubr.f32.vlgmr.msra.gmra.mrb[32].mxu0 %v5946_v1  ;;  %5208 = vmatmul.mubr.f32.vlgmr.msra.gmra.mrb[32].mxu1 %v5946_v1 }
0x1c50   :  { %5211 = vmatpush3.xpose.msk.msra.mxu0 %vm284_vm1, %v6264_v15  ;;  %5216 = vmatpush3.xpose.msk.msra.mxu1 %vm284_vm1, %v6267_v16 }
0x1c51   :  { %5212 = vmatprep.mubr.msk.f32.mxu0 %vm5947_vm0, %v5946_v1  ;;  %5217 = vmatprep.mubr.msk.f32.mxu1 %vm5947_vm0, %v5946_v1 }
0x1c52   :  { %5220 = vmatprep.subr.mxu0 %v5946_v1  ;;  %5225 = vmatprep.subr.mxu1 %v5946_v1 }
0x1d16   :  { %v6488_v13 = vpop.f32.mrb[26].mxu0  ;;  %v6490_v14 = vpop.f32.mrb[26].mxu1 }
0x1d17   :  { %v5174_v17 = vpop.f32.mrb[27].mxu0  ;;  %v5179_v18 = vpop.f32.mrb[27].mxu1 }
0x1d1a   :  { %v6492_v15 = vpop.f32.mrb[28].mxu0  ;;  %v6494_v40 = vpop.f32.mrb[28].mxu1 }
0x1d1b   :  { %v5184_v16 = vpop.f32.mrb[29].mxu0  ;;  %v5189_v2 = vpop.f32.mrb[29].mxu1 }
0x1d1e   :  { %v3278_v3 = vpop.f32.mrb[30].mxu0  ;;  %v3359_v4 = vpop.f32.mrb[30].mxu1 }
0x1d1f   :  { %v3282_v5 = vadd.f32 %v3278_v3, %v6488_v13  ;;  %v3363_v6 = vadd.f32 %v3359_v4, %v6490_v14  ;;  %v5194_v7 = vpop.f32.mrb[31].mxu0  ;;  %v5199_v8 = vpop.f32.mrb[31].mxu1 }
0x1d21   :  { %v4899_v9 = vmul.f32 -1.442695, %v3282_v5  ;;  %v4901_v10 = vmul.f32 -1.442695, %v3363_v6 }
0x1d22   :  { %v3440_v11 = vpop.f32.mrb[32].mxu0  ;;  %v3516_v12 = vpop.f32.mrb[32].mxu1 }
0x1d23   :  { %5506 = vpow2.f32 %v4899_v9  ;;  %v3444_v21 = vadd.f32 %v3440_v11, %v6492_v15  ;;  %v3520_v22 = vadd.f32 %v3516_v12, %v6494_v40  ;;  %v5204_v25 = vpop.f32.mrb[33].mxu0  ;;  %v5209_v27 = vpop.f32.mrb[33].mxu1 }
0x1d24   :  { %5508 = vpow2.f32 %v4901_v10  ;;  %v6547_v25 = vld [vmem:[%s6090_s15] sm:$0xff]  ;;  %s5952_s15 = smov 8  }
0x1d25   :  { %v4904_v29 = vmul.f32 -1.442695, %v3520_v22  ;;  %v6544_v22 = vld [vmem:[%s6648_s29] sm:$0xff] }
0x1d27   :  { %5510 = vpow2.f32 %v4904_v29 }
0x1d28   :  { %5512 = vtanh.f32 %v3444_v21 }
0x1d2d   :  { %v5507_v30 = vpop.eup %5506 }
0x1d2e   :  { %v5509_v31 = vpop.eup %5508  ;;  %v3286_v32 = vadd.f32 1.0, %v5507_v30 }
0x1d2f   :  { %v3367_v61 = vadd.f32 1.0, %v5509_v31 }
0x1d30   :  { %5514 = vrcp.f32 %v3286_v32 }
0x1d31   :  { %5516 = vrcp.f32 %v3367_v61  ;;  %v5511_v62 = vpop.eup %5510 }
0x1d32   :  { %v5513_v33 = vpop.eup %5512  ;;  %v3524_v37 = vadd.f32 1.0, %v5511_v62 }
0x1d34   :  { %5518 = vrcp.f32 %v3524_v37 }
0x1d3a   :  { %v5515_v34 = vpop.eup %5514 }
0x1d3b   :  { %v5517_v35 = vpop.eup %5516  ;;  %v3528_v36 = vmul.f32 %v5515_v34, %v5513_v33 }
0x1d3c   :  { %v3527_v39 = vmul.f32 0.0, %v5517_v35 }
0x1d3e   :  { %v6500_v41 = vadd.f32 %v3528_v36, %v3527_v39  ;;  %v5519_v42 = vpop.eup %5518 }
0x1d40   :  { %5520 = vtanh.f32 %v6500_v41  ;;  %v3868_v4 = vrot.slane %v6500_v41, 7 }
0x1d4a   :  { %v5521_v43 = vpop.eup %5520 }
0x1d4b   :  { %v3531_v44 = vmul.f32 %v5521_v43, %v5519_v42 }
0x1d4d   :  { %3532 = vst.msk [vmem:[#allocation2] sm:$0x1] %vm1683_vm6, %v3531_v44  ;;  %5213 = vmatmul.mubr.msk.f32.vlgmr.msra.gmra.mrb[34].mxu0 %vm284_vm1, %v3531_v44  ;;  %5218 = vmatmul.mubr.msk.f32.vlgmr.msra.gmra.mrb[34].mxu1 %vm284_vm1, %v3531_v44 }
0x1d4e   :  { %5221 = vmatpush3.xpose.msk.msra.mxu0 %vm284_vm1, %v5578_v45  ;;  %5226 = vmatpush3.xpose.msk.msra.mxu1 %vm284_vm1, %v5579_v46 }
0x1d4f   :  { %5222 = vmatprep.mubr.msk.f32.mxu0 %vm5947_vm0, %v5946_v1  ;;  %5227 = vmatprep.mubr.msk.f32.mxu1 %vm5947_vm0, %v5946_v1 }
0x1d50   :  { %5230 = vmatprep.subr.mxu0 %v5946_v1  ;;  %5235 = vmatprep.subr.mxu1 %v5946_v1 }
0x1d51   :  { %5223 = vmatmul.mubr.msk.f32.vlgmr.msra.gmra.mrb[36].mxu0 %vm284_vm1, %v3531_v44  ;;  %5228 = vmatmul.mubr.msk.f32.vlgmr.msra.gmra.mrb[36].mxu1 %vm284_vm1, %v3531_v44 }
0x1d52   :  { %5232 = vmatprep.mubr.msk.f32.mxu0 %vm5947_vm0, %v5946_v1  ;;  %5237 = vmatprep.mubr.msk.f32.mxu1 %vm5947_vm0, %v5946_v1 }
0x1d53   :  { %5231 = vmatpush3.xpose.msk.msra.mxu0 %vm284_vm1, %v6523_v47  ;;  %5236 = vmatpush3.xpose.msk.msra.mxu1 %vm284_vm1, %v6526_v19 }
0x1d54   :  { %5240 = vmatprep.subr.mxu0 %v5946_v1  ;;  %5245 = vmatprep.subr.mxu1 %v5946_v1 }
0x1e20   :  { %v3606_v20 = vpop.f32.mrb[34].mxu0  ;;  %v3690_v48 = vpop.f32.mrb[34].mxu1 }
0x1e21   :  { %v3611_v49 = vrot.slane %v3606_v20, 7  ;;  %v3695_v50 = vrot.slane %v3690_v48, 7  ;;  %v5214_v26 = vpop.f32.mrb[35].mxu0  ;;  %v5219_v51 = vpop.f32.mrb[35].mxu1 }
0x1e23   :  { %v3613_v52 = vadd.f32 %v3611_v49, %v6488_v13  ;;  %v3697_v53 = vadd.f32 %v3695_v50, %v6490_v14 }
0x1e24   :  { %v3774_v54 = vpop.f32.mrb[36].mxu0  ;;  %v3853_v23 = vpop.f32.mrb[36].mxu1 }
0x1e25   :  { %v4907_v55 = vmul.f32 -1.442695, %v3613_v52  ;;  %v4910_v24 = vmul.f32 -1.442695, %v3697_v53  ;;  %v3779_v56 = vrot.slane %v3774_v54, 7  ;;  %v3858_v57 = vrot.slane %v3853_v23, 7 }
0x1e26   :  { %v5224_v58 = vpop.f32.mrb[37].mxu0  ;;  %v5229_v28 = vpop.f32.mrb[37].mxu1 }
0x1e27   :  { %5522 = vpow2.f32 %v4907_v55  ;;  %v3781_v38 = vadd.f32 %v3779_v56, %v6492_v15  ;;  %v3860_v59 = vadd.f32 %v3858_v57, %v6494_v40  ;;  %v4642_v28 = vld [vmem:[%s6100_s1] sm:$0xff] }
0x1e28   :  { %5524 = vpow2.f32 %v4910_v24 }
0x1e29   :  { %v4915_v60 = vmul.f32 -1.442695, %v3860_v59 }
0x1e2b   :  { %5526 = vpow2.f32 %v4915_v60  ;;  %v5951_v60 = vmov 0.0|0.0  }
0x1e2c   :  { %5528 = vtanh.f32 %v3781_v38  ;;  %v4643_v38 = vld [vmem:[%s6100_s1 + $0x8] sm:$0x1] }
0x1e2d   :  { %v5283_v59 = vpack.c.bf16 %v4643_v38, %v4642_v28 }
0x1e31   :  { %v5523_v63 = vpop.eup %5522 }
0x1e32   :  { %v5525_v0 = vpop.eup %5524  ;;  %v3617_v17 = vadd.f32 1.0, %v5523_v63  ;;  %v4565_v63 = vld [vmem:[%s6095_s22] sm:$0xff]  ;;  %s5953_s22 = smov [#allocation25]  }
0x1e33   :  { %v3701_v18 = vadd.f32 1.0, %v5525_v0  ;;  %s4775_s1 = sshll.u32 %s5953_s22, 4  ;;  %s4776_s1 = int_to_ptr.vmem [resolvable:$true] %s4775_s1 }
0x1e34   :  { %5530 = vrcp.f32 %v3617_v17  ;;  %s5866_s3 = scalar_lea.vmem %s4776_s1, 64  ;;  %p5871_p7 = scmp.lt.s32.totalorder %s4776_s1, %s4776_s1 }
0x1e35   :  { %5532 = vrcp.f32 %v3701_v18  ;;  %v5527_v16 = vpop.eup %5526  ;;  %p5867_p6 = scmp.ne.s32.totalorder %s4776_s1, %s5866_s3  ;;  %p5872_p8 = scmp.lt.s32.totalorder %s5866_s3, %s5866_s3 }
0x1e36   :  { %v5529_v2 = vpop.eup %5528  ;;  %v3864_v7 = vadd.f32 1.0, %v5527_v16 }
0x1e37   :  { %p5873_p9 = por %p5872_p8, %p5871_p7 }
0x1e38   :  { %5534 = vrcp.f32 %v3864_v7 }
0x1e39   :  { %p5874_p10 = pnand %p5873_p9, %p5867_p6 }
0x1e3e   :  { %v5531_v3 = vpop.eup %5530 }
0x1e3f   :  { %v5533_v5 = vpop.eup %5532  ;;  %v3871_v6 = vmul.f32 %v5531_v3, %v5529_v2 }
0x1e40   :  { %v3870_v8 = vmul.f32 %v5533_v5, %v3868_v4 }
0x1e42   :  { %v6539_v9 = vadd.f32 %v3871_v6, %v3870_v8  ;;  %v5535_v10 = vpop.eup %5534 }
0x1e44   :  { %5536 = vtanh.f32 %v6539_v9  ;;  %v4212_v51 = vrot.slane %v6539_v9, 7 }
0x1e4e   :  { %v5537_v11 = vpop.eup %5536 }
0x1e4f   :  { %v3874_v12 = vmul.f32 %v5537_v11, %v5535_v10 }
0x1e51   :  { %3875 = vst.msk [vmem:[#allocation2] sm:$0x2] %vm2027_vm7, %v3874_v12  ;;  %v3878_v21 = vrot.slane %v3874_v12, 1 }
0x1e53   :  { %5233 = vmatmul.mubr.msk.f32.vlgmr.msra.gmra.mrb[38].mxu0 %vm284_vm1, %v3878_v21  ;;  %5238 = vmatmul.mubr.msk.f32.vlgmr.msra.gmra.mrb[38].mxu1 %vm284_vm1, %v3878_v21 }
0x1e54   :  { %5241 = vmatpush3.xpose.msk.msra.mxu0 %vm284_vm1, %v6544_v22  ;;  %5246 = vmatpush3.xpose.msk.msra.mxu1 %vm284_vm1, %v6547_v25 }
0x1e55   :  { %5242 = vmatprep.mubr.msk.f32.mxu0 %vm5947_vm0, %v5946_v1  ;;  %5247 = vmatprep.mubr.msk.f32.mxu1 %vm5947_vm0, %v5946_v1 }
0x1e56   :  { %5250 = vmatprep.subr.mxu0 %v5946_v1  ;;  %5255 = vmatprep.subr.mxu1 %v5946_v1 }
0x1e57   :  { %5243 = vmatmul.mubr.msk.f32.vlgmr.msra.gmra.mrb[40].mxu0 %vm284_vm1, %v3878_v21  ;;  %5248 = vmatmul.mubr.msk.f32.vlgmr.msra.gmra.mrb[40].mxu1 %vm284_vm1, %v3878_v21 }
0x1e58   :  { %5251 = vmatpush3.xpose.msk.msra.mxu0 %vm284_vm1, %v6523_v47  ;;  %5256 = vmatpush3.xpose.msk.msra.mxu1 %vm284_vm1, %v6526_v19 }
0x1e59   :  { %5252 = vmatprep.mubr.msk.f32.mxu0 %vm5947_vm0, %v5946_v1  ;;  %5257 = vmatprep.mubr.msk.f32.mxu1 %vm5947_vm0, %v5946_v1 }
0x1e5a   :  { %5260 = vmatprep.subr.mxu0 %v5946_v1  ;;  %5265 = vmatprep.subr.mxu1 %v5946_v1 }
0x1f26   :  { %v3950_v27 = vpop.f32.mrb[38].mxu0  ;;  %v4034_v29 = vpop.f32.mrb[38].mxu1 }
0x1f27   :  { %v3955_v30 = vrot.slane %v3950_v27, 6  ;;  %v4039_v31 = vrot.slane %v4034_v29, 6  ;;  %v5234_v32 = vpop.f32.mrb[39].mxu0  ;;  %v5239_v61 = vpop.f32.mrb[39].mxu1 }
0x1f29   :  { %v3957_v62 = vadd.f32 %v3955_v30, %v6488_v13  ;;  %v4041_v33 = vadd.f32 %v4039_v31, %v6490_v14 }
0x1f2a   :  { %v4118_v34 = vpop.f32.mrb[40].mxu0  ;;  %v4197_v35 = vpop.f32.mrb[40].mxu1 }
0x1f2b   :  { %v4918_v36 = vmul.f32 -1.442695, %v3957_v62  ;;  %v4921_v37 = vmul.f32 -1.442695, %v4041_v33  ;;  %v4123_v39 = vrot.slane %v4118_v34, 6  ;;  %v4202_v41 = vrot.slane %v4197_v35, 6 }
0x1f2c   :  { %v5244_v42 = vpop.f32.mrb[41].mxu0  ;;  %v5249_v43 = vpop.f32.mrb[41].mxu1 }
0x1f2d   :  { %5538 = vpow2.f32 %v4918_v36  ;;  %v4125_v44 = vadd.f32 %v4123_v39, %v6492_v15  ;;  %v4204_v45 = vadd.f32 %v4202_v41, %v6494_v40 }
0x1f2e   :  { %5540 = vpow2.f32 %v4921_v37 }
0x1f2f   :  { %v4926_v46 = vmul.f32 -1.442695, %v4204_v45 }
0x1f31   :  { %5542 = vpow2.f32 %v4926_v46 }
0x1f32   :  { %5544 = vtanh.f32 %v4125_v44 }
0x1f37   :  { %v5539_v47 = vpop.eup %5538 }
0x1f38   :  { %v5541_v19 = vpop.eup %5540  ;;  %v3961_v20 = vadd.f32 1.0, %v5539_v47 }
0x1f39   :  { %v4045_v48 = vadd.f32 1.0, %v5541_v19 }
0x1f3a   :  { %5546 = vrcp.f32 %v3961_v20 }
0x1f3b   :  { %5548 = vrcp.f32 %v4045_v48  ;;  %v5543_v49 = vpop.eup %5542 }
0x1f3c   :  { %v5545_v50 = vpop.eup %5544  ;;  %v4208_v54 = vadd.f32 1.0, %v5543_v49 }
0x1f3e   :  { %5550 = vrcp.f32 %v4208_v54 }
0x1f44   :  { %v5547_v26 = vpop.eup %5546 }
0x1f45   :  { %v5549_v52 = vpop.eup %5548  ;;  %v4215_v53 = vmul.f32 %v5547_v26, %v5545_v50 }
0x1f46   :  { %v4214_v23 = vmul.f32 %v5549_v52, %v4212_v51 }
0x1f48   :  { %v6578_v55 = vadd.f32 %v4215_v53, %v4214_v23  ;;  %v5551_v24 = vpop.eup %5550 }
0x1f4a   :  { %5552 = vtanh.f32 %v6578_v55  ;;  %v4556_v61 = vrot.slane %v6578_v55, 7 }
0x1f54   :  { %v5553_v56 = vpop.eup %5552 }
0x1f55   :  { %v4218_v57 = vmul.f32 %v5553_v56, %v5551_v24 }
0x1f57   :  { %4219 = vst.msk [vmem:[#allocation2] sm:$0x4] %vm2372_vm8, %v4218_v57  ;;  %v4222_v58 = vrot.slane %v4218_v57, 2 }
0x1f59   :  { %5253 = vmatmul.mubr.msk.f32.vlgmr.msra.gmra.mrb[42].mxu0 %vm284_vm1, %v4222_v58  ;;  %5258 = vmatmul.mubr.msk.f32.vlgmr.msra.gmra.mrb[42].mxu1 %vm284_vm1, %v4222_v58 }
0x1f5a   :  { %5261 = vmatpush3.xpose.msk.msra.mxu0 %vm284_vm1, %v6544_v22  ;;  %5266 = vmatpush3.xpose.msk.msra.mxu1 %vm284_vm1, %v6547_v25 }
0x1f5b   :  { %5262 = vmatprep.mubr.msk.f32.mxu0 %vm5947_vm0, %v5946_v1  ;;  %5267 = vmatprep.mubr.msk.f32.mxu1 %vm5947_vm0, %v5946_v1 }
0x1f5c   :  { %5270 = vmatprep.subr.mxu0 %v5946_v1  ;;  %5282 = vmatprep.subr.bf16.mxu1 %v5951_v60 }
0x1f5d   :  { %5263 = vmatmul.mubr.msk.f32.vlgmr.msra.gmra.mrb[44].mxu0 %vm284_vm1, %v4222_v58  ;;  %5268 = vmatmul.mubr.msk.f32.vlgmr.msra.gmra.mrb[44].mxu1 %vm284_vm1, %v4222_v58 }
0x1f5e   :  { %5272 = vmatprep.mubr.msk.f32.mxu0 %vm5947_vm0, %v5946_v1  ;;  %5279 = vmatprep.mubr.msk.f32.mxu1 %vm5947_vm0, %v5946_v1 }
0x1f5f   :  { %5285 = vmatpush3.bf16.xpose.msk.msra.mxu1 %vm5284_vm10, %v5283_v59  ;;  %5271 = vmatpush3.xpose.msk.msra.mxu0 %vm284_vm1, %v4565_v63 }
0x202c   :  { %v4294_v0 = vpop.f32.mrb[42].mxu0  ;;  %v4378_v17 = vpop.f32.mrb[42].mxu1 }
0x202d   :  { %v4299_v18 = vrot.slane %v4294_v0, 5  ;;  %v4383_v16 = vrot.slane %v4378_v17, 5  ;;  %v5254_v2 = vpop.f32.mrb[43].mxu0  ;;  %v5259_v3 = vpop.f32.mrb[43].mxu1 }
0x202f   :  { %v4301_v1 = vadd.f32 %v4299_v18, %v6488_v13  ;;  %v4385_v4 = vadd.f32 %v4383_v16, %v6490_v14 }
0x2030   :  { %v4462_v5 = vpop.f32.mrb[44].mxu0  ;;  %v4541_v6 = vpop.f32.mrb[44].mxu1 }
0x2031   :  { %v4929_v7 = vmul.f32 -1.442695, %v4301_v1  ;;  %v4932_v8 = vmul.f32 -1.442695, %v4385_v4  ;;  %v4467_v9 = vrot.slane %v4462_v5, 5  ;;  %v4546_v10 = vrot.slane %v4541_v6, 5 }
0x2032   :  { %v5264_v11 = vpop.f32.mrb[45].mxu0  ;;  %v5269_v12 = vpop.f32.mrb[45].mxu1 }
0x2033   :  { %5554 = vpow2.f32 %v4929_v7  ;;  %v4469_v21 = vadd.f32 %v4467_v9, %v6492_v15  ;;  %v4548_v22 = vadd.f32 %v4546_v10, %v6494_v40 }
0x2034   :  { %5556 = vpow2.f32 %v4932_v8 }
0x2035   :  { %v4937_v25 = vmul.f32 -1.442695, %v4548_v22 }
0x2037   :  { %5558 = vpow2.f32 %v4937_v25 }
0x2038   :  { %5560 = vtanh.f32 %v4469_v21 }
0x203d   :  { %v5555_v27 = vpop.eup %5554 }
0x203e   :  { %v5557_v29 = vpop.eup %5556  ;;  %v4305_v13 = vadd.f32 1.0, %v5555_v27 }
0x203f   :  { %v4389_v14 = vadd.f32 1.0, %v5557_v29 }
0x2040   :  { %5562 = vrcp.f32 %v4305_v13 }
0x2041   :  { %5564 = vrcp.f32 %v4389_v14  ;;  %v5559_v30 = vpop.eup %5558 }
0x2042   :  { %v5561_v31 = vpop.eup %5560  ;;  %v4552_v15 = vadd.f32 1.0, %v5559_v30 }
0x2044   :  { %5566 = vrcp.f32 %v4552_v15 }
0x204a   :  { %v5563_v32 = vpop.eup %5562 }
0x204b   :  { %v5565_v62 = vpop.eup %5564  ;;  %v4559_v33 = vmul.f32 %v5563_v32, %v5561_v31 }
0x204c   :  { %v4558_v34 = vmul.f32 %v5565_v62, %v4556_v61 }
0x204e   :  { %v4560_v40 = vadd.f32 %v4559_v33, %v4558_v34  ;;  %v5567_v35 = vpop.eup %5566 }
0x2050   :  { %5568 = vtanh.f32 %v4560_v40 }
0x205a   :  { %v5569_v36 = vpop.eup %5568 }
0x205b   :  { %v4562_v37 = vmul.f32 %v5569_v36, %v5567_v35 }
0x205d   :  { %4563 = vst.msk [vmem:[#allocation2] sm:$0x8] %vm2717_vm9, %v4562_v37 }
0x2064   :  { %v4564_v39 = vld [vmem:[#allocation2] sm:$0xf] }
0x2065   :  { %5273 = vmatmul.mubr.msk.f32.vlgmr.msra.gmra.mrb[46].mxu0 %vm284_vm1, %v4564_v39  ;;  %5280 = vmatmul.mubr.msk.f32.vlgmr.msra.gmra.mrb[46].mxu1 %vm284_vm1, %v4564_v39 }
0x2138   :  { %v4638_v41 = vpop.f32.mrb[46].mxu0  ;;  %v4716_v42 = vpop.f32.mrb[46].mxu1 }
0x2139   :  { %v4741_v43 = vsel %vm4740_vm11, %v4716_v42, -inf  ;;  %v5274_v44 = vpop.f32.mrb[47].mxu0  ;;  %v5281_v45 = vpop.f32.mrb[47].mxu1  ;;  %v4720_v38 = vsel %vm777_vm5, %v4638_v41, -inf }
0x213a   :  { %v4742_v46 = vrot.slane %v4741_v43, 4  ;;  %v4721_v59 = vrot.slane %v4720_v38, 4 }
0x213c   :  { %v4743_v47 = vmax.f32 %v4741_v43, %v4742_v46  ;;  %v4722_v60 = vmax.f32 %v4720_v38, %v4721_v59 }
0x213e   :  { %v4744_v19 = vrot.slane %v4743_v47, 2  ;;  %v4723_v63 = vrot.slane %v4722_v60, 2 }
0x2140   :  { %v4745_v20 = vmax.f32 %v4743_v47, %v4744_v19  ;;  %v4724_v0 = vmax.f32 %v4722_v60, %v4723_v63 }
0x2142   :  { %v4746_v48 = vrot.slane %v4745_v20, 1  ;;  %v4725_v17 = vrot.slane %v4724_v0, 1 }
0x2144   :  { %v4747_v49 = vmax.f32 %v4745_v20, %v4746_v48  ;;  %v4726_v18 = vmax.f32 %v4724_v0, %v4725_v17 }
0x2146   :  { %v4748_v50 = vsub.f32 %v4716_v42, %v4747_v49  ;;  %v4727_v16 = vsub.f32 %v4638_v41, %v4726_v18 }
0x2148   :  { %v4749_v26 = vmul.f32 1.442695, %v4748_v50  ;;  %v4728_v2 = vmul.f32 1.442695, %v4727_v16 }
0x214a   :  { %5570 = vpow2.f32 %v4749_v26 }
0x2154   :  { %v5571_v51 = vpop.eup %5570 }
0x2155   :  { %v4751_v52 = vsel %vm4740_vm11, %v5571_v51, 0.0 }
0x2156   :  { %v4752_v53 = vrot.slane %v4751_v52, 4 }
0x2158   :  { %v4753_v54 = vadd.f32 %v4752_v53, %v4751_v52 }
0x215a   :  { %v4754_v23 = vrot.slane %v4753_v54, 2 }
0x215c   :  { %v4755_v55 = vadd.f32 %v4754_v23, %v4753_v54 }
0x215e   :  { %v4756_v24 = vrot.slane %v4755_v55, 1 }
0x2160   :  { %v4757_v56 = vadd.f32 %v4756_v24, %v4755_v55 }
0x2162   :  { %5572 = vlog2.f32 %v4757_v56 }
0x2163   :  { %5574 = vpow2.f32 %v4728_v2 }
0x216c   :  { %v5573_v57 = vpop.eup %5572 }
0x216d   :  { %v4759_v58 = vmul.f32 0.6931472, %v5573_v57  ;;  %v5575_v3 = vpop.eup %5574 }
0x216e   :  { %v4730_v1 = vsel %vm777_vm5, %v5575_v3, 0.0 }
0x216f   :  { %v4760_v28 = vsub.f32 %v4748_v50, %v4759_v58  ;;  %v4731_v4 = vrot.slane %v4730_v1, 4 }
0x2171   :  { %4762 = vrot.lane.b32.xlu1 %v4760_v28, %s5952_s15  ;;  %v4732_v5 = vadd.f32 %v4731_v4, %v4730_v1 }
0x2173   :  { %v4733_v6 = vrot.slane %v4732_v5, 2 }
0x2175   :  { %v4734_v7 = vadd.f32 %v4733_v6, %v4732_v5 }
0x2177   :  { %v4735_v8 = vrot.slane %v4734_v7, 1 }
0x2179   :  { %v4736_v9 = vadd.f32 %v4735_v8, %v4734_v7 }
0x217b   :  { %5576 = vlog2.f32 %v4736_v9 }
0x2185   :  { %v5577_v10 = vpop.eup %5576 }
0x2186   :  { %v4738_v11 = vmul.f32 0.6931472, %v5577_v10 }
0x2188   :  { %v4739_v12 = vsub.f32 %v4727_v16, %v4738_v11 }
0x21e3   :  { %v4763_v21 = vpop.permute.xlu1 %4762 }
0x21e4   :  { %v4765_v22 = vsel %vm284_vm1, %v4739_v12, %v4763_v21 }
0x21e5   :  { %v4767_v25 = vsel %vm4766_vm12, %v4765_v22, 0.0 }
0x21e6   :  { %4768 = vst [vmem:[#allocation25] sm:$0xf] %v4767_v25 }
0x21e7   :  { %5877 = shalt.err (!%p5874_p10)
}
0x21e8   :  { %s5878_s19 = scalar_lea.hbm %s6105_s9, 64 }
0x21e9   :  { %p5879_p11 = scmp.ne.s32.totalorder %s6105_s9, %s5878_s19  ;;  %p5882_p12 = scmp.lt.u32.totalorder %s5878_s19, %s6105_s9 }
0x21eb   :  { %p5884_p13 = pnand %p5882_p12, %p5879_p11 }
0x21ed   :  { %5887 = shalt.err (!%p5884_p13)
}
0x21ee   :  { %4778 = dma.vmem_to_hbm [thread:$0]  %s4776_s1, 64, %s6105_s9, [#allocation6]  }
0x21ef   :  { %5902 = dma.done.wait [#allocation6], 64  }
0x21f0   :  { %5903 = vsyncadd [#allocation6], 4294967232 }
0x21f1   :  { %4782 = vsyncpa [#allocation5], 1 }
0x21f2   :  { %4783 = vsyncpa [#allocation8], 1 }
0x21f3   :  { %4784 = vsyncpa [#allocation11], 1 }
0x21f4   :  { %4785 = vsyncpa [#allocation14], 1 }
0x21f5   :  { %4786 = vsyncpa [#allocation17], 1 }
0x21f6   :  { %4787 = vsyncpa [#allocation20], 1 }
0x21f7   :  { %4788 = vsyncpa [#allocation23], 1 }
0x21f8   :  { %4789 = vsyncpa [#allocation6], 1 }

</bundles_post_ra>
